<compile_context>
chip_gen: v6e
topology: v6e:2x2x1
jax: 0.10.0
libtpu: 0.0.40
codegen_flags: <defaults>
</compile_context>

<pallas_src>
import functools

import jax
import jax.numpy as jnp
from jax.experimental import pallas as pl
from jax.experimental.pallas import tpu as pltpu


# ----------------------------------------------------------------------------
# One GateConvLSTMCell step in (C, B*H*W) layout (values are jnp arrays,
# weights are VMEM refs).
# ----------------------------------------------------------------------------
def _cell(x, h, c, p_ref, s_ref,
          wgx_ref, wgh_ref, bg_ref, wxd_ref, bxd_ref, whd_ref,
          wxp_ref, whp_ref, kk):
    chid = whp_ref.shape[0]

    # --- gates: global average pool + center-tap conv, fused as matmuls -----
    pool = p_ref[...]                                                # (N, N)
    pooled_x = jnp.dot(x, pool, preferred_element_type=jnp.float32)  # (Cin, N)
    pooled_h = jnp.dot(h, pool, preferred_element_type=jnp.float32)  # (Chid, N)
    gates = jax.nn.sigmoid(
        jnp.dot(wgx_ref[...], pooled_x, preferred_element_type=jnp.float32)
        + jnp.dot(wgh_ref[...], pooled_h, preferred_element_type=jnp.float32)
        + bg_ref[...])                                               # (3*Chid, N)
    ci = gates[0:chid]
    cf = gates[chid:2 * chid]
    co = gates[2 * chid:3 * chid]

    # --- depthwise kxk conv: per-tap shift-with-mask matmul + per-channel MAC
    def depthwise(v, wd_ref, bd_ref=None):
        wd = wd_ref[...]                                             # (C, k*k)
        acc = jnp.zeros(v.shape, jnp.float32)
        for tap in range(kk):
            shifted = jnp.dot(v, s_ref[tap],                         # (C, N)
                              preferred_element_type=jnp.float32)
            acc = acc + shifted * wd[:, tap:tap + 1]
        if bd_ref is not None:
            acc = acc + bd_ref[...]
        return acc

    xd = depthwise(x, wxd_ref, bxd_ref)                              # (Cin, N)
    hd = depthwise(h, whd_ref)                                       # (Chid, N)

    # --- pointwise 1x1 conv (single matmul) + candidate ---------------------
    G = jnp.tanh(jnp.dot(wxp_ref[...], xd, preferred_element_type=jnp.float32)
                 + jnp.dot(whp_ref[...], hd, preferred_element_type=jnp.float32))

    cc = cf * c + ci * G
    ch = co * jnp.tanh(cc)
    return ch, cc


# ----------------------------------------------------------------------------
# Fused kernel: full time recurrence over 2 layers, state in VMEM scratch.
# ----------------------------------------------------------------------------
def fused_lstm_kernel(x_ref, p_ref, s_ref,
                      wgx0_ref, wgh0_ref, bg0_ref, wxd0_ref, bxd0_ref,
                      whd0_ref, wxp0_ref, whp0_ref,
                      wgx1_ref, wgh1_ref, bg1_ref, wxd1_ref, bxd1_ref,
                      whd1_ref, wxp1_ref, whp1_ref,
                      out_seq_ref, out_c_ref,
                      h0_ref, c0_ref, h1_ref, c1_ref, *, kk):
    t = pl.program_id(0)

    @pl.when(t == 0)
    def _init():
        h0_ref[...] = jnp.zeros_like(h0_ref)
        c0_ref[...] = jnp.zeros_like(c0_ref)
        h1_ref[...] = jnp.zeros_like(h1_ref)
        c1_ref[...] = jnp.zeros_like(c1_ref)

    x = x_ref[0]                                                     # (Cin0, N)

    ch0, cc0 = _cell(x, h0_ref[...], c0_ref[...], p_ref, s_ref,
                     wgx0_ref, wgh0_ref, bg0_ref, wxd0_ref, bxd0_ref,
                     whd0_ref, wxp0_ref, whp0_ref, kk)
    h0_ref[...] = ch0
    c0_ref[...] = cc0

    ch1, cc1 = _cell(ch0, h1_ref[...], c1_ref[...], p_ref, s_ref,
                     wgx1_ref, wgh1_ref, bg1_ref, wxd1_ref, bxd1_ref,
                     whd1_ref, wxp1_ref, whp1_ref, kk)
    h1_ref[...] = ch1
    c1_ref[...] = cc1

    out_seq_ref[0] = ch1                                             # (Chid1, N)
    out_c_ref[...] = cc1


# ----------------------------------------------------------------------------
# Static geometry helpers (computed once in the wrapper, constant-folded).
# ----------------------------------------------------------------------------
def _pool_matrix(B, H, W):
    """P[p, q] = 1/HW if p and q belong to the same batch block."""
    N = B * H * W
    b_idx = jnp.arange(N) // (H * W)
    return (b_idx[:, None] == b_idx[None, :]).astype(jnp.float32) / float(H * W)


def _shift_matrices(B, H, W, k):
    """S[tap, p, q] = 1 iff shifted[q] should read source lane p (zero-padded
    kxk window, tap = ky*k + kx), i.e. depthwise shift = v @ S[tap]."""
    pad = (k - 1) // 2
    HW = H * W
    N = B * HW
    q = jnp.arange(N)
    hh = (q % HW) // W
    ww = q % W
    p_idx = jnp.arange(N)
    mats = []
    for ky in range(k):
        for kx in range(k):
            dy, dx = ky - pad, kx - pad
            s = dy * W + dx
            valid = ((hh + dy >= 0) & (hh + dy < H)
                     & (ww + dx >= 0) & (ww + dx < W))
            src = q + s
            mat = (p_idx[:, None] == src[None, :]) & valid[None, :]
            mats.append(mat.astype(jnp.float32))
    return jnp.stack(mats)                                           # (k*k, N, N)


def _repack_cell_params(p, cin, chid, k):
    """PyTorch-convention conv weights -> kernel-layout matrices (done once)."""
    pad = (k - 1) // 2
    kk = k * k
    wgx = jnp.concatenate([p['Wxi_w'][:, :, pad, pad],
                           p['Wxf_w'][:, :, pad, pad],
                           p['Wxo_w'][:, :, pad, pad]], axis=0)       # (3*Chid, Cin)
    wgh = jnp.concatenate([p['Whi_w'][:, :, pad, pad],
                           p['Whf_w'][:, :, pad, pad],
                           p['Who_w'][:, :, pad, pad]], axis=0)       # (3*Chid, Chid)
    bg = jnp.concatenate([p['Wxi_b'], p['Wxf_b'], p['Wxo_b']])[:, None]  # (3*Chid, 1)
    wxd = p['Wxc_d_w'][:, 0].reshape(cin, kk)                         # (Cin, k*k)
    bxd = p['Wxc_d_b'][:, None]                                       # (Cin, 1)
    whd = p['Whc_d_w'][:, 0].reshape(chid, kk)                        # (Chid, k*k)
    wxp = p['Wxc_p_w'][:, :, 0, 0]                                    # (Chid, Cin)
    whp = p['Whc_p_w'][:, :, 0, 0]                                    # (Chid, Chid)
    return (wgx, wgh, bg, wxd, bxd, whd, wxp, whp)


# ----------------------------------------------------------------------------
# AttenConvLSTM forward (AttenMethod='a'): single fused pallas_call
# ----------------------------------------------------------------------------
def atten_conv_lstm_forward(inp, params, hidden_channels, kernel_size, step):
    """inp: (B, Cin, T, H, W) float32 (PyTorch NCTHW)."""
    B, Cin, T, H, W = inp.shape
    assert step <= T
    chid0, chid1 = hidden_channels
    k = kernel_size
    kk = k * k
    N = B * H * W                                        # lane axis (128 in test)

    # Layout plumbing (once, at the module boundary): NCTHW -> (T, C, B*H*W).
    x_seq = jnp.transpose(inp[:, :, :step], (2, 1, 0, 3, 4)).reshape(step, Cin, N)

    P = _pool_matrix(B, H, W)
    S = _shift_matrices(B, H, W, k)
    l0 = _repack_cell_params(params[0], Cin, chid0, k)
    l1 = _repack_cell_params(params[1], chid0, chid1, k)

    args = (x_seq, P, S) + l0 + l1

    def full_spec(a):
        nd = a.ndim
        return pl.BlockSpec(a.shape, lambda t, nd=nd: (0,) * nd)

    in_specs = [pl.BlockSpec((1, Cin, N), lambda t: (t, 0, 0))]
    in_specs += [full_spec(a) for a in args[1:]]

    out_specs = (pl.BlockSpec((1, chid1, N), lambda t: (t, 0, 0)),
                 pl.BlockSpec((chid1, N), lambda t: (0, 0)))

    kern = functools.partial(fused_lstm_kernel, kk=kk)

    out_seq, out_c = pl.pallas_call(
        kern,
        out_shape=(jax.ShapeDtypeStruct((step, chid1, N), jnp.float32),
                   jax.ShapeDtypeStruct((chid1, N), jnp.float32)),
        grid=(step,),
        in_specs=in_specs,
        out_specs=out_specs,
        scratch_shapes=[pltpu.VMEM((chid0, N), jnp.float32),   # h0
                        pltpu.VMEM((chid0, N), jnp.float32),   # c0
                        pltpu.VMEM((chid1, N), jnp.float32),   # h1
                        pltpu.VMEM((chid1, N), jnp.float32)],  # c1
        compiler_params=pltpu.CompilerParams(
            dimension_semantics=("arbitrary",)),               # time recurrence
    )(*args)

    # Back to PyTorch convention.
    outputs = jnp.transpose(out_seq.reshape(step, chid1, B, H, W),
                            (2, 1, 0, 3, 4))                   # (B, Chid, T, H, W)
    h_last = outputs[:, :, -1]
    c_last = jnp.transpose(out_c.reshape(chid1, B, H, W), (1, 0, 2, 3))
    return outputs, (h_last, c_last)


# ----------------------------------------------------------------------------
# Pure-JAX reference (lax.conv, NCHW) for correctness check
# ----------------------------------------------------------------------------
def conv2d_ref(x, w, b=None, padding=0, groups=1):
    out = jax.lax.conv_general_dilated(
        x, w, window_strides=(1, 1),
        padding=[(padding, padding), (padding, padding)],
        dimension_numbers=('NCHW', 'OIHW', 'NCHW'),
        feature_group_count=groups)
    if b is not None:
        out = out + b[None, :, None, None]
    return out


def gate_cell_ref(x, h, c, p, k, cin, chid):
    pad = (k - 1) // 2
    x_g = jnp.mean(x, axis=(2, 3), keepdims=True)
    h_g = jnp.mean(h, axis=(2, 3), keepdims=True)
    ci = jax.nn.sigmoid(conv2d_ref(x_g, p['Wxi_w'], p['Wxi_b'], pad)
                        + conv2d_ref(h_g, p['Whi_w'], None, pad))
    cf = jax.nn.sigmoid(conv2d_ref(x_g, p['Wxf_w'], p['Wxf_b'], pad)
                        + conv2d_ref(h_g, p['Whf_w'], None, pad))
    co = jax.nn.sigmoid(conv2d_ref(x_g, p['Wxo_w'], p['Wxo_b'], pad)
                        + conv2d_ref(h_g, p['Who_w'], None, pad))
    gx = conv2d_ref(conv2d_ref(x, p['Wxc_d_w'], p['Wxc_d_b'], pad, groups=cin),
                    p['Wxc_p_w'], None, 0)
    gh = conv2d_ref(conv2d_ref(h, p['Whc_d_w'], None, pad, groups=chid),
                    p['Whc_p_w'], None, 0)
    G = jnp.tanh(gx + gh)
    cc = cf * c + ci * G
    ch = co * jnp.tanh(cc)
    return ch, cc


def atten_conv_lstm_ref(inp, params, hidden_channels, kernel_size, step):
    B, Cin, T, H, W = inp.shape
    num_layers = len(hidden_channels)
    cins = [Cin] + list(hidden_channels)
    states = [None] * num_layers
    outs = []
    x = None
    new_c = None
    for t in range(step):
        x = inp[:, :, t]
        for i in range(num_layers):
            if t == 0:
                h = jnp.zeros((B, hidden_channels[i], H, W), jnp.float32)
                c = jnp.zeros_like(h)
            else:
                h, c = states[i]
            x, new_c = gate_cell_ref(x, h, c, params[i], kernel_size,
                                     cins[i], hidden_channels[i])
            states[i] = (x, new_c)
        outs.append(x)
    return jnp.stack(outs, axis=2), (x, new_c)


# ----------------------------------------------------------------------------
# Deterministic parameter init (xavier_normal_ on conv weights, small biases)
# ----------------------------------------------------------------------------
def xavier_normal(key, shape):
    fan_in = shape[1] * shape[2] * shape[3]
    fan_out = shape[0] * shape[2] * shape[3]
    std = (2.0 / (fan_in + fan_out)) ** 0.5
    return std * jax.random.normal(key, shape, jnp.float32)


def init_gate_cell(key, cin, chid, k):
    ks = jax.random.split(key, 14)
    return {
        'Wxi_w': xavier_normal(ks[0], (chid, cin, k, k)),
        'Wxi_b': 0.1 * jax.random.normal(ks[1], (chid,), jnp.float32),
        'Whi_w': xavier_normal(ks[2], (chid, chid, k, k)),
        'Wxf_w': xavier_normal(ks[3], (chid, cin, k, k)),
        'Wxf_b': 0.1 * jax.random.normal(ks[4], (chid,), jnp.float32),
        'Whf_w': xavier_normal(ks[5], (chid, chid, k, k)),
        'Wxc_d_w': xavier_normal(ks[6], (cin, 1, k, k)),
        'Wxc_d_b': 0.1 * jax.random.normal(ks[7], (cin,), jnp.float32),
        'Wxc_p_w': xavier_normal(ks[8], (chid, cin, 1, 1)),
        'Whc_d_w': xavier_normal(ks[9], (chid, 1, k, k)),
        'Whc_p_w': xavier_normal(ks[10], (chid, chid, 1, 1)),
        'Wxo_w': xavier_normal(ks[11], (chid, cin, k, k)),
        'Wxo_b': 0.1 * jax.random.normal(ks[12], (chid,), jnp.float32),
        'Who_w': xavier_normal(ks[13], (chid, chid, k, k)),
    }


if __name__ == "__main__":
    key = jax.random.PRNGKey(0)
    # step=3, expand_x=expand_y=8; B*H*W = 128 => fully lane-dense layout.
    B, Cin, T, H, W = 2, 4, 3, 8, 8
    hidden = [8, 8]
    k = 3

    kx, kp0, kp1 = jax.random.split(key, 3)
    x = jax.random.normal(kx, (B, Cin, T, H, W), jnp.float32)
    params = [init_gate_cell(kp0, Cin, hidden[0], k),
              init_gate_cell(kp1, hidden[0], hidden[1], k)]

    fwd = jax.jit(lambda inp, ps: atten_conv_lstm_forward(inp, ps, hidden, k, T))
    outputs, (h_last, c_last) = fwd(x, params)
    jax.block_until_ready(outputs)

    out_ref, (h_ref, c_ref) = atten_conv_lstm_ref(x, params, hidden, k, T)
    err_o = float(jnp.max(jnp.abs(outputs - out_ref)))
    err_h = float(jnp.max(jnp.abs(h_last - h_ref)))
    err_c = float(jnp.max(jnp.abs(c_last - c_ref)))
    assert err_o < 1e-3 and err_h < 1e-3 and err_c < 1e-3, (err_o, err_h, err_c)

    print("KERNEL_OK")
</pallas_src>

<mosaic_0001>
module attributes {stable_mosaic.version = 11 : i64} {
  func.func @fused_lstm_kernel(%arg0: i32, %arg1: memref<1x4x128xf32, #tpu.memory_space<vmem>>, %arg2: memref<128x128xf32, #tpu.memory_space<vmem>>, %arg3: memref<9x128x128xf32, #tpu.memory_space<vmem>>, %arg4: memref<24x4xf32, #tpu.memory_space<vmem>>, %arg5: memref<24x8xf32, #tpu.memory_space<vmem>>, %arg6: memref<24x1xf32, #tpu.memory_space<vmem>>, %arg7: memref<4x9xf32, #tpu.memory_space<vmem>>, %arg8: memref<4x1xf32, #tpu.memory_space<vmem>>, %arg9: memref<8x9xf32, #tpu.memory_space<vmem>>, %arg10: memref<8x4xf32, #tpu.memory_space<vmem>>, %arg11: memref<8x8xf32, #tpu.memory_space<vmem>>, %arg12: memref<24x8xf32, #tpu.memory_space<vmem>>, %arg13: memref<24x8xf32, #tpu.memory_space<vmem>>, %arg14: memref<24x1xf32, #tpu.memory_space<vmem>>, %arg15: memref<8x9xf32, #tpu.memory_space<vmem>>, %arg16: memref<8x1xf32, #tpu.memory_space<vmem>>, %arg17: memref<8x9xf32, #tpu.memory_space<vmem>>, %arg18: memref<8x8xf32, #tpu.memory_space<vmem>>, %arg19: memref<8x8xf32, #tpu.memory_space<vmem>>, %arg20: memref<1x8x128xf32, #tpu.memory_space<vmem>>, %arg21: memref<8x128xf32, #tpu.memory_space<vmem>>, %arg22: memref<8x128xf32, #tpu.memory_space<vmem>>, %arg23: memref<8x128xf32, #tpu.memory_space<vmem>>, %arg24: memref<8x128xf32, #tpu.memory_space<vmem>>, %arg25: memref<8x128xf32, #tpu.memory_space<vmem>>) attributes {dimension_semantics = [#tpu.dimension_semantics<arbitrary>], iteration_bounds = array<i64: 3>, scalar_prefetch = 0 : i64, scratch_operands = 4 : i64, tpu.core_type = #tpu.core_type<tc>, window_params = [{transform_indices = @transform_0, window_bounds = array<i64: 1, 4, 128>}, {pipeline_mode = #tpu.pipeline_mode<synchronous>, transform_indices = @transform_1, window_bounds = array<i64: 128, 128>}, {pipeline_mode = #tpu.pipeline_mode<synchronous>, transform_indices = @transform_2, window_bounds = array<i64: 9, 128, 128>}, {pipeline_mode = #tpu.pipeline_mode<synchronous>, transform_indices = @transform_3, window_bounds = array<i64: 24, 4>}, {pipeline_mode = #tpu.pipeline_mode<synchronous>, transform_indices = @transform_4, window_bounds = array<i64: 24, 8>}, {pipeline_mode = #tpu.pipeline_mode<synchronous>, transform_indices = @transform_5, window_bounds = array<i64: 24, 1>}, {pipeline_mode = #tpu.pipeline_mode<synchronous>, transform_indices = @transform_6, window_bounds = array<i64: 4, 9>}, {pipeline_mode = #tpu.pipeline_mode<synchronous>, transform_indices = @transform_7, window_bounds = array<i64: 4, 1>}, {pipeline_mode = #tpu.pipeline_mode<synchronous>, transform_indices = @transform_8, window_bounds = array<i64: 8, 9>}, {pipeline_mode = #tpu.pipeline_mode<synchronous>, transform_indices = @transform_9, window_bounds = array<i64: 8, 4>}, {pipeline_mode = #tpu.pipeline_mode<synchronous>, transform_indices = @transform_10, window_bounds = array<i64: 8, 8>}, {pipeline_mode = #tpu.pipeline_mode<synchronous>, transform_indices = @transform_11, window_bounds = array<i64: 24, 8>}, {pipeline_mode = #tpu.pipeline_mode<synchronous>, transform_indices = @transform_12, window_bounds = array<i64: 24, 8>}, {pipeline_mode = #tpu.pipeline_mode<synchronous>, transform_indices = @transform_13, window_bounds = array<i64: 24, 1>}, {pipeline_mode = #tpu.pipeline_mode<synchronous>, transform_indices = @transform_14, window_bounds = array<i64: 8, 9>}, {pipeline_mode = #tpu.pipeline_mode<synchronous>, transform_indices = @transform_15, window_bounds = array<i64: 8, 1>}, {pipeline_mode = #tpu.pipeline_mode<synchronous>, transform_indices = @transform_16, window_bounds = array<i64: 8, 9>}, {pipeline_mode = #tpu.pipeline_mode<synchronous>, transform_indices = @transform_17, window_bounds = array<i64: 8, 8>}, {pipeline_mode = #tpu.pipeline_mode<synchronous>, transform_indices = @transform_18, window_bounds = array<i64: 8, 8>}, {transform_indices = @transform_19, window_bounds = array<i64: 1, 8, 128>}, {pipeline_mode = #tpu.pipeline_mode<synchronous>, transform_indices = @transform_20, window_bounds = array<i64: 8, 128>}]} {
    %c0_i32 = arith.constant 0 : i32
    %0 = arith.cmpi eq, %arg0, %c0_i32 : i32
    %1 = arith.extui %0 : i1 to i32
    %c0_i32_0 = arith.constant 0 : i32
    %2 = arith.cmpi ne, %1, %c0_i32_0 : i32
    scf.if %2 {
      %cst_213 = arith.constant 0.000000e+00 : f32
      %343 = vector.broadcast %cst_213 : f32 to vector<8x128xf32>
      %c0_214 = arith.constant 0 : index
      %c0_215 = arith.constant 0 : index
      %344 = vector.load %arg22[%c0_214, %c0_215] : memref<8x128xf32, #tpu.memory_space<vmem>>, vector<8x128xf32>
      tpu.vector_store %arg22[%c0_214, %c0_215], %343 {strides = array<i32>} : memref<8x128xf32, #tpu.memory_space<vmem>>, vector<8x128xf32>,
      %cst_216 = arith.constant 0.000000e+00 : f32
      %345 = vector.broadcast %cst_216 : f32 to vector<8x128xf32>
      %c0_217 = arith.constant 0 : index
      %c0_218 = arith.constant 0 : index
      %346 = vector.load %arg23[%c0_217, %c0_218] : memref<8x128xf32, #tpu.memory_space<vmem>>, vector<8x128xf32>
      tpu.vector_store %arg23[%c0_217, %c0_218], %345 {strides = array<i32>} : memref<8x128xf32, #tpu.memory_space<vmem>>, vector<8x128xf32>,
      %cst_219 = arith.constant 0.000000e+00 : f32
      %347 = vector.broadcast %cst_219 : f32 to vector<8x128xf32>
      %c0_220 = arith.constant 0 : index
      %c0_221 = arith.constant 0 : index
      %348 = vector.load %arg24[%c0_220, %c0_221] : memref<8x128xf32, #tpu.memory_space<vmem>>, vector<8x128xf32>
      tpu.vector_store %arg24[%c0_220, %c0_221], %347 {strides = array<i32>} : memref<8x128xf32, #tpu.memory_space<vmem>>, vector<8x128xf32>,
      %cst_222 = arith.constant 0.000000e+00 : f32
      %349 = vector.broadcast %cst_222 : f32 to vector<8x128xf32>
      %c0_223 = arith.constant 0 : index
      %c0_224 = arith.constant 0 : index
      %350 = vector.load %arg25[%c0_223, %c0_224] : memref<8x128xf32, #tpu.memory_space<vmem>>, vector<8x128xf32>
      tpu.vector_store %arg25[%c0_223, %c0_224], %349 {strides = array<i32>} : memref<8x128xf32, #tpu.memory_space<vmem>>, vector<8x128xf32>,
    } else {
    }
    %c0 = arith.constant 0 : index
    %c0_1 = arith.constant 0 : index
    %c0_2 = arith.constant 0 : index
    %3 = vector.load %arg1[%c0, %c0_1, %c0_2] : memref<1x4x128xf32, #tpu.memory_space<vmem>>, vector<1x4x128xf32>
    %4 = vector.shape_cast %3 : vector<1x4x128xf32> to vector<4x128xf32>
    %c0_3 = arith.constant 0 : index
    %c0_4 = arith.constant 0 : index
    %5 = vector.load %arg22[%c0_3, %c0_4] : memref<8x128xf32, #tpu.memory_space<vmem>>, vector<8x128xf32>
    %c0_5 = arith.constant 0 : index
    %c0_6 = arith.constant 0 : index
    %6 = vector.load %arg23[%c0_5, %c0_6] : memref<8x128xf32, #tpu.memory_space<vmem>>, vector<8x128xf32>
    %c0_7 = arith.constant 0 : index
    %c0_8 = arith.constant 0 : index
    %7 = vector.load %arg2[%c0_7, %c0_8] : memref<128x128xf32, #tpu.memory_space<vmem>>, vector<128x128xf32>
    %cst = arith.constant dense<0.000000e+00> : vector<4x128xf32>
    %8 = tpu.matmul %4, %7, %cst {dimension_numbers = #tpu.dot_dimension_numbers<[1], [0], [0], [1], [0, 0, 1, 1], [], []>} : vector<4x128xf32>, vector<128x128xf32>, vector<4x128xf32> -> vector<4x128xf32>
    %cst_9 = arith.constant dense<0.000000e+00> : vector<8x128xf32>
    %9 = tpu.matmul %5, %7, %cst_9 {dimension_numbers = #tpu.dot_dimension_numbers<[1], [0], [0], [1], [0, 0, 1, 1], [], []>} : vector<8x128xf32>, vector<128x128xf32>, vector<8x128xf32> -> vector<8x128xf32>
    %c0_10 = arith.constant 0 : index
    %c0_11 = arith.constant 0 : index
    %10 = vector.load %arg4[%c0_10, %c0_11] : memref<24x4xf32, #tpu.memory_space<vmem>>, vector<24x4xf32>
    %cst_12 = arith.constant dense<0.000000e+00> : vector<24x128xf32>
    %11 = tpu.matmul %10, %8, %cst_12 {dimension_numbers = #tpu.dot_dimension_numbers<[1], [0], [0], [1], [0, 0, 1, 1], [], []>} : vector<24x4xf32>, vector<4x128xf32>, vector<24x128xf32> -> vector<24x128xf32>
    %c0_13 = arith.constant 0 : index
    %c0_14 = arith.constant 0 : index
    %12 = vector.load %arg5[%c0_13, %c0_14] : memref<24x8xf32, #tpu.memory_space<vmem>>, vector<24x8xf32>
    %cst_15 = arith.constant dense<0.000000e+00> : vector<24x128xf32>
    %13 = tpu.matmul %12, %9, %cst_15 {dimension_numbers = #tpu.dot_dimension_numbers<[1], [0], [0], [1], [0, 0, 1, 1], [], []>} : vector<24x8xf32>, vector<8x128xf32>, vector<24x128xf32> -> vector<24x128xf32>
    %14 = arith.addf %11, %13 : vector<24x128xf32>
    %c0_16 = arith.constant 0 : index
    %c0_17 = arith.constant 0 : index
    %15 = vector.load %arg6[%c0_16, %c0_17] : memref<24x1xf32, #tpu.memory_space<vmem>>, vector<24x1xf32>
    %16 = vector.broadcast %15 : vector<24x1xf32> to vector<24x128xf32>
    %17 = arith.addf %14, %16 : vector<24x128xf32>
    %18 = arith.negf %17 : vector<24x128xf32>
    %19 = math.exp %18 : vector<24x128xf32>
    %cst_18 = arith.constant 1.000000e+00 : f32
    %20 = vector.broadcast %cst_18 : f32 to vector<24x128xf32>
    %21 = arith.addf %20, %19 : vector<24x128xf32>
    %22 = arith.divf %20, %21 : vector<24x128xf32>
    %23 = vector.extract_strided_slice %22 {offsets = [0, 0], sizes = [8, 128], strides = [1, 1]} : vector<24x128xf32> to vector<8x128xf32>
    %24 = vector.extract_strided_slice %22 {offsets = [8, 0], sizes = [8, 128], strides = [1, 1]} : vector<24x128xf32> to vector<8x128xf32>
    %25 = vector.extract_strided_slice %22 {offsets = [16, 0], sizes = [8, 128], strides = [1, 1]} : vector<24x128xf32> to vector<8x128xf32>
    %c0_19 = arith.constant 0 : index
    %c0_20 = arith.constant 0 : index
    %26 = vector.load %arg7[%c0_19, %c0_20] : memref<4x9xf32, #tpu.memory_space<vmem>>, vector<4x9xf32>
    %cst_21 = arith.constant 0.000000e+00 : f32
    %27 = vector.broadcast %cst_21 : f32 to vector<4x128xf32>
    %c0_22 = arith.constant 0 : index
    %c0_23 = arith.constant 0 : index
    %c0_24 = arith.constant 0 : index
    %28 = vector.load %arg3[%c0_22, %c0_23, %c0_24] : memref<9x128x128xf32, #tpu.memory_space<vmem>>, vector<1x128x128xf32>
    %29 = vector.shape_cast %28 : vector<1x128x128xf32> to vector<128x128xf32>
    %cst_25 = arith.constant dense<0.000000e+00> : vector<4x128xf32>
    %30 = tpu.matmul %4, %29, %cst_25 {dimension_numbers = #tpu.dot_dimension_numbers<[1], [0], [0], [1], [0, 0, 1, 1], [], []>} : vector<4x128xf32>, vector<128x128xf32>, vector<4x128xf32> -> vector<4x128xf32>
    %31 = vector.extract_strided_slice %26 {offsets = [0, 0], sizes = [4, 1], strides = [1, 1]} : vector<4x9xf32> to vector<4x1xf32>
    %32 = vector.broadcast %31 : vector<4x1xf32> to vector<4x128xf32>
    %33 = arith.mulf %30, %32 : vector<4x128xf32>
    %34 = arith.addf %27, %33 : vector<4x128xf32>
    %c1 = arith.constant 1 : index
    %c0_26 = arith.constant 0 : index
    %c0_27 = arith.constant 0 : index
    %35 = vector.load %arg3[%c1, %c0_26, %c0_27] : memref<9x128x128xf32, #tpu.memory_space<vmem>>, vector<1x128x128xf32>
    %36 = vector.shape_cast %35 : vector<1x128x128xf32> to vector<128x128xf32>
    %cst_28 = arith.constant dense<0.000000e+00> : vector<4x128xf32>
    %37 = tpu.matmul %4, %36, %cst_28 {dimension_numbers = #tpu.dot_dimension_numbers<[1], [0], [0], [1], [0, 0, 1, 1], [], []>} : vector<4x128xf32>, vector<128x128xf32>, vector<4x128xf32> -> vector<4x128xf32>
    %38 = vector.extract_strided_slice %26 {offsets = [0, 1], sizes = [4, 1], strides = [1, 1]} : vector<4x9xf32> to vector<4x1xf32>
    %39 = vector.broadcast %38 : vector<4x1xf32> to vector<4x128xf32>
    %40 = arith.mulf %37, %39 : vector<4x128xf32>
    %41 = arith.addf %34, %40 : vector<4x128xf32>
    %c2 = arith.constant 2 : index
    %c0_29 = arith.constant 0 : index
    %c0_30 = arith.constant 0 : index
    %42 = vector.load %arg3[%c2, %c0_29, %c0_30] : memref<9x128x128xf32, #tpu.memory_space<vmem>>, vector<1x128x128xf32>
    %43 = vector.shape_cast %42 : vector<1x128x128xf32> to vector<128x128xf32>
    %cst_31 = arith.constant dense<0.000000e+00> : vector<4x128xf32>
    %44 = tpu.matmul %4, %43, %cst_31 {dimension_numbers = #tpu.dot_dimension_numbers<[1], [0], [0], [1], [0, 0, 1, 1], [], []>} : vector<4x128xf32>, vector<128x128xf32>, vector<4x128xf32> -> vector<4x128xf32>
    %45 = vector.extract_strided_slice %26 {offsets = [0, 2], sizes = [4, 1], strides = [1, 1]} : vector<4x9xf32> to vector<4x1xf32>
    %46 = vector.broadcast %45 : vector<4x1xf32> to vector<4x128xf32>
    %47 = arith.mulf %44, %46 : vector<4x128xf32>
    %48 = arith.addf %41, %47 : vector<4x128xf32>
    %c3 = arith.constant 3 : index
    %c0_32 = arith.constant 0 : index
    %c0_33 = arith.constant 0 : index
    %49 = vector.load %arg3[%c3, %c0_32, %c0_33] : memref<9x128x128xf32, #tpu.memory_space<vmem>>, vector<1x128x128xf32>
    %50 = vector.shape_cast %49 : vector<1x128x128xf32> to vector<128x128xf32>
    %cst_34 = arith.constant dense<0.000000e+00> : vector<4x128xf32>
    %51 = tpu.matmul %4, %50, %cst_34 {dimension_numbers = #tpu.dot_dimension_numbers<[1], [0], [0], [1], [0, 0, 1, 1], [], []>} : vector<4x128xf32>, vector<128x128xf32>, vector<4x128xf32> -> vector<4x128xf32>
    %52 = vector.extract_strided_slice %26 {offsets = [0, 3], sizes = [4, 1], strides = [1, 1]} : vector<4x9xf32> to vector<4x1xf32>
    %53 = vector.broadcast %52 : vector<4x1xf32> to vector<4x128xf32>
    %54 = arith.mulf %51, %53 : vector<4x128xf32>
    %55 = arith.addf %48, %54 : vector<4x128xf32>
    %c4 = arith.constant 4 : index
    %c0_35 = arith.constant 0 : index
    %c0_36 = arith.constant 0 : index
    %56 = vector.load %arg3[%c4, %c0_35, %c0_36] : memref<9x128x128xf32, #tpu.memory_space<vmem>>, vector<1x128x128xf32>
    %57 = vector.shape_cast %56 : vector<1x128x128xf32> to vector<128x128xf32>
    %cst_37 = arith.constant dense<0.000000e+00> : vector<4x128xf32>
    %58 = tpu.matmul %4, %57, %cst_37 {dimension_numbers = #tpu.dot_dimension_numbers<[1], [0], [0], [1], [0, 0, 1, 1], [], []>} : vector<4x128xf32>, vector<128x128xf32>, vector<4x128xf32> -> vector<4x128xf32>
    %59 = vector.extract_strided_slice %26 {offsets = [0, 4], sizes = [4, 1], strides = [1, 1]} : vector<4x9xf32> to vector<4x1xf32>
    %60 = vector.broadcast %59 : vector<4x1xf32> to vector<4x128xf32>
    %61 = arith.mulf %58, %60 : vector<4x128xf32>
    %62 = arith.addf %55, %61 : vector<4x128xf32>
    %c5 = arith.constant 5 : index
    %c0_38 = arith.constant 0 : index
    %c0_39 = arith.constant 0 : index
    %63 = vector.load %arg3[%c5, %c0_38, %c0_39] : memref<9x128x128xf32, #tpu.memory_space<vmem>>, vector<1x128x128xf32>
    %64 = vector.shape_cast %63 : vector<1x128x128xf32> to vector<128x128xf32>
    %cst_40 = arith.constant dense<0.000000e+00> : vector<4x128xf32>
    %65 = tpu.matmul %4, %64, %cst_40 {dimension_numbers = #tpu.dot_dimension_numbers<[1], [0], [0], [1], [0, 0, 1, 1], [], []>} : vector<4x128xf32>, vector<128x128xf32>, vector<4x128xf32> -> vector<4x128xf32>
    %66 = vector.extract_strided_slice %26 {offsets = [0, 5], sizes = [4, 1], strides = [1, 1]} : vector<4x9xf32> to vector<4x1xf32>
    %67 = vector.broadcast %66 : vector<4x1xf32> to vector<4x128xf32>
    %68 = arith.mulf %65, %67 : vector<4x128xf32>
    %69 = arith.addf %62, %68 : vector<4x128xf32>
    %c6 = arith.constant 6 : index
    %c0_41 = arith.constant 0 : index
    %c0_42 = arith.constant 0 : index
    %70 = vector.load %arg3[%c6, %c0_41, %c0_42] : memref<9x128x128xf32, #tpu.memory_space<vmem>>, vector<1x128x128xf32>
    %71 = vector.shape_cast %70 : vector<1x128x128xf32> to vector<128x128xf32>
    %cst_43 = arith.constant dense<0.000000e+00> : vector<4x128xf32>
    %72 = tpu.matmul %4, %71, %cst_43 {dimension_numbers = #tpu.dot_dimension_numbers<[1], [0], [0], [1], [0, 0, 1, 1], [], []>} : vector<4x128xf32>, vector<128x128xf32>, vector<4x128xf32> -> vector<4x128xf32>
    %73 = vector.extract_strided_slice %26 {offsets = [0, 6], sizes = [4, 1], strides = [1, 1]} : vector<4x9xf32> to vector<4x1xf32>
    %74 = vector.broadcast %73 : vector<4x1xf32> to vector<4x128xf32>
    %75 = arith.mulf %72, %74 : vector<4x128xf32>
    %76 = arith.addf %69, %75 : vector<4x128xf32>
    %c7 = arith.constant 7 : index
    %c0_44 = arith.constant 0 : index
    %c0_45 = arith.constant 0 : index
    %77 = vector.load %arg3[%c7, %c0_44, %c0_45] : memref<9x128x128xf32, #tpu.memory_space<vmem>>, vector<1x128x128xf32>
    %78 = vector.shape_cast %77 : vector<1x128x128xf32> to vector<128x128xf32>
    %cst_46 = arith.constant dense<0.000000e+00> : vector<4x128xf32>
    %79 = tpu.matmul %4, %78, %cst_46 {dimension_numbers = #tpu.dot_dimension_numbers<[1], [0], [0], [1], [0, 0, 1, 1], [], []>} : vector<4x128xf32>, vector<128x128xf32>, vector<4x128xf32> -> vector<4x128xf32>
    %80 = vector.extract_strided_slice %26 {offsets = [0, 7], sizes = [4, 1], strides = [1, 1]} : vector<4x9xf32> to vector<4x1xf32>
    %81 = vector.broadcast %80 : vector<4x1xf32> to vector<4x128xf32>
    %82 = arith.mulf %79, %81 : vector<4x128xf32>
    %83 = arith.addf %76, %82 : vector<4x128xf32>
    %c8 = arith.constant 8 : index
    %c0_47 = arith.constant 0 : index
    %c0_48 = arith.constant 0 : index
    %84 = vector.load %arg3[%c8, %c0_47, %c0_48] : memref<9x128x128xf32, #tpu.memory_space<vmem>>, vector<1x128x128xf32>
    %85 = vector.shape_cast %84 : vector<1x128x128xf32> to vector<128x128xf32>
    %cst_49 = arith.constant dense<0.000000e+00> : vector<4x128xf32>
    %86 = tpu.matmul %4, %85, %cst_49 {dimension_numbers = #tpu.dot_dimension_numbers<[1], [0], [0], [1], [0, 0, 1, 1], [], []>} : vector<4x128xf32>, vector<128x128xf32>, vector<4x128xf32> -> vector<4x128xf32>
    %87 = vector.extract_strided_slice %26 {offsets = [0, 8], sizes = [4, 1], strides = [1, 1]} : vector<4x9xf32> to vector<4x1xf32>
    %88 = vector.broadcast %87 : vector<4x1xf32> to vector<4x128xf32>
    %89 = arith.mulf %86, %88 : vector<4x128xf32>
    %90 = arith.addf %83, %89 : vector<4x128xf32>
    %c0_50 = arith.constant 0 : index
    %c0_51 = arith.constant 0 : index
    %91 = vector.load %arg8[%c0_50, %c0_51] : memref<4x1xf32, #tpu.memory_space<vmem>>, vector<4x1xf32>
    %92 = vector.broadcast %91 : vector<4x1xf32> to vector<4x128xf32>
    %93 = arith.addf %90, %92 : vector<4x128xf32>
    %c0_52 = arith.constant 0 : index
    %c0_53 = arith.constant 0 : index
    %94 = vector.load %arg9[%c0_52, %c0_53] : memref<8x9xf32, #tpu.memory_space<vmem>>, vector<8x9xf32>
    %cst_54 = arith.constant 0.000000e+00 : f32
    %95 = vector.broadcast %cst_54 : f32 to vector<8x128xf32>
    %c0_55 = arith.constant 0 : index
    %c0_56 = arith.constant 0 : index
    %c0_57 = arith.constant 0 : index
    %96 = vector.load %arg3[%c0_55, %c0_56, %c0_57] : memref<9x128x128xf32, #tpu.memory_space<vmem>>, vector<1x128x128xf32>
    %97 = vector.shape_cast %96 : vector<1x128x128xf32> to vector<128x128xf32>
    %cst_58 = arith.constant dense<0.000000e+00> : vector<8x128xf32>
    %98 = tpu.matmul %5, %97, %cst_58 {dimension_numbers = #tpu.dot_dimension_numbers<[1], [0], [0], [1], [0, 0, 1, 1], [], []>} : vector<8x128xf32>, vector<128x128xf32>, vector<8x128xf32> -> vector<8x128xf32>
    %99 = vector.extract_strided_slice %94 {offsets = [0, 0], sizes = [8, 1], strides = [1, 1]} : vector<8x9xf32> to vector<8x1xf32>
    %100 = vector.broadcast %99 : vector<8x1xf32> to vector<8x128xf32>
    %101 = arith.mulf %98, %100 : vector<8x128xf32>
    %102 = arith.addf %95, %101 : vector<8x128xf32>
    %c1_59 = arith.constant 1 : index
    %c0_60 = arith.constant 0 : index
    %c0_61 = arith.constant 0 : index
    %103 = vector.load %arg3[%c1_59, %c0_60, %c0_61] : memref<9x128x128xf32, #tpu.memory_space<vmem>>, vector<1x128x128xf32>
    %104 = vector.shape_cast %103 : vector<1x128x128xf32> to vector<128x128xf32>
    %cst_62 = arith.constant dense<0.000000e+00> : vector<8x128xf32>
    %105 = tpu.matmul %5, %104, %cst_62 {dimension_numbers = #tpu.dot_dimension_numbers<[1], [0], [0], [1], [0, 0, 1, 1], [], []>} : vector<8x128xf32>, vector<128x128xf32>, vector<8x128xf32> -> vector<8x128xf32>
    %106 = vector.extract_strided_slice %94 {offsets = [0, 1], sizes = [8, 1], strides = [1, 1]} : vector<8x9xf32> to vector<8x1xf32>
    %107 = vector.broadcast %106 : vector<8x1xf32> to vector<8x128xf32>
    %108 = arith.mulf %105, %107 : vector<8x128xf32>
    %109 = arith.addf %102, %108 : vector<8x128xf32>
    %c2_63 = arith.constant 2 : index
    %c0_64 = arith.constant 0 : index
    %c0_65 = arith.constant 0 : index
    %110 = vector.load %arg3[%c2_63, %c0_64, %c0_65] : memref<9x128x128xf32, #tpu.memory_space<vmem>>, vector<1x128x128xf32>
    %111 = vector.shape_cast %110 : vector<1x128x128xf32> to vector<128x128xf32>
    %cst_66 = arith.constant dense<0.000000e+00> : vector<8x128xf32>
    %112 = tpu.matmul %5, %111, %cst_66 {dimension_numbers = #tpu.dot_dimension_numbers<[1], [0], [0], [1], [0, 0, 1, 1], [], []>} : vector<8x128xf32>, vector<128x128xf32>, vector<8x128xf32> -> vector<8x128xf32>
    %113 = vector.extract_strided_slice %94 {offsets = [0, 2], sizes = [8, 1], strides = [1, 1]} : vector<8x9xf32> to vector<8x1xf32>
    %114 = vector.broadcast %113 : vector<8x1xf32> to vector<8x128xf32>
    %115 = arith.mulf %112, %114 : vector<8x128xf32>
    %116 = arith.addf %109, %115 : vector<8x128xf32>
    %c3_67 = arith.constant 3 : index
    %c0_68 = arith.constant 0 : index
    %c0_69 = arith.constant 0 : index
    %117 = vector.load %arg3[%c3_67, %c0_68, %c0_69] : memref<9x128x128xf32, #tpu.memory_space<vmem>>, vector<1x128x128xf32>
    %118 = vector.shape_cast %117 : vector<1x128x128xf32> to vector<128x128xf32>
    %cst_70 = arith.constant dense<0.000000e+00> : vector<8x128xf32>
    %119 = tpu.matmul %5, %118, %cst_70 {dimension_numbers = #tpu.dot_dimension_numbers<[1], [0], [0], [1], [0, 0, 1, 1], [], []>} : vector<8x128xf32>, vector<128x128xf32>, vector<8x128xf32> -> vector<8x128xf32>
    %120 = vector.extract_strided_slice %94 {offsets = [0, 3], sizes = [8, 1], strides = [1, 1]} : vector<8x9xf32> to vector<8x1xf32>
    %121 = vector.broadcast %120 : vector<8x1xf32> to vector<8x128xf32>
    %122 = arith.mulf %119, %121 : vector<8x128xf32>
    %123 = arith.addf %116, %122 : vector<8x128xf32>
    %c4_71 = arith.constant 4 : index
    %c0_72 = arith.constant 0 : index
    %c0_73 = arith.constant 0 : index
    %124 = vector.load %arg3[%c4_71, %c0_72, %c0_73] : memref<9x128x128xf32, #tpu.memory_space<vmem>>, vector<1x128x128xf32>
    %125 = vector.shape_cast %124 : vector<1x128x128xf32> to vector<128x128xf32>
    %cst_74 = arith.constant dense<0.000000e+00> : vector<8x128xf32>
    %126 = tpu.matmul %5, %125, %cst_74 {dimension_numbers = #tpu.dot_dimension_numbers<[1], [0], [0], [1], [0, 0, 1, 1], [], []>} : vector<8x128xf32>, vector<128x128xf32>, vector<8x128xf32> -> vector<8x128xf32>
    %127 = vector.extract_strided_slice %94 {offsets = [0, 4], sizes = [8, 1], strides = [1, 1]} : vector<8x9xf32> to vector<8x1xf32>
    %128 = vector.broadcast %127 : vector<8x1xf32> to vector<8x128xf32>
    %129 = arith.mulf %126, %128 : vector<8x128xf32>
    %130 = arith.addf %123, %129 : vector<8x128xf32>
    %c5_75 = arith.constant 5 : index
    %c0_76 = arith.constant 0 : index
    %c0_77 = arith.constant 0 : index
    %131 = vector.load %arg3[%c5_75, %c0_76, %c0_77] : memref<9x128x128xf32, #tpu.memory_space<vmem>>, vector<1x128x128xf32>
    %132 = vector.shape_cast %131 : vector<1x128x128xf32> to vector<128x128xf32>
    %cst_78 = arith.constant dense<0.000000e+00> : vector<8x128xf32>
    %133 = tpu.matmul %5, %132, %cst_78 {dimension_numbers = #tpu.dot_dimension_numbers<[1], [0], [0], [1], [0, 0, 1, 1], [], []>} : vector<8x128xf32>, vector<128x128xf32>, vector<8x128xf32> -> vector<8x128xf32>
    %134 = vector.extract_strided_slice %94 {offsets = [0, 5], sizes = [8, 1], strides = [1, 1]} : vector<8x9xf32> to vector<8x1xf32>
    %135 = vector.broadcast %134 : vector<8x1xf32> to vector<8x128xf32>
    %136 = arith.mulf %133, %135 : vector<8x128xf32>
    %137 = arith.addf %130, %136 : vector<8x128xf32>
    %c6_79 = arith.constant 6 : index
    %c0_80 = arith.constant 0 : index
    %c0_81 = arith.constant 0 : index
    %138 = vector.load %arg3[%c6_79, %c0_80, %c0_81] : memref<9x128x128xf32, #tpu.memory_space<vmem>>, vector<1x128x128xf32>
    %139 = vector.shape_cast %138 : vector<1x128x128xf32> to vector<128x128xf32>
    %cst_82 = arith.constant dense<0.000000e+00> : vector<8x128xf32>
    %140 = tpu.matmul %5, %139, %cst_82 {dimension_numbers = #tpu.dot_dimension_numbers<[1], [0], [0], [1], [0, 0, 1, 1], [], []>} : vector<8x128xf32>, vector<128x128xf32>, vector<8x128xf32> -> vector<8x128xf32>
    %141 = vector.extract_strided_slice %94 {offsets = [0, 6], sizes = [8, 1], strides = [1, 1]} : vector<8x9xf32> to vector<8x1xf32>
    %142 = vector.broadcast %141 : vector<8x1xf32> to vector<8x128xf32>
    %143 = arith.mulf %140, %142 : vector<8x128xf32>
    %144 = arith.addf %137, %143 : vector<8x128xf32>
    %c7_83 = arith.constant 7 : index
    %c0_84 = arith.constant 0 : index
    %c0_85 = arith.constant 0 : index
    %145 = vector.load %arg3[%c7_83, %c0_84, %c0_85] : memref<9x128x128xf32, #tpu.memory_space<vmem>>, vector<1x128x128xf32>
    %146 = vector.shape_cast %145 : vector<1x128x128xf32> to vector<128x128xf32>
    %cst_86 = arith.constant dense<0.000000e+00> : vector<8x128xf32>
    %147 = tpu.matmul %5, %146, %cst_86 {dimension_numbers = #tpu.dot_dimension_numbers<[1], [0], [0], [1], [0, 0, 1, 1], [], []>} : vector<8x128xf32>, vector<128x128xf32>, vector<8x128xf32> -> vector<8x128xf32>
    %148 = vector.extract_strided_slice %94 {offsets = [0, 7], sizes = [8, 1], strides = [1, 1]} : vector<8x9xf32> to vector<8x1xf32>
    %149 = vector.broadcast %148 : vector<8x1xf32> to vector<8x128xf32>
    %150 = arith.mulf %147, %149 : vector<8x128xf32>
    %151 = arith.addf %144, %150 : vector<8x128xf32>
    %c8_87 = arith.constant 8 : index
    %c0_88 = arith.constant 0 : index
    %c0_89 = arith.constant 0 : index
    %152 = vector.load %arg3[%c8_87, %c0_88, %c0_89] : memref<9x128x128xf32, #tpu.memory_space<vmem>>, vector<1x128x128xf32>
    %153 = vector.shape_cast %152 : vector<1x128x128xf32> to vector<128x128xf32>
    %cst_90 = arith.constant dense<0.000000e+00> : vector<8x128xf32>
    %154 = tpu.matmul %5, %153, %cst_90 {dimension_numbers = #tpu.dot_dimension_numbers<[1], [0], [0], [1], [0, 0, 1, 1], [], []>} : vector<8x128xf32>, vector<128x128xf32>, vector<8x128xf32> -> vector<8x128xf32>
    %155 = vector.extract_strided_slice %94 {offsets = [0, 8], sizes = [8, 1], strides = [1, 1]} : vector<8x9xf32> to vector<8x1xf32>
    %156 = vector.broadcast %155 : vector<8x1xf32> to vector<8x128xf32>
    %157 = arith.mulf %154, %156 : vector<8x128xf32>
    %158 = arith.addf %151, %157 : vector<8x128xf32>
    %c0_91 = arith.constant 0 : index
    %c0_92 = arith.constant 0 : index
    %159 = vector.load %arg10[%c0_91, %c0_92] : memref<8x4xf32, #tpu.memory_space<vmem>>, vector<8x4xf32>
    %cst_93 = arith.constant dense<0.000000e+00> : vector<8x128xf32>
    %160 = tpu.matmul %159, %93, %cst_93 {dimension_numbers = #tpu.dot_dimension_numbers<[1], [0], [0], [1], [0, 0, 1, 1], [], []>} : vector<8x4xf32>, vector<4x128xf32>, vector<8x128xf32> -> vector<8x128xf32>
    %c0_94 = arith.constant 0 : index
    %c0_95 = arith.constant 0 : index
    %161 = vector.load %arg11[%c0_94, %c0_95] : memref<8x8xf32, #tpu.memory_space<vmem>>, vector<8x8xf32>
    %cst_96 = arith.constant dense<0.000000e+00> : vector<8x128xf32>
    %162 = tpu.matmul %161, %158, %cst_96 {dimension_numbers = #tpu.dot_dimension_numbers<[1], [0], [0], [1], [0, 0, 1, 1], [], []>} : vector<8x8xf32>, vector<8x128xf32>, vector<8x128xf32> -> vector<8x128xf32>
    %163 = arith.addf %160, %162 : vector<8x128xf32>
    %164 = math.tanh %163 : vector<8x128xf32>
    %165 = arith.mulf %24, %6 : vector<8x128xf32>
    %166 = arith.mulf %23, %164 : vector<8x128xf32>
    %167 = arith.addf %165, %166 : vector<8x128xf32>
    %168 = math.tanh %167 : vector<8x128xf32>
    %169 = arith.mulf %25, %168 : vector<8x128xf32>
    %c0_97 = arith.constant 0 : index
    %c0_98 = arith.constant 0 : index
    %170 = vector.load %arg22[%c0_97, %c0_98] : memref<8x128xf32, #tpu.memory_space<vmem>>, vector<8x128xf32>
    tpu.vector_store %arg22[%c0_97, %c0_98], %169 {strides = array<i32>} : memref<8x128xf32, #tpu.memory_space<vmem>>, vector<8x128xf32>,
    %c0_99 = arith.constant 0 : index
    %c0_100 = arith.constant 0 : index
    %171 = vector.load %arg23[%c0_99, %c0_100] : memref<8x128xf32, #tpu.memory_space<vmem>>, vector<8x128xf32>
    tpu.vector_store %arg23[%c0_99, %c0_100], %167 {strides = array<i32>} : memref<8x128xf32, #tpu.memory_space<vmem>>, vector<8x128xf32>,
    %c0_101 = arith.constant 0 : index
    %c0_102 = arith.constant 0 : index
    %172 = vector.load %arg24[%c0_101, %c0_102] : memref<8x128xf32, #tpu.memory_space<vmem>>, vector<8x128xf32>
    %c0_103 = arith.constant 0 : index
    %c0_104 = arith.constant 0 : index
    %173 = vector.load %arg25[%c0_103, %c0_104] : memref<8x128xf32, #tpu.memory_space<vmem>>, vector<8x128xf32>
    %c0_105 = arith.constant 0 : index
    %c0_106 = arith.constant 0 : index
    %174 = vector.load %arg2[%c0_105, %c0_106] : memref<128x128xf32, #tpu.memory_space<vmem>>, vector<128x128xf32>
    %cst_107 = arith.constant dense<0.000000e+00> : vector<8x128xf32>
    %175 = tpu.matmul %169, %174, %cst_107 {dimension_numbers = #tpu.dot_dimension_numbers<[1], [0], [0], [1], [0, 0, 1, 1], [], []>} : vector<8x128xf32>, vector<128x128xf32>, vector<8x128xf32> -> vector<8x128xf32>
    %cst_108 = arith.constant dense<0.000000e+00> : vector<8x128xf32>
    %176 = tpu.matmul %172, %174, %cst_108 {dimension_numbers = #tpu.dot_dimension_numbers<[1], [0], [0], [1], [0, 0, 1, 1], [], []>} : vector<8x128xf32>, vector<128x128xf32>, vector<8x128xf32> -> vector<8x128xf32>
    %c0_109 = arith.constant 0 : index
    %c0_110 = arith.constant 0 : index
    %177 = vector.load %arg12[%c0_109, %c0_110] : memref<24x8xf32, #tpu.memory_space<vmem>>, vector<24x8xf32>
    %cst_111 = arith.constant dense<0.000000e+00> : vector<24x128xf32>
    %178 = tpu.matmul %177, %175, %cst_111 {dimension_numbers = #tpu.dot_dimension_numbers<[1], [0], [0], [1], [0, 0, 1, 1], [], []>} : vector<24x8xf32>, vector<8x128xf32>, vector<24x128xf32> -> vector<24x128xf32>
    %c0_112 = arith.constant 0 : index
    %c0_113 = arith.constant 0 : index
    %179 = vector.load %arg13[%c0_112, %c0_113] : memref<24x8xf32, #tpu.memory_space<vmem>>, vector<24x8xf32>
    %cst_114 = arith.constant dense<0.000000e+00> : vector<24x128xf32>
    %180 = tpu.matmul %179, %176, %cst_114 {dimension_numbers = #tpu.dot_dimension_numbers<[1], [0], [0], [1], [0, 0, 1, 1], [], []>} : vector<24x8xf32>, vector<8x128xf32>, vector<24x128xf32> -> vector<24x128xf32>
    %181 = arith.addf %178, %180 : vector<24x128xf32>
    %c0_115 = arith.constant 0 : index
    %c0_116 = arith.constant 0 : index
    %182 = vector.load %arg14[%c0_115, %c0_116] : memref<24x1xf32, #tpu.memory_space<vmem>>, vector<24x1xf32>
    %183 = vector.broadcast %182 : vector<24x1xf32> to vector<24x128xf32>
    %184 = arith.addf %181, %183 : vector<24x128xf32>
    %185 = arith.negf %184 : vector<24x128xf32>
    %186 = math.exp %185 : vector<24x128xf32>
    %cst_117 = arith.constant 1.000000e+00 : f32
    %187 = vector.broadcast %cst_117 : f32 to vector<24x128xf32>
    %188 = arith.addf %187, %186 : vector<24x128xf32>
    %189 = arith.divf %187, %188 : vector<24x128xf32>
    %190 = vector.extract_strided_slice %189 {offsets = [0, 0], sizes = [8, 128], strides = [1, 1]} : vector<24x128xf32> to vector<8x128xf32>
    %191 = vector.extract_strided_slice %189 {offsets = [8, 0], sizes = [8, 128], strides = [1, 1]} : vector<24x128xf32> to vector<8x128xf32>
    %192 = vector.extract_strided_slice %189 {offsets = [16, 0], sizes = [8, 128], strides = [1, 1]} : vector<24x128xf32> to vector<8x128xf32>
    %c0_118 = arith.constant 0 : index
    %c0_119 = arith.constant 0 : index
    %193 = vector.load %arg15[%c0_118, %c0_119] : memref<8x9xf32, #tpu.memory_space<vmem>>, vector<8x9xf32>
    %cst_120 = arith.constant 0.000000e+00 : f32
    %194 = vector.broadcast %cst_120 : f32 to vector<8x128xf32>
    %c0_121 = arith.constant 0 : index
    %c0_122 = arith.constant 0 : index
    %c0_123 = arith.constant 0 : index
    %195 = vector.load %arg3[%c0_121, %c0_122, %c0_123] : memref<9x128x128xf32, #tpu.memory_space<vmem>>, vector<1x128x128xf32>
    %196 = vector.shape_cast %195 : vector<1x128x128xf32> to vector<128x128xf32>
    %cst_124 = arith.constant dense<0.000000e+00> : vector<8x128xf32>
    %197 = tpu.matmul %169, %196, %cst_124 {dimension_numbers = #tpu.dot_dimension_numbers<[1], [0], [0], [1], [0, 0, 1, 1], [], []>} : vector<8x128xf32>, vector<128x128xf32>, vector<8x128xf32> -> vector<8x128xf32>
    %198 = vector.extract_strided_slice %193 {offsets = [0, 0], sizes = [8, 1], strides = [1, 1]} : vector<8x9xf32> to vector<8x1xf32>
    %199 = vector.broadcast %198 : vector<8x1xf32> to vector<8x128xf32>
    %200 = arith.mulf %197, %199 : vector<8x128xf32>
    %201 = arith.addf %194, %200 : vector<8x128xf32>
    %c1_125 = arith.constant 1 : index
    %c0_126 = arith.constant 0 : index
    %c0_127 = arith.constant 0 : index
    %202 = vector.load %arg3[%c1_125, %c0_126, %c0_127] : memref<9x128x128xf32, #tpu.memory_space<vmem>>, vector<1x128x128xf32>
    %203 = vector.shape_cast %202 : vector<1x128x128xf32> to vector<128x128xf32>
    %cst_128 = arith.constant dense<0.000000e+00> : vector<8x128xf32>
    %204 = tpu.matmul %169, %203, %cst_128 {dimension_numbers = #tpu.dot_dimension_numbers<[1], [0], [0], [1], [0, 0, 1, 1], [], []>} : vector<8x128xf32>, vector<128x128xf32>, vector<8x128xf32> -> vector<8x128xf32>
    %205 = vector.extract_strided_slice %193 {offsets = [0, 1], sizes = [8, 1], strides = [1, 1]} : vector<8x9xf32> to vector<8x1xf32>
    %206 = vector.broadcast %205 : vector<8x1xf32> to vector<8x128xf32>
    %207 = arith.mulf %204, %206 : vector<8x128xf32>
    %208 = arith.addf %201, %207 : vector<8x128xf32>
    %c2_129 = arith.constant 2 : index
    %c0_130 = arith.constant 0 : index
    %c0_131 = arith.constant 0 : index
    %209 = vector.load %arg3[%c2_129, %c0_130, %c0_131] : memref<9x128x128xf32, #tpu.memory_space<vmem>>, vector<1x128x128xf32>
    %210 = vector.shape_cast %209 : vector<1x128x128xf32> to vector<128x128xf32>
    %cst_132 = arith.constant dense<0.000000e+00> : vector<8x128xf32>
    %211 = tpu.matmul %169, %210, %cst_132 {dimension_numbers = #tpu.dot_dimension_numbers<[1], [0], [0], [1], [0, 0, 1, 1], [], []>} : vector<8x128xf32>, vector<128x128xf32>, vector<8x128xf32> -> vector<8x128xf32>
    %212 = vector.extract_strided_slice %193 {offsets = [0, 2], sizes = [8, 1], strides = [1, 1]} : vector<8x9xf32> to vector<8x1xf32>
    %213 = vector.broadcast %212 : vector<8x1xf32> to vector<8x128xf32>
    %214 = arith.mulf %211, %213 : vector<8x128xf32>
    %215 = arith.addf %208, %214 : vector<8x128xf32>
    %c3_133 = arith.constant 3 : index
    %c0_134 = arith.constant 0 : index
    %c0_135 = arith.constant 0 : index
    %216 = vector.load %arg3[%c3_133, %c0_134, %c0_135] : memref<9x128x128xf32, #tpu.memory_space<vmem>>, vector<1x128x128xf32>
    %217 = vector.shape_cast %216 : vector<1x128x128xf32> to vector<128x128xf32>
    %cst_136 = arith.constant dense<0.000000e+00> : vector<8x128xf32>
    %218 = tpu.matmul %169, %217, %cst_136 {dimension_numbers = #tpu.dot_dimension_numbers<[1], [0], [0], [1], [0, 0, 1, 1], [], []>} : vector<8x128xf32>, vector<128x128xf32>, vector<8x128xf32> -> vector<8x128xf32>
    %219 = vector.extract_strided_slice %193 {offsets = [0, 3], sizes = [8, 1], strides = [1, 1]} : vector<8x9xf32> to vector<8x1xf32>
    %220 = vector.broadcast %219 : vector<8x1xf32> to vector<8x128xf32>
    %221 = arith.mulf %218, %220 : vector<8x128xf32>
    %222 = arith.addf %215, %221 : vector<8x128xf32>
    %c4_137 = arith.constant 4 : index
    %c0_138 = arith.constant 0 : index
    %c0_139 = arith.constant 0 : index
    %223 = vector.load %arg3[%c4_137, %c0_138, %c0_139] : memref<9x128x128xf32, #tpu.memory_space<vmem>>, vector<1x128x128xf32>
    %224 = vector.shape_cast %223 : vector<1x128x128xf32> to vector<128x128xf32>
    %cst_140 = arith.constant dense<0.000000e+00> : vector<8x128xf32>
    %225 = tpu.matmul %169, %224, %cst_140 {dimension_numbers = #tpu.dot_dimension_numbers<[1], [0], [0], [1], [0, 0, 1, 1], [], []>} : vector<8x128xf32>, vector<128x128xf32>, vector<8x128xf32> -> vector<8x128xf32>
    %226 = vector.extract_strided_slice %193 {offsets = [0, 4], sizes = [8, 1], strides = [1, 1]} : vector<8x9xf32> to vector<8x1xf32>
    %227 = vector.broadcast %226 : vector<8x1xf32> to vector<8x128xf32>
    %228 = arith.mulf %225, %227 : vector<8x128xf32>
    %229 = arith.addf %222, %228 : vector<8x128xf32>
    %c5_141 = arith.constant 5 : index
    %c0_142 = arith.constant 0 : index
    %c0_143 = arith.constant 0 : index
    %230 = vector.load %arg3[%c5_141, %c0_142, %c0_143] : memref<9x128x128xf32, #tpu.memory_space<vmem>>, vector<1x128x128xf32>
    %231 = vector.shape_cast %230 : vector<1x128x128xf32> to vector<128x128xf32>
    %cst_144 = arith.constant dense<0.000000e+00> : vector<8x128xf32>
    %232 = tpu.matmul %169, %231, %cst_144 {dimension_numbers = #tpu.dot_dimension_numbers<[1], [0], [0], [1], [0, 0, 1, 1], [], []>} : vector<8x128xf32>, vector<128x128xf32>, vector<8x128xf32> -> vector<8x128xf32>
    %233 = vector.extract_strided_slice %193 {offsets = [0, 5], sizes = [8, 1], strides = [1, 1]} : vector<8x9xf32> to vector<8x1xf32>
    %234 = vector.broadcast %233 : vector<8x1xf32> to vector<8x128xf32>
    %235 = arith.mulf %232, %234 : vector<8x128xf32>
    %236 = arith.addf %229, %235 : vector<8x128xf32>
    %c6_145 = arith.constant 6 : index
    %c0_146 = arith.constant 0 : index
    %c0_147 = arith.constant 0 : index
    %237 = vector.load %arg3[%c6_145, %c0_146, %c0_147] : memref<9x128x128xf32, #tpu.memory_space<vmem>>, vector<1x128x128xf32>
    %238 = vector.shape_cast %237 : vector<1x128x128xf32> to vector<128x128xf32>
    %cst_148 = arith.constant dense<0.000000e+00> : vector<8x128xf32>
    %239 = tpu.matmul %169, %238, %cst_148 {dimension_numbers = #tpu.dot_dimension_numbers<[1], [0], [0], [1], [0, 0, 1, 1], [], []>} : vector<8x128xf32>, vector<128x128xf32>, vector<8x128xf32> -> vector<8x128xf32>
    %240 = vector.extract_strided_slice %193 {offsets = [0, 6], sizes = [8, 1], strides = [1, 1]} : vector<8x9xf32> to vector<8x1xf32>
    %241 = vector.broadcast %240 : vector<8x1xf32> to vector<8x128xf32>
    %242 = arith.mulf %239, %241 : vector<8x128xf32>
    %243 = arith.addf %236, %242 : vector<8x128xf32>
    %c7_149 = arith.constant 7 : index
    %c0_150 = arith.constant 0 : index
    %c0_151 = arith.constant 0 : index
    %244 = vector.load %arg3[%c7_149, %c0_150, %c0_151] : memref<9x128x128xf32, #tpu.memory_space<vmem>>, vector<1x128x128xf32>
    %245 = vector.shape_cast %244 : vector<1x128x128xf32> to vector<128x128xf32>
    %cst_152 = arith.constant dense<0.000000e+00> : vector<8x128xf32>
    %246 = tpu.matmul %169, %245, %cst_152 {dimension_numbers = #tpu.dot_dimension_numbers<[1], [0], [0], [1], [0, 0, 1, 1], [], []>} : vector<8x128xf32>, vector<128x128xf32>, vector<8x128xf32> -> vector<8x128xf32>
    %247 = vector.extract_strided_slice %193 {offsets = [0, 7], sizes = [8, 1], strides = [1, 1]} : vector<8x9xf32> to vector<8x1xf32>
    %248 = vector.broadcast %247 : vector<8x1xf32> to vector<8x128xf32>
    %249 = arith.mulf %246, %248 : vector<8x128xf32>
    %250 = arith.addf %243, %249 : vector<8x128xf32>
    %c8_153 = arith.constant 8 : index
    %c0_154 = arith.constant 0 : index
    %c0_155 = arith.constant 0 : index
    %251 = vector.load %arg3[%c8_153, %c0_154, %c0_155] : memref<9x128x128xf32, #tpu.memory_space<vmem>>, vector<1x128x128xf32>
    %252 = vector.shape_cast %251 : vector<1x128x128xf32> to vector<128x128xf32>
    %cst_156 = arith.constant dense<0.000000e+00> : vector<8x128xf32>
    %253 = tpu.matmul %169, %252, %cst_156 {dimension_numbers = #tpu.dot_dimension_numbers<[1], [0], [0], [1], [0, 0, 1, 1], [], []>} : vector<8x128xf32>, vector<128x128xf32>, vector<8x128xf32> -> vector<8x128xf32>
    %254 = vector.extract_strided_slice %193 {offsets = [0, 8], sizes = [8, 1], strides = [1, 1]} : vector<8x9xf32> to vector<8x1xf32>
    %255 = vector.broadcast %254 : vector<8x1xf32> to vector<8x128xf32>
    %256 = arith.mulf %253, %255 : vector<8x128xf32>
    %257 = arith.addf %250, %256 : vector<8x128xf32>
    %c0_157 = arith.constant 0 : index
    %c0_158 = arith.constant 0 : index
    %258 = vector.load %arg16[%c0_157, %c0_158] : memref<8x1xf32, #tpu.memory_space<vmem>>, vector<8x1xf32>
    %259 = vector.broadcast %258 : vector<8x1xf32> to vector<8x128xf32>
    %260 = arith.addf %257, %259 : vector<8x128xf32>
    %c0_159 = arith.constant 0 : index
    %c0_160 = arith.constant 0 : index
    %261 = vector.load %arg17[%c0_159, %c0_160] : memref<8x9xf32, #tpu.memory_space<vmem>>, vector<8x9xf32>
    %cst_161 = arith.constant 0.000000e+00 : f32
    %262 = vector.broadcast %cst_161 : f32 to vector<8x128xf32>
    %c0_162 = arith.constant 0 : index
    %c0_163 = arith.constant 0 : index
    %c0_164 = arith.constant 0 : index
    %263 = vector.load %arg3[%c0_162, %c0_163, %c0_164] : memref<9x128x128xf32, #tpu.memory_space<vmem>>, vector<1x128x128xf32>
    %264 = vector.shape_cast %263 : vector<1x128x128xf32> to vector<128x128xf32>
    %cst_165 = arith.constant dense<0.000000e+00> : vector<8x128xf32>
    %265 = tpu.matmul %172, %264, %cst_165 {dimension_numbers = #tpu.dot_dimension_numbers<[1], [0], [0], [1], [0, 0, 1, 1], [], []>} : vector<8x128xf32>, vector<128x128xf32>, vector<8x128xf32> -> vector<8x128xf32>
    %266 = vector.extract_strided_slice %261 {offsets = [0, 0], sizes = [8, 1], strides = [1, 1]} : vector<8x9xf32> to vector<8x1xf32>
    %267 = vector.broadcast %266 : vector<8x1xf32> to vector<8x128xf32>
    %268 = arith.mulf %265, %267 : vector<8x128xf32>
    %269 = arith.addf %262, %268 : vector<8x128xf32>
    %c1_166 = arith.constant 1 : index
    %c0_167 = arith.constant 0 : index
    %c0_168 = arith.constant 0 : index
    %270 = vector.load %arg3[%c1_166, %c0_167, %c0_168] : memref<9x128x128xf32, #tpu.memory_space<vmem>>, vector<1x128x128xf32>
    %271 = vector.shape_cast %270 : vector<1x128x128xf32> to vector<128x128xf32>
    %cst_169 = arith.constant dense<0.000000e+00> : vector<8x128xf32>
    %272 = tpu.matmul %172, %271, %cst_169 {dimension_numbers = #tpu.dot_dimension_numbers<[1], [0], [0], [1], [0, 0, 1, 1], [], []>} : vector<8x128xf32>, vector<128x128xf32>, vector<8x128xf32> -> vector<8x128xf32>
    %273 = vector.extract_strided_slice %261 {offsets = [0, 1], sizes = [8, 1], strides = [1, 1]} : vector<8x9xf32> to vector<8x1xf32>
    %274 = vector.broadcast %273 : vector<8x1xf32> to vector<8x128xf32>
    %275 = arith.mulf %272, %274 : vector<8x128xf32>
    %276 = arith.addf %269, %275 : vector<8x128xf32>
    %c2_170 = arith.constant 2 : index
    %c0_171 = arith.constant 0 : index
    %c0_172 = arith.constant 0 : index
    %277 = vector.load %arg3[%c2_170, %c0_171, %c0_172] : memref<9x128x128xf32, #tpu.memory_space<vmem>>, vector<1x128x128xf32>
    %278 = vector.shape_cast %277 : vector<1x128x128xf32> to vector<128x128xf32>
    %cst_173 = arith.constant dense<0.000000e+00> : vector<8x128xf32>
    %279 = tpu.matmul %172, %278, %cst_173 {dimension_numbers = #tpu.dot_dimension_numbers<[1], [0], [0], [1], [0, 0, 1, 1], [], []>} : vector<8x128xf32>, vector<128x128xf32>, vector<8x128xf32> -> vector<8x128xf32>
    %280 = vector.extract_strided_slice %261 {offsets = [0, 2], sizes = [8, 1], strides = [1, 1]} : vector<8x9xf32> to vector<8x1xf32>
    %281 = vector.broadcast %280 : vector<8x1xf32> to vector<8x128xf32>
    %282 = arith.mulf %279, %281 : vector<8x128xf32>
    %283 = arith.addf %276, %282 : vector<8x128xf32>
    %c3_174 = arith.constant 3 : index
    %c0_175 = arith.constant 0 : index
    %c0_176 = arith.constant 0 : index
    %284 = vector.load %arg3[%c3_174, %c0_175, %c0_176] : memref<9x128x128xf32, #tpu.memory_space<vmem>>, vector<1x128x128xf32>
    %285 = vector.shape_cast %284 : vector<1x128x128xf32> to vector<128x128xf32>
    %cst_177 = arith.constant dense<0.000000e+00> : vector<8x128xf32>
    %286 = tpu.matmul %172, %285, %cst_177 {dimension_numbers = #tpu.dot_dimension_numbers<[1], [0], [0], [1], [0, 0, 1, 1], [], []>} : vector<8x128xf32>, vector<128x128xf32>, vector<8x128xf32> -> vector<8x128xf32>
    %287 = vector.extract_strided_slice %261 {offsets = [0, 3], sizes = [8, 1], strides = [1, 1]} : vector<8x9xf32> to vector<8x1xf32>
    %288 = vector.broadcast %287 : vector<8x1xf32> to vector<8x128xf32>
    %289 = arith.mulf %286, %288 : vector<8x128xf32>
    %290 = arith.addf %283, %289 : vector<8x128xf32>
    %c4_178 = arith.constant 4 : index
    %c0_179 = arith.constant 0 : index
    %c0_180 = arith.constant 0 : index
    %291 = vector.load %arg3[%c4_178, %c0_179, %c0_180] : memref<9x128x128xf32, #tpu.memory_space<vmem>>, vector<1x128x128xf32>
    %292 = vector.shape_cast %291 : vector<1x128x128xf32> to vector<128x128xf32>
    %cst_181 = arith.constant dense<0.000000e+00> : vector<8x128xf32>
    %293 = tpu.matmul %172, %292, %cst_181 {dimension_numbers = #tpu.dot_dimension_numbers<[1], [0], [0], [1], [0, 0, 1, 1], [], []>} : vector<8x128xf32>, vector<128x128xf32>, vector<8x128xf32> -> vector<8x128xf32>
    %294 = vector.extract_strided_slice %261 {offsets = [0, 4], sizes = [8, 1], strides = [1, 1]} : vector<8x9xf32> to vector<8x1xf32>
    %295 = vector.broadcast %294 : vector<8x1xf32> to vector<8x128xf32>
    %296 = arith.mulf %293, %295 : vector<8x128xf32>
    %297 = arith.addf %290, %296 : vector<8x128xf32>
    %c5_182 = arith.constant 5 : index
    %c0_183 = arith.constant 0 : index
    %c0_184 = arith.constant 0 : index
    %298 = vector.load %arg3[%c5_182, %c0_183, %c0_184] : memref<9x128x128xf32, #tpu.memory_space<vmem>>, vector<1x128x128xf32>
    %299 = vector.shape_cast %298 : vector<1x128x128xf32> to vector<128x128xf32>
    %cst_185 = arith.constant dense<0.000000e+00> : vector<8x128xf32>
    %300 = tpu.matmul %172, %299, %cst_185 {dimension_numbers = #tpu.dot_dimension_numbers<[1], [0], [0], [1], [0, 0, 1, 1], [], []>} : vector<8x128xf32>, vector<128x128xf32>, vector<8x128xf32> -> vector<8x128xf32>
    %301 = vector.extract_strided_slice %261 {offsets = [0, 5], sizes = [8, 1], strides = [1, 1]} : vector<8x9xf32> to vector<8x1xf32>
    %302 = vector.broadcast %301 : vector<8x1xf32> to vector<8x128xf32>
    %303 = arith.mulf %300, %302 : vector<8x128xf32>
    %304 = arith.addf %297, %303 : vector<8x128xf32>
    %c6_186 = arith.constant 6 : index
    %c0_187 = arith.constant 0 : index
    %c0_188 = arith.constant 0 : index
    %305 = vector.load %arg3[%c6_186, %c0_187, %c0_188] : memref<9x128x128xf32, #tpu.memory_space<vmem>>, vector<1x128x128xf32>
    %306 = vector.shape_cast %305 : vector<1x128x128xf32> to vector<128x128xf32>
    %cst_189 = arith.constant dense<0.000000e+00> : vector<8x128xf32>
    %307 = tpu.matmul %172, %306, %cst_189 {dimension_numbers = #tpu.dot_dimension_numbers<[1], [0], [0], [1], [0, 0, 1, 1], [], []>} : vector<8x128xf32>, vector<128x128xf32>, vector<8x128xf32> -> vector<8x128xf32>
    %308 = vector.extract_strided_slice %261 {offsets = [0, 6], sizes = [8, 1], strides = [1, 1]} : vector<8x9xf32> to vector<8x1xf32>
    %309 = vector.broadcast %308 : vector<8x1xf32> to vector<8x128xf32>
    %310 = arith.mulf %307, %309 : vector<8x128xf32>
    %311 = arith.addf %304, %310 : vector<8x128xf32>
    %c7_190 = arith.constant 7 : index
    %c0_191 = arith.constant 0 : index
    %c0_192 = arith.constant 0 : index
    %312 = vector.load %arg3[%c7_190, %c0_191, %c0_192] : memref<9x128x128xf32, #tpu.memory_space<vmem>>, vector<1x128x128xf32>
    %313 = vector.shape_cast %312 : vector<1x128x128xf32> to vector<128x128xf32>
    %cst_193 = arith.constant dense<0.000000e+00> : vector<8x128xf32>
    %314 = tpu.matmul %172, %313, %cst_193 {dimension_numbers = #tpu.dot_dimension_numbers<[1], [0], [0], [1], [0, 0, 1, 1], [], []>} : vector<8x128xf32>, vector<128x128xf32>, vector<8x128xf32> -> vector<8x128xf32>
    %315 = vector.extract_strided_slice %261 {offsets = [0, 7], sizes = [8, 1], strides = [1, 1]} : vector<8x9xf32> to vector<8x1xf32>
    %316 = vector.broadcast %315 : vector<8x1xf32> to vector<8x128xf32>
    %317 = arith.mulf %314, %316 : vector<8x128xf32>
    %318 = arith.addf %311, %317 : vector<8x128xf32>
    %c8_194 = arith.constant 8 : index
    %c0_195 = arith.constant 0 : index
    %c0_196 = arith.constant 0 : index
    %319 = vector.load %arg3[%c8_194, %c0_195, %c0_196] : memref<9x128x128xf32, #tpu.memory_space<vmem>>, vector<1x128x128xf32>
    %320 = vector.shape_cast %319 : vector<1x128x128xf32> to vector<128x128xf32>
    %cst_197 = arith.constant dense<0.000000e+00> : vector<8x128xf32>
    %321 = tpu.matmul %172, %320, %cst_197 {dimension_numbers = #tpu.dot_dimension_numbers<[1], [0], [0], [1], [0, 0, 1, 1], [], []>} : vector<8x128xf32>, vector<128x128xf32>, vector<8x128xf32> -> vector<8x128xf32>
    %322 = vector.extract_strided_slice %261 {offsets = [0, 8], sizes = [8, 1], strides = [1, 1]} : vector<8x9xf32> to vector<8x1xf32>
    %323 = vector.broadcast %322 : vector<8x1xf32> to vector<8x128xf32>
    %324 = arith.mulf %321, %323 : vector<8x128xf32>
    %325 = arith.addf %318, %324 : vector<8x128xf32>
    %c0_198 = arith.constant 0 : index
    %c0_199 = arith.constant 0 : index
    %326 = vector.load %arg18[%c0_198, %c0_199] : memref<8x8xf32, #tpu.memory_space<vmem>>, vector<8x8xf32>
    %cst_200 = arith.constant dense<0.000000e+00> : vector<8x128xf32>
    %327 = tpu.matmul %326, %260, %cst_200 {dimension_numbers = #tpu.dot_dimension_numbers<[1], [0], [0], [1], [0, 0, 1, 1], [], []>} : vector<8x8xf32>, vector<8x128xf32>, vector<8x128xf32> -> vector<8x128xf32>
    %c0_201 = arith.constant 0 : index
    %c0_202 = arith.constant 0 : index
    %328 = vector.load %arg19[%c0_201, %c0_202] : memref<8x8xf32, #tpu.memory_space<vmem>>, vector<8x8xf32>
    %cst_203 = arith.constant dense<0.000000e+00> : vector<8x128xf32>
    %329 = tpu.matmul %328, %325, %cst_203 {dimension_numbers = #tpu.dot_dimension_numbers<[1], [0], [0], [1], [0, 0, 1, 1], [], []>} : vector<8x8xf32>, vector<8x128xf32>, vector<8x128xf32> -> vector<8x128xf32>
    %330 = arith.addf %327, %329 : vector<8x128xf32>
    %331 = math.tanh %330 : vector<8x128xf32>
    %332 = arith.mulf %191, %173 : vector<8x128xf32>
    %333 = arith.mulf %190, %331 : vector<8x128xf32>
    %334 = arith.addf %332, %333 : vector<8x128xf32>
    %335 = math.tanh %334 : vector<8x128xf32>
    %336 = arith.mulf %192, %335 : vector<8x128xf32>
    %c0_204 = arith.constant 0 : index
    %c0_205 = arith.constant 0 : index
    %337 = vector.load %arg24[%c0_204, %c0_205] : memref<8x128xf32, #tpu.memory_space<vmem>>, vector<8x128xf32>
    tpu.vector_store %arg24[%c0_204, %c0_205], %336 {strides = array<i32>} : memref<8x128xf32, #tpu.memory_space<vmem>>, vector<8x128xf32>,
    %c0_206 = arith.constant 0 : index
    %c0_207 = arith.constant 0 : index
    %338 = vector.load %arg25[%c0_206, %c0_207] : memref<8x128xf32, #tpu.memory_space<vmem>>, vector<8x128xf32>
    tpu.vector_store %arg25[%c0_206, %c0_207], %334 {strides = array<i32>} : memref<8x128xf32, #tpu.memory_space<vmem>>, vector<8x128xf32>,
    %c0_208 = arith.constant 0 : index
    %c0_209 = arith.constant 0 : index
    %c0_210 = arith.constant 0 : index
    %339 = vector.load %arg20[%c0_208, %c0_209, %c0_210] : memref<1x8x128xf32, #tpu.memory_space<vmem>>, vector<1x8x128xf32>
    %340 = vector.shape_cast %339 : vector<1x8x128xf32> to vector<8x128xf32>
    %341 = vector.shape_cast %336 : vector<8x128xf32> to vector<1x8x128xf32>
    tpu.vector_store %arg20[%c0_208, %c0_209, %c0_210], %341 {strides = array<i32>} : memref<1x8x128xf32, #tpu.memory_space<vmem>>, vector<1x8x128xf32>,
    %c0_211 = arith.constant 0 : index
    %c0_212 = arith.constant 0 : index
    %342 = vector.load %arg21[%c0_211, %c0_212] : memref<8x128xf32, #tpu.memory_space<vmem>>, vector<8x128xf32>
    tpu.vector_store %arg21[%c0_211, %c0_212], %334 {strides = array<i32>} : memref<8x128xf32, #tpu.memory_space<vmem>>, vector<8x128xf32>,
    return
  }
  func.func @transform_0(%arg0: i32) -> (i32, i32, i32) {
    %c0_i32 = arith.constant 0 : i32
    %c0_i32_0 = arith.constant 0 : i32
    %c0_i32_1 = arith.constant 0 : i32
    return %arg0, %c0_i32, %c0_i32_0 : i32, i32, i32
  }
  func.func @transform_1(%arg0: i32) -> (i32, i32) {
    %c0_i32 = arith.constant 0 : i32
    %c0_i32_0 = arith.constant 0 : i32
    %c0_i32_1 = arith.constant 0 : i32
    return %c0_i32, %c0_i32_0 : i32, i32
  }
  func.func @transform_2(%arg0: i32) -> (i32, i32, i32) {
    %c0_i32 = arith.constant 0 : i32
    %c0_i32_0 = arith.constant 0 : i32
    %c0_i32_1 = arith.constant 0 : i32
    %c0_i32_2 = arith.constant 0 : i32
    return %c0_i32, %c0_i32_0, %c0_i32_1 : i32, i32, i32
  }
  func.func @transform_3(%arg0: i32) -> (i32, i32) {
    %c0_i32 = arith.constant 0 : i32
    %c0_i32_0 = arith.constant 0 : i32
    %c0_i32_1 = arith.constant 0 : i32
    return %c0_i32, %c0_i32_0 : i32, i32
  }
  func.func @transform_4(%arg0: i32) -> (i32, i32) {
    %c0_i32 = arith.constant 0 : i32
    %c0_i32_0 = arith.constant 0 : i32
    %c0_i32_1 = arith.constant 0 : i32
    return %c0_i32, %c0_i32_0 : i32, i32
  }
  func.func @transform_5(%arg0: i32) -> (i32, i32) {
    %c0_i32 = arith.constant 0 : i32
    %c0_i32_0 = arith.constant 0 : i32
    %c0_i32_1 = arith.constant 0 : i32
    return %c0_i32, %c0_i32_0 : i32, i32
  }
  func.func @transform_6(%arg0: i32) -> (i32, i32) {
    %c0_i32 = arith.constant 0 : i32
    %c0_i32_0 = arith.constant 0 : i32
    %c0_i32_1 = arith.constant 0 : i32
    return %c0_i32, %c0_i32_0 : i32, i32
  }
  func.func @transform_7(%arg0: i32) -> (i32, i32) {
    %c0_i32 = arith.constant 0 : i32
    %c0_i32_0 = arith.constant 0 : i32
    %c0_i32_1 = arith.constant 0 : i32
    return %c0_i32, %c0_i32_0 : i32, i32
  }
  func.func @transform_8(%arg0: i32) -> (i32, i32) {
    %c0_i32 = arith.constant 0 : i32
    %c0_i32_0 = arith.constant 0 : i32
    %c0_i32_1 = arith.constant 0 : i32
    return %c0_i32, %c0_i32_0 : i32, i32
  }
  func.func @transform_9(%arg0: i32) -> (i32, i32) {
    %c0_i32 = arith.constant 0 : i32
    %c0_i32_0 = arith.constant 0 : i32
    %c0_i32_1 = arith.constant 0 : i32
    return %c0_i32, %c0_i32_0 : i32, i32
  }
  func.func @transform_10(%arg0: i32) -> (i32, i32) {
    %c0_i32 = arith.constant 0 : i32
    %c0_i32_0 = arith.constant 0 : i32
    %c0_i32_1 = arith.constant 0 : i32
    return %c0_i32, %c0_i32_0 : i32, i32
  }
  func.func @transform_11(%arg0: i32) -> (i32, i32) {
    %c0_i32 = arith.constant 0 : i32
    %c0_i32_0 = arith.constant 0 : i32
    %c0_i32_1 = arith.constant 0 : i32
    return %c0_i32, %c0_i32_0 : i32, i32
  }
  func.func @transform_12(%arg0: i32) -> (i32, i32) {
    %c0_i32 = arith.constant 0 : i32
    %c0_i32_0 = arith.constant 0 : i32
    %c0_i32_1 = arith.constant 0 : i32
    return %c0_i32, %c0_i32_0 : i32, i32
  }
  func.func @transform_13(%arg0: i32) -> (i32, i32) {
    %c0_i32 = arith.constant 0 : i32
    %c0_i32_0 = arith.constant 0 : i32
    %c0_i32_1 = arith.constant 0 : i32
    return %c0_i32, %c0_i32_0 : i32, i32
  }
  func.func @transform_14(%arg0: i32) -> (i32, i32) {
    %c0_i32 = arith.constant 0 : i32
    %c0_i32_0 = arith.constant 0 : i32
    %c0_i32_1 = arith.constant 0 : i32
    return %c0_i32, %c0_i32_0 : i32, i32
  }
  func.func @transform_15(%arg0: i32) -> (i32, i32) {
    %c0_i32 = arith.constant 0 : i32
    %c0_i32_0 = arith.constant 0 : i32
    %c0_i32_1 = arith.constant 0 : i32
    return %c0_i32, %c0_i32_0 : i32, i32
  }
  func.func @transform_16(%arg0: i32) -> (i32, i32) {
    %c0_i32 = arith.constant 0 : i32
    %c0_i32_0 = arith.constant 0 : i32
    %c0_i32_1 = arith.constant 0 : i32
    return %c0_i32, %c0_i32_0 : i32, i32
  }
  func.func @transform_17(%arg0: i32) -> (i32, i32) {
    %c0_i32 = arith.constant 0 : i32
    %c0_i32_0 = arith.constant 0 : i32
    %c0_i32_1 = arith.constant 0 : i32
    return %c0_i32, %c0_i32_0 : i32, i32
  }
  func.func @transform_18(%arg0: i32) -> (i32, i32) {
    %c0_i32 = arith.constant 0 : i32
    %c0_i32_0 = arith.constant 0 : i32
    %c0_i32_1 = arith.constant 0 : i32
    return %c0_i32, %c0_i32_0 : i32, i32
  }
  func.func @transform_19(%arg0: i32) -> (i32, i32, i32) {
    %c0_i32 = arith.constant 0 : i32
    %c0_i32_0 = arith.constant 0 : i32
    %c0_i32_1 = arith.constant 0 : i32
    return %arg0, %c0_i32, %c0_i32_0 : i32, i32, i32
  }
  func.func @transform_20(%arg0: i32) -> (i32, i32) {
    %c0_i32 = arith.constant 0 : i32
    %c0_i32_0 = arith.constant 0 : i32
    %c0_i32_1 = arith.constant 0 : i32
    return %c0_i32, %c0_i32_0 : i32, i32
  }
}

</mosaic_0001>

<bundles_post_ra>
// kernel: squeeze.28
= control target key start
LH: loop header
LB: loop body
LE: loop exit
PB: predicated region body
PF: predicated region fallthrough
CT: control target
= control target key end

     0   :  { %vm17_vm0 = vcmask 64512   ;;  %s62_s0 = inlined_call_operand.vmem [shape: f32[8,3,3], index: 0, kind: input, shape index: {}]   ;;  %s63_s1 = inlined_call_operand.vmem [shape: f32[8,9], index: 1, kind: output, shape index: {}]  }
   0x1   :  { %v30_v0 = vld [vmem:[%s62_s0 + $0x8] sm:$0xf]  ;;  %v31_v1 = vld [vmem:[%s62_s0 + $0x4] sm:$0xf]  ;;  %v14_v2 = vld [vmem:[%s62_s0] sm:$0xf] }
   0x2   :  { %9 = vst [vmem:[#allocation0] sm:$0xf] %v30_v0  ;;  %13 = vst [vmem:[#allocation0 + $0x10] sm:$0xf] %v31_v1 }
   0x3   :  { %15 = vst [vmem:[#allocation0 + $0x8] sm:$0xf] %v14_v2 }
   0x9   :  { %v20_v4 = vld [vmem:[#allocation0 + $0x10] sm:$0x7]   ;;  %v25_v5 = vld [vmem:[#allocation0] sm:$0x7]  }
   0xa   :  { %v16_v3 = vld [vmem:[#allocation0 + $0x8] sm:$0x7]   ;;  %32 = vst.msk [vmem:[%s63_s1 + $0x3] sm:$0x7] %vm17_vm0, %v20_v4   ;;  %33 = vst.msk [vmem:[%s63_s1 + $0x6] sm:$0x7] %vm17_vm0, %v25_v5  }
   0xb   :  { %18 = vst.msk [vmem:[%s63_s1] sm:$0x7] %vm17_vm0, %v16_v3  }

// kernel: _lambda_.1
= control target key start
LH: loop header
LB: loop body
LE: loop exit
PB: predicated region body
PF: predicated region fallthrough
CT: control target
= control target key end

     0   :  { %s10543_s0 = inlined_call_operand.vmem [shape: f32[3,4,128], index: 0, kind: input, shape index: {}]   ;;  %s10544_s1 = inlined_call_operand.vmem [shape: f32[128,128], index: 1, kind: input, shape index: {}]   ;;  %s10545_s2 = inlined_call_operand.vmem [shape: f32[9,128,128], index: 2, kind: input, shape index: {}]   ;;  %s10546_s3 = inlined_call_operand.vmem [shape: f32[24,4], index: 3, kind: input, shape index: {}]   ;;  %s10547_s4 = inlined_call_operand.vmem [shape: f32[24,8], index: 4, kind: input, shape index: {}]   ;;  %s10548_s5 = inlined_call_operand.vmem [shape: f32[24,1], index: 5, kind: input, shape index: {}]   ;;  %s10549_s6 = inlined_call_operand.vmem [shape: f32[4,9], index: 6, kind: input, shape index: {}]   ;;  %s10550_s7 = inlined_call_operand.vmem [shape: f32[4,1], index: 7, kind: input, shape index: {}]   ;;  %s10551_s8 = inlined_call_operand.vmem [shape: f32[8,9], index: 8, kind: input, shape index: {}]   ;;  %s10552_s9 = inlined_call_operand.vmem [shape: f32[8,4], index: 9, kind: input, shape index: {}]   ;;  %s10553_s10 = inlined_call_operand.vmem [shape: f32[8,8], index: 10, kind: input, shape index: {}]   ;;  %s10554_s11 = inlined_call_operand.vmem [shape: f32[24,8], index: 11, kind: input, shape index: {}]   ;;  %s10555_s12 = inlined_call_operand.vmem [shape: f32[24,8], index: 12, kind: input, shape index: {}]   ;;  %s10556_s13 = inlined_call_operand.vmem [shape: f32[24,1], index: 13, kind: input, shape index: {}]   ;;  %s10557_s14 = inlined_call_operand.vmem [shape: f32[8,9], index: 14, kind: input, shape index: {}]   ;;  %s10558_s15 = inlined_call_operand.vmem [shape: f32[8,1], index: 15, kind: input, shape index: {}]   ;;  %s10559_s16 = inlined_call_operand.vmem [shape: f32[8,9], index: 16, kind: input, shape index: {}]   ;;  %s10560_s17 = inlined_call_operand.vmem [shape: f32[8,8], index: 17, kind: input, shape index: {}]   ;;  %s10561_s18 = inlined_call_operand.vmem [shape: f32[8,8], index: 18, kind: input, shape index: {}]   ;;  %s10562_s19 = inlined_call_operand.vmem [shape: f32[3,8,128], index: 19, kind: output, shape index: {0}]   ;;  %s10563_s20 = inlined_call_operand.vmem [shape: f32[8,128], index: 20, kind: output, shape index: {1}]  }
   0x1   :  { %10652 = sst [smem:[#allocation75_spill]] %s10543_s0 }
   0x2   :  { %10653 = sst [smem:[#allocation76_spill]] %s10544_s1  ;;  %s7584_s1 = smov 0  }
   0x3   :  { %10654 = sst [smem:[#allocation77_spill]] %s10545_s2 }
   0x4   :  { %10655 = sst [smem:[#allocation78_spill]] %s10546_s3 }
   0x5   :  { %10656 = sst [smem:[#allocation79_spill]] %s10547_s4 }
   0x6 LB: > { %s4830_s22 = sadd.s32 4294967295, %s7465_s1   ;;  %p4834_p0 = scmp.ge.s32.totalorder %s7465_s1, 1  ;;  %s7465_s1 = sphi %s7584_s1, %s31_s1  }
   0x7   : > { %p559_p1 = scmp.lt.s32.totalorder %s7465_s1, 4 }
   0x9   : > { %p560_p2 = pnand %p4834_p0, %p559_p1 }
   0xb   : > { %563 = sbr.rel (%p560_p2) target bundleno = 1908 (0x774), region = 96 }
  0x10   : > { %p615_p3 = scmp.lt.s32.totalorder %s4830_s22, 2  ;;  %s10657_s26 = sld [smem:[#allocation75_spill]] }
  0x11   : > { %p4837_p4 = scmp.ne.s32.totalorder %s4830_s22, 0 }
  0x12   : > { %s616_s23 = scalar_select %p615_p3, %s4830_s22, 2 }
  0x13   : > { %626 = sbr.rel (%p4837_p4) target bundleno = 27 (0x1b), region = 100 }
  0x14   : > { %s4835_s24 = sshll.u32 %s616_s23, 2  ;;  %s4836_s2 = sshll.u32 %s616_s23, 3 }
  0x15   : > { %s7600_s29 = scalar_lea.vmem %s10562_s19, %s4836_s2 }
  0x16   : > { %s7595_s27 = scalar_lea.vmem %s10657_s26, %s4835_s24 }
  0x18   : > { %v7467_v0 = vmov 0.0  }
  0x19   : > { %627 = vst [vmem:[#allocation2] sm:$0xff] %v7467_v0  ;;  %628 = vst [vmem:[#allocation3] sm:$0xff] %v7467_v0 }
  0x1a   : > { %629 = vst [vmem:[#allocation4] sm:$0xff] %v7467_v0  ;;  %630 = vst [vmem:[#allocation5] sm:$0xff] %v7467_v0 }
  0x1b PF: > { %s10658_s21 = sld [smem:[#allocation76_spill]]  ;;  %v7468_v2 = vmov 0.0   ;;  %v7683_v18 = vld [vmem:[%s7595_s27] sm:$0xf]  ;;  %vm7469_vm0 = vmmov 0   ;;  %v10581_v20 = vmov 2  }
  0x1c   : > { %5824 = vmatprep.subr.mxu0 %v7468_v2  ;;  %5859 = vmatprep.subr.mxu1 %v7468_v2  ;;  %v1019_v21 = vld [vmem:[%s10549_s6] sm:$0xf]  ;;  %v10579_v22 = vmov 0   ;;  %v7472_v24 = vmov 1   ;;  %v10575_v25 = vmov 4   ;;  %v10574_v26 = vmov 5  }
  0x1d   : > { %5856 = vmatprep.mubr.msk.f32.mxu0 %vm7469_vm0, %v7468_v2  ;;  %5891 = vmatprep.mubr.msk.f32.mxu1 %vm7469_vm0, %v7468_v2  ;;  %v1864_v23 = vld [vmem:[%s10551_s8] sm:$0xff]  ;;  %v10572_v27 = vmov 6   ;;  %v10570_v28 = vmov 8   ;;  %v10577_v30 = vmov 3   ;;  %v10568_v31 = vmov 7   ;;  %v981_v33 = vld [vmem:[%s10548_s5 + $0x8] sm:$0xff] }
  0x1e   : > { %7310 = vset.pattern.permute.xlu1 %v10581_v20  ;;  %7308 = vset.pattern.permute.xlu0 %v10579_v22  ;;  %v980_v29 = vld [vmem:[%s10548_s5] sm:$0xff]  ;;  %v982_v34 = vld [vmem:[%s10548_s5 + $0x10] sm:$0xff]  ;;  %vm896_vm1 = vcmask 1043456   ;;  %s10659_s23 = sld [smem:[#allocation79_spill]]  ;;  %vm796_vm2 = vcmask 64512   ;;  %vm886_vm3 = vcmask 31744  }
  0x1f   : > { %1294 = vperm.xlu1 %7310, %v1019_v21   ;;  %1108 = vperm.xlu0 %7308, %v1019_v21   ;;  %v1857_v32 = vld [vmem:[%s10550_s7] sm:$0xf]  ;;  %s10660_s2 = sld [smem:[#allocation78_spill]] }
  0x20   : > { %v632_v19 = vld [vmem:[#allocation2] sm:$0xff]  ;;  %s10661_s26 = sld [smem:[#allocation77_spill]] }
  0x21   : > { %v649_v1 = vld [vmem:[%s10658_s21 + $0x78] sm:$0xff]  ;;  %v648_v3 = vld [vmem:[%s10658_s21 + $0x70] sm:$0xff]  ;;  %v647_v4 = vld [vmem:[%s10658_s21 + $0x68] sm:$0xff] }
  0x22   : > { %5825 = vmatpush3.msra.mxu0 %v649_v1  ;;  %5860 = vmatpush3.msra.mxu1 %v649_v1  ;;  %v646_v5 = vld [vmem:[%s10658_s21 + $0x60] sm:$0xff]  ;;  %v645_v6 = vld [vmem:[%s10658_s21 + $0x58] sm:$0xff]  ;;  %v644_v7 = vld [vmem:[%s10658_s21 + $0x50] sm:$0xff] }
  0x23   : > { %5826 = vmatprep.subr.mxu0 %v7468_v2  ;;  %5861 = vmatprep.subr.mxu1 %v7468_v2  ;;  %v643_v8 = vld [vmem:[%s10658_s21 + $0x48] sm:$0xff]  ;;  %v642_v9 = vld [vmem:[%s10658_s21 + $0x40] sm:$0xff]  ;;  %v641_v10 = vld [vmem:[%s10658_s21 + $0x38] sm:$0xff] }
  0x24   : > { %5827 = vmatpush3.msra.mxu0 %v648_v3  ;;  %5862 = vmatpush3.msra.mxu1 %v648_v3  ;;  %v640_v11 = vld [vmem:[%s10658_s21 + $0x30] sm:$0xff]  ;;  %v639_v12 = vld [vmem:[%s10658_s21 + $0x28] sm:$0xff]  ;;  %v638_v13 = vld [vmem:[%s10658_s21 + $0x20] sm:$0xff] }
  0x25   : > { %5828 = vmatprep.subr.mxu0 %v7468_v2  ;;  %5863 = vmatprep.subr.mxu1 %v7468_v2  ;;  %v637_v14 = vld [vmem:[%s10658_s21 + $0x18] sm:$0xff]  ;;  %v636_v15 = vld [vmem:[%s10658_s21 + $0x10] sm:$0xff]  ;;  %v635_v16 = vld [vmem:[%s10658_s21 + $0x8] sm:$0xff] }
  0x26   : > { %5829 = vmatpush3.msra.mxu0 %v647_v4  ;;  %5864 = vmatpush3.msra.mxu1 %v647_v4  ;;  %v634_v17 = vld [vmem:[%s10658_s21] sm:$0xff]  ;;  %v7739_v39 = vld [vmem:[%s10661_s26 + $0x78] sm:$0xff]  ;;  %v7753_v43 = vld [vmem:[%s10661_s26 + $0x70] sm:$0xff] }
  0x27   : > { %5830 = vmatprep.subr.mxu0 %v7468_v2  ;;  %5865 = vmatprep.subr.mxu1 %v7468_v2  ;;  %v793_v35 = vld [vmem:[%s10659_s23] sm:$0xff]  ;;  %v7744_v40 = vld [vmem:[%s10661_s26 + $0xf8] sm:$0xff]  ;;  %v7758_v44 = vld [vmem:[%s10661_s26 + $0xf0] sm:$0xff] }
  0x28   : > { %5831 = vmatpush3.msra.mxu0 %v646_v5  ;;  %5866 = vmatpush3.msra.mxu1 %v646_v5  ;;  %v790_v38 = vld [vmem:[%s10660_s2] sm:$0xff]  ;;  %v7767_v45 = vld [vmem:[%s10661_s26 + $0x68] sm:$0xff]  ;;  %v7795_v49 = vld [vmem:[%s10661_s26 + $0x58] sm:$0xff] }
  0x29   : > { %5832 = vmatprep.subr.mxu0 %v7468_v2  ;;  %5867 = vmatprep.subr.mxu1 %v7468_v2  ;;  %v7772_v46 = vld [vmem:[%s10661_s26 + $0xe8] sm:$0xff]  ;;  %v7781_v47 = vld [vmem:[%s10661_s26 + $0x60] sm:$0xff]  ;;  %v7800_v50 = vld [vmem:[%s10661_s26 + $0xd8] sm:$0xff] }
  0x2a   : > { %5833 = vmatpush3.msra.mxu0 %v645_v6  ;;  %5868 = vmatpush3.msra.mxu1 %v645_v6  ;;  %v7786_v48 = vld [vmem:[%s10661_s26 + $0xe0] sm:$0xff]  ;;  %v7809_v51 = vld [vmem:[%s10661_s26 + $0x50] sm:$0xff]  ;;  %v7823_v53 = vld [vmem:[%s10661_s26 + $0x48] sm:$0xff] }
  0x2b   : > { %5834 = vmatprep.subr.mxu0 %v7468_v2  ;;  %5869 = vmatprep.subr.mxu1 %v7468_v2  ;;  %v7814_v52 = vld [vmem:[%s10661_s26 + $0xd0] sm:$0xff]  ;;  %v7828_v54 = vld [vmem:[%s10661_s26 + $0xc8] sm:$0xff]  ;;  %v7837_v55 = vld [vmem:[%s10661_s26 + $0x40] sm:$0xff] }
  0x2c   : > { %5835 = vmatpush3.msra.mxu0 %v644_v7  ;;  %5870 = vmatpush3.msra.mxu1 %v644_v7  ;;  %v7842_v56 = vld [vmem:[%s10661_s26 + $0xc0] sm:$0xff]  ;;  %v7851_v57 = vld [vmem:[%s10661_s26 + $0x38] sm:$0xff]  ;;  %v7865_v59 = vld [vmem:[%s10661_s26 + $0x30] sm:$0xff] }
  0x2d   : > { %5836 = vmatprep.subr.mxu0 %v7468_v2  ;;  %5871 = vmatprep.subr.mxu1 %v7468_v2  ;;  %v7856_v58 = vld [vmem:[%s10661_s26 + $0xb8] sm:$0xff]  ;;  %v7870_v60 = vld [vmem:[%s10661_s26 + $0xb0] sm:$0xff]  ;;  %v7879_v61 = vld [vmem:[%s10661_s26 + $0x28] sm:$0xff] }
  0x2e   : > { %5837 = vmatpush3.msra.mxu0 %v643_v8  ;;  %5872 = vmatpush3.msra.mxu1 %v643_v8  ;;  %v7884_v62 = vld [vmem:[%s10661_s26 + $0xa8] sm:$0xff]  ;;  %v7898_v0 = vld [vmem:[%s10661_s26 + $0x20] sm:$0xff]  ;;  %v7918_v4 = vld [vmem:[%s10661_s26 + $0x18] sm:$0xff] }
  0x2f   : > { %5838 = vmatprep.subr.mxu0 %v7468_v2  ;;  %5873 = vmatprep.subr.mxu1 %v7468_v2  ;;  %v794_v63 = vld [vmem:[%s10659_s23 + $0x8] sm:$0xff]  ;;  %v7903_v1 = vld [vmem:[%s10661_s26 + $0xa0] sm:$0xff]  ;;  %v7923_v5 = vld [vmem:[%s10661_s26 + $0x98] sm:$0xff] }
  0x30   : > { %5839 = vmatpush3.msra.mxu0 %v642_v9  ;;  %5874 = vmatpush3.msra.mxu1 %v642_v9  ;;  %v791_v3 = vld [vmem:[%s10660_s2 + $0x8] sm:$0xff]  ;;  %v795_v6 = vld [vmem:[%s10659_s23 + $0x10] sm:$0xff] }
  0x31   : > { %5840 = vmatprep.subr.mxu0 %v7468_v2  ;;  %5875 = vmatprep.subr.mxu1 %v7468_v2  ;;  %v7938_v7 = vld [vmem:[%s10661_s26 + $0x10] sm:$0xff] }
  0x32   : > { %5841 = vmatpush3.msra.mxu0 %v641_v10  ;;  %5876 = vmatpush3.msra.mxu1 %v641_v10  ;;  %v7943_v8 = vld [vmem:[%s10661_s26 + $0x90] sm:$0xff]  ;;  %v7958_v10 = vld [vmem:[%s10661_s26 + $0x8] sm:$0xff] }
  0x33   : > { %5842 = vmatprep.subr.mxu0 %v7468_v2  ;;  %5877 = vmatprep.subr.mxu1 %v7468_v2  ;;  %v792_v9 = vld [vmem:[%s10660_s2 + $0x10] sm:$0xff] }
  0x34   : > { %5843 = vmatpush3.msra.mxu0 %v640_v11  ;;  %5878 = vmatpush3.msra.mxu1 %v640_v11  ;;  %v7963_v11 = vld [vmem:[%s10661_s26 + $0x88] sm:$0xff] }
  0x35   : > { %5844 = vmatprep.subr.mxu0 %v7468_v2  ;;  %5879 = vmatprep.subr.mxu1 %v7468_v2 }
  0x36   : > { %5845 = vmatpush3.msra.mxu0 %v639_v12  ;;  %5880 = vmatpush3.msra.mxu1 %v639_v12  ;;  %v7973_v12 = vld [vmem:[%s10661_s26] sm:$0xff] }
  0x37   : > { %5846 = vmatprep.subr.mxu0 %v7468_v2  ;;  %5881 = vmatprep.subr.mxu1 %v7468_v2 }
  0x38   : > { %5847 = vmatpush3.msra.mxu0 %v638_v13  ;;  %5882 = vmatpush3.msra.mxu1 %v638_v13  ;;  %v7980_v13 = vld [vmem:[%s10661_s26 + $0x80] sm:$0xff] }
  0x39   : > { %5848 = vmatprep.subr.mxu0 %v7468_v2  ;;  %5883 = vmatprep.subr.mxu1 %v7468_v2 }
  0x3a   : > { %5849 = vmatpush3.msra.mxu0 %v637_v14  ;;  %5884 = vmatpush3.msra.mxu1 %v637_v14  ;;  %v7992_v14 = vld [vmem:[%s10661_s26 + $0x178] sm:$0xff] }
  0x3b   : > { %5850 = vmatprep.subr.mxu0 %v7468_v2  ;;  %5885 = vmatprep.subr.mxu1 %v7468_v2 }
  0x3c   : > { %5851 = vmatpush3.msra.mxu0 %v636_v15  ;;  %5886 = vmatpush3.msra.mxu1 %v636_v15  ;;  %v7997_v15 = vld [vmem:[%s10661_s26 + $0x1f8] sm:$0xff] }
  0x3d   : > { %5852 = vmatprep.subr.mxu0 %v7468_v2  ;;  %5887 = vmatprep.subr.mxu1 %v7468_v2 }
  0x3e   : > { %5853 = vmatpush3.msra.mxu0 %v635_v16  ;;  %5888 = vmatpush3.msra.mxu1 %v635_v16  ;;  %v8007_v16 = vld [vmem:[%s10661_s26 + $0x170] sm:$0xff] }
  0x3f   : > { %5854 = vmatprep.subr.mxu0 %v7468_v2  ;;  %5889 = vmatprep.subr.mxu1 %v7468_v2 }
  0x40   : > { %5855 = vmatpush3.msra.mxu0 %v634_v17  ;;  %5890 = vmatpush3.msra.mxu1 %v634_v17  ;;  %v8012_v17 = vld [vmem:[%s10661_s26 + $0x1f0] sm:$0xff] }
  0x41   : > { %5857 = vmatmul.mubr.f32.vlgmr.msra.gmra.mxu0 %v7683_v18  ;;  %5892 = vmatmul.mubr.f32.vlgmr.msra.gmra.mxu1 %v632_v19  ;;  %v8021_v19 = vld [vmem:[%s10661_s26 + $0x168] sm:$0xff] }
  0x42   : > { %5894 = vmatprep.subr.mxu0 %v7468_v2  ;;  %5905 = vmatprep.subr.mxu1 %v7468_v2 }
  0x43   : > { %5896 = vmatprep.mubr.msk.f32.mxu0 %vm7469_vm0, %v7468_v2  ;;  %5907 = vmatprep.mubr.msk.f32.mxu1 %vm7469_vm0, %v7468_v2 }
  0x44   : > { %7311 = vset.pattern.permute.xlu1 %v10579_v22  ;;  %7309 = vset.pattern.permute.xlu0 %v7472_v24 }
  0x45   : > { %1937 = vperm.xlu1 %7311, %v1864_v23   ;;  %1201 = vperm.xlu0 %7309, %v1019_v21  }
  0x49   : > { %7312 = vset.pattern.permute.xlu1 %v7472_v24  ;;  %7313 = vset.pattern.permute.xlu0 %v10577_v30  ;;  %v8180_v30 = vld [vmem:[%s10661_s26 + $0x190] sm:$0xff] }
  0x4a   : > { %2013 = vperm.xlu1 %7312, %v1864_v23   ;;  %1387 = vperm.xlu0 %7313, %v1019_v21   ;;  %10671 = vst [vmem:[#allocation15_spill] sm:$0xff] %v8180_v30 }
  0x4e   : > { %7314 = vset.pattern.permute.xlu1 %v10581_v20  ;;  %2165 = vperm.xlu0 %7313, %v1864_v23   ;;  %v8194_v20 = vld [vmem:[%s10661_s26 + $0x188] sm:$0xff] }
  0x4f   : > { %2089 = vperm.xlu1 %7314, %v1864_v23   ;;  %10672 = vst [vmem:[#allocation16_spill] sm:$0xff] %v8194_v20 }
  0x52   : > { %7317 = vset.pattern.permute.xlu0 %v10575_v25 }
  0x53   : > { %7315 = vset.pattern.permute.xlu1 %v10575_v25  ;;  %2241 = vperm.xlu0 %7317, %v1864_v23   ;;  %v8175_v25 = vld [vmem:[%s10661_s26 + $0x110] sm:$0xff] }
  0x54   : > { %1480 = vperm.xlu1 %7315, %v1019_v21  }
  0x57   : > { %7320 = vset.pattern.permute.xlu0 %v10568_v31  ;;  %v8147_v31 = vld [vmem:[%s10661_s26 + $0x120] sm:$0xff] }
  0x58   : > { %7316 = vset.pattern.permute.xlu1 %v10574_v26  ;;  %1759 = vperm.xlu0 %7320, %v1019_v21  }
  0x59   : > { %1573 = vperm.xlu1 %7316, %v1019_v21  }
  0x5c   : > { %2469 = vperm.xlu0 %7320, %v1864_v23  }
  0x5d   : > { %7318 = vset.pattern.permute.xlu1 %v10572_v27 }
  0x5e   : > { %1666 = vperm.xlu1 %7318, %v1019_v21  }
  0x60   : > { %7323 = vset.pattern.permute.xlu0 %v10579_v22 }
  0x61   : > { %1860 = vperm.xlu0 %7323, %v1857_v32   ;;  %v8054_v32 = vld [vmem:[%s10661_s26 + $0x1d8] sm:$0xff] }
  0x62   : > { %7319 = vset.pattern.permute.xlu1 %v10574_v26  ;;  %10662 = vst [vmem:[#allocation6_spill] sm:$0xff] %v8054_v32  ;;  %v8166_v26 = vld [vmem:[%s10661_s26 + $0x198] sm:$0xff] }
  0x63   : > { %2317 = vperm.xlu1 %7319, %v1864_v23   ;;  %10670 = vst [vmem:[#allocation14_spill] sm:$0xff] %v8166_v26 }
  0x65   : > { %995 = vperm.xlu0 %7323, %v982_v34   ;;  %v8068_v34 = vld [vmem:[%s10661_s26 + $0x1d0] sm:$0xff] }
  0x66   : > { %10663 = vst [vmem:[#allocation7_spill] sm:$0xff] %v8068_v34 }
  0x67   : > { %7321 = vset.pattern.permute.xlu1 %v10572_v27  ;;  %v8161_v27 = vld [vmem:[%s10661_s26 + $0x118] sm:$0xff] }
  0x68   : > { %2393 = vperm.xlu1 %7321, %v1864_v23  }
  0x69   : > { %7325 = vset.pattern.permute.xlu0 %v7472_v24  ;;  %v8040_v24 = vld [vmem:[%s10661_s26 + $0x1e0] sm:$0xff] }
  0x6c   : > { %7322 = vset.pattern.permute.xlu1 %v10570_v28  ;;  %v8152_v28 = vld [vmem:[%s10661_s26 + $0x1a0] sm:$0xff] }
  0x6d   : > { %1852 = vperm.xlu1 %7322, %v1019_v21   ;;  %v8026_v21 = vld [vmem:[%s10661_s26 + $0x1e8] sm:$0xff]  ;;  %10669 = vst [vmem:[#allocation13_spill] sm:$0xff] %v8152_v28 }
  0x71   : > { %2545 = vperm.xlu1 %7322, %v1864_v23   ;;  %v8035_v23 = vld [vmem:[%s10661_s26 + $0x160] sm:$0xff] }
  0x75   : > { %7324 = vset.pattern.permute.xlu1 %v10579_v22  ;;  %v8189_v22 = vld [vmem:[%s10661_s26 + $0x108] sm:$0xff] }
  0x76   : > { %985 = vperm.xlu1 %7324, %v980_v29   ;;  %v8049_v29 = vld [vmem:[%s10661_s26 + $0x158] sm:$0xff] }
  0x7a   : > { %990 = vperm.xlu1 %7324, %v981_v33   ;;  %v8063_v33 = vld [vmem:[%s10661_s26 + $0x150] sm:$0xff] }
 0x101   : > { %v716_v36 = vpop.f32.mrf.mxu0  ;;  %v786_v37 = vpop.f32.mrf.mxu1 }
 0x102   : > { %5895 = vmatpush3.msra.mxu0 %v786_v37  ;;  %5906 = vmatpush3.msk.msra.mxu1 %vm896_vm1, %v716_v36  ;;  %v8082_v36 = vld [vmem:[%s10661_s26 + $0x1c8] sm:$0xff]  ;;  %v8091_v37 = vld [vmem:[%s10661_s26 + $0x140] sm:$0xff] }
 0x103   : > { %v5858_v41 = vpop.f32.mrf.mxu0  ;;  %v5893_v42 = vpop.f32.mrf.mxu1  ;;  %5897 = vmatmul.mubr.msk.f32.vlgmr.msra.gmra.mxu0 %vm796_vm2, %v793_v35  ;;  %5916 = vmatprep.subr.mxu0 %v7468_v2  ;;  %v8077_v35 = vld [vmem:[%s10661_s26 + $0x148] sm:$0xff]  ;;  %10664 = vst [vmem:[#allocation8_spill] sm:$0xff] %v8082_v36 }
 0x104   : > { %5951 = vmatprep.subr.mxu1 %v7468_v2  ;;  %5908 = vmatmul.mubr.msk.f32.vlgmr.msra.gmra.mxu1 %vm886_vm3, %v790_v38  ;;  %v8096_v38 = vld [vmem:[%s10661_s26 + $0x1c0] sm:$0xff]  ;;  %v8105_v41 = vld [vmem:[%s10661_s26 + $0x138] sm:$0xff] }
 0x105   : > { %5917 = vmatpush3.msra.mxu0 %v7739_v39  ;;  %5952 = vmatpush3.msra.mxu1 %v7744_v40  ;;  %10665 = vst [vmem:[#allocation9_spill] sm:$0xff] %v8096_v38  ;;  %v8110_v42 = vld [vmem:[%s10661_s26 + $0x1b8] sm:$0xff] }
 0x106   : > { %5918 = vmatprep.subr.mxu0 %v7468_v2  ;;  %5953 = vmatprep.subr.mxu1 %v7468_v2  ;;  %10666 = vst [vmem:[#allocation10_spill] sm:$0xff] %v8110_v42 }
 0x107   : > { %5919 = vmatpush3.msra.mxu0 %v7753_v43  ;;  %5954 = vmatpush3.msra.mxu1 %v7758_v44 }
 0x108   : > { %5920 = vmatprep.subr.mxu0 %v7468_v2  ;;  %5955 = vmatprep.subr.mxu1 %v7468_v2 }
 0x109   : > { %5921 = vmatpush3.msra.mxu0 %v7767_v45  ;;  %5956 = vmatpush3.msra.mxu1 %v7772_v46 }
 0x10a   : > { %5922 = vmatprep.subr.mxu0 %v7468_v2  ;;  %5957 = vmatprep.subr.mxu1 %v7468_v2 }
 0x10b   : > { %5923 = vmatpush3.msra.mxu0 %v7781_v47  ;;  %5958 = vmatpush3.msra.mxu1 %v7786_v48 }
 0x10c   : > { %5924 = vmatprep.subr.mxu0 %v7468_v2  ;;  %5959 = vmatprep.subr.mxu1 %v7468_v2 }
 0x10d   : > { %5925 = vmatpush3.msra.mxu0 %v7795_v49  ;;  %5960 = vmatpush3.msra.mxu1 %v7800_v50 }
 0x10e   : > { %5926 = vmatprep.subr.mxu0 %v7468_v2  ;;  %5961 = vmatprep.subr.mxu1 %v7468_v2 }
 0x10f   : > { %5927 = vmatpush3.msra.mxu0 %v7809_v51  ;;  %5962 = vmatpush3.msra.mxu1 %v7814_v52 }
 0x110   : > { %5928 = vmatprep.subr.mxu0 %v7468_v2  ;;  %5963 = vmatprep.subr.mxu1 %v7468_v2 }
 0x111   : > { %5929 = vmatpush3.msra.mxu0 %v7823_v53  ;;  %5964 = vmatpush3.msra.mxu1 %v7828_v54 }
 0x112   : > { %5930 = vmatprep.subr.mxu0 %v7468_v2  ;;  %5965 = vmatprep.subr.mxu1 %v7468_v2 }
 0x113   : > { %5931 = vmatpush3.msra.mxu0 %v7837_v55  ;;  %5966 = vmatpush3.msra.mxu1 %v7842_v56 }
 0x114   : > { %5932 = vmatprep.subr.mxu0 %v7468_v2  ;;  %5967 = vmatprep.subr.mxu1 %v7468_v2 }
 0x115   : > { %5933 = vmatpush3.msra.mxu0 %v7851_v57  ;;  %5968 = vmatpush3.msra.mxu1 %v7856_v58 }
 0x116   : > { %5934 = vmatprep.subr.mxu0 %v7468_v2  ;;  %5969 = vmatprep.subr.mxu1 %v7468_v2 }
 0x117   : > { %5935 = vmatpush3.msra.mxu0 %v7865_v59  ;;  %5970 = vmatpush3.msra.mxu1 %v7870_v60 }
 0x118   : > { %5936 = vmatprep.subr.mxu0 %v7468_v2  ;;  %5971 = vmatprep.subr.mxu1 %v7468_v2 }
 0x119   : > { %5937 = vmatpush3.msra.mxu0 %v7879_v61  ;;  %5972 = vmatpush3.msra.mxu1 %v7884_v62 }
 0x11a   : > { %5899 = vmatprep.mubr.msk.f32.mxu0 %vm7469_vm0, %v7468_v2  ;;  %5938 = vmatprep.subr.mxu0 %v7468_v2 }
 0x11b   : > { %5973 = vmatprep.subr.mxu1 %v7468_v2  ;;  %5900 = vmatmul.mubr.msk.f32.gmra.mxu0 %vm796_vm2, %v794_v63  ;;  %v8119_v63 = vld [vmem:[%s10661_s26 + $0x130] sm:$0xff] }
 0x11c   : > { %5939 = vmatpush3.msra.mxu0 %v7898_v0  ;;  %5974 = vmatpush3.msra.mxu1 %v7903_v1 }
 0x11d   : > { %5910 = vmatprep.mubr.msk.f32.mxu1 %vm7469_vm0, %v7468_v2  ;;  %5940 = vmatprep.subr.mxu0 %v7468_v2 }
 0x11e   : > { %5975 = vmatprep.subr.mxu1 %v7468_v2  ;;  %5911 = vmatmul.mubr.msk.f32.gmra.mxu1 %vm886_vm3, %v791_v3  ;;  %v8124_v3 = vld [vmem:[%s10661_s26 + $0x1b0] sm:$0xff] }
 0x11f   : > { %5941 = vmatpush3.msra.mxu0 %v7918_v4  ;;  %5976 = vmatpush3.msra.mxu1 %v7923_v5  ;;  %10667 = vst [vmem:[#allocation11_spill] sm:$0xff] %v8124_v3 }
 0x120   : > { %5902 = vmatprep.mubr.msk.f32.mxu0 %vm7469_vm0, %v7468_v2  ;;  %5942 = vmatprep.subr.mxu0 %v7468_v2 }
 0x121   : > { %5977 = vmatprep.subr.mxu1 %v7468_v2  ;;  %5903 = vmatmul.mubr.msk.f32.gmra.mxu0 %vm796_vm2, %v795_v6  ;;  %v8133_v6 = vld [vmem:[%s10661_s26 + $0x128] sm:$0xff] }
 0x122   : > { %5943 = vmatpush3.msra.mxu0 %v7938_v7  ;;  %5978 = vmatpush3.msra.mxu1 %v7943_v8 }
 0x123   : > { %5913 = vmatprep.mubr.msk.f32.mxu1 %vm7469_vm0, %v7468_v2  ;;  %5944 = vmatprep.subr.mxu0 %v7468_v2 }
 0x124   : > { %5979 = vmatprep.subr.mxu1 %v7468_v2  ;;  %5914 = vmatmul.mubr.msk.f32.gmra.mxu1 %vm886_vm3, %v792_v9  ;;  %v8138_v9 = vld [vmem:[%s10661_s26 + $0x1a8] sm:$0xff] }
 0x125   : > { %5945 = vmatpush3.msra.mxu0 %v7958_v10  ;;  %5980 = vmatpush3.msra.mxu1 %v7963_v11  ;;  %10668 = vst [vmem:[#allocation12_spill] sm:$0xff] %v8138_v9 }
 0x126   : > { %5946 = vmatprep.subr.mxu0 %v7468_v2  ;;  %5981 = vmatprep.subr.mxu1 %v7468_v2 }
 0x127   : > { %5947 = vmatpush3.msra.mxu0 %v7973_v12  ;;  %5948 = vmatprep.mubr.msk.f32.mxu0 %vm7469_vm0, %v7468_v2 }
 0x128   : > { %5982 = vmatpush3.msra.mxu1 %v7980_v13  ;;  %5949 = vmatmul.mubr.f32.vlgmr.msra.gmra.mxu0 %v7683_v18 }
 0x129   : > { %5983 = vmatprep.mubr.msk.f32.mxu1 %vm7469_vm0, %v7468_v2  ;;  %5986 = vmatprep.subr.mxu0 %v7468_v2 }
 0x12a   : > { %6021 = vmatprep.subr.mxu1 %v7468_v2  ;;  %5984 = vmatmul.mubr.f32.vlgmr.msra.gmra.mxu1 %v7683_v18 }
 0x12b   : > { %5987 = vmatpush3.msra.mxu0 %v7992_v14  ;;  %6022 = vmatpush3.msra.mxu1 %v7997_v15 }
 0x12c   : > { %5988 = vmatprep.subr.mxu0 %v7468_v2  ;;  %6023 = vmatprep.subr.mxu1 %v7468_v2 }
 0x12d   : > { %5989 = vmatpush3.msra.mxu0 %v8007_v16  ;;  %6024 = vmatpush3.msra.mxu1 %v8012_v17 }
 0x12e   : > { %5990 = vmatprep.subr.mxu0 %v7468_v2  ;;  %6025 = vmatprep.subr.mxu1 %v7468_v2 }
 0x12f   : > { %5991 = vmatpush3.msra.mxu0 %v8021_v19  ;;  %6026 = vmatpush3.msra.mxu1 %v8026_v21 }
 0x130   : > { %5992 = vmatprep.subr.mxu0 %v7468_v2  ;;  %6027 = vmatprep.subr.mxu1 %v7468_v2 }
 0x131   : > { %5993 = vmatpush3.msra.mxu0 %v8035_v23  ;;  %6028 = vmatpush3.msra.mxu1 %v8040_v24 }
 0x132   : > { %5994 = vmatprep.subr.mxu0 %v7468_v2  ;;  %6029 = vmatprep.subr.mxu1 %v7468_v2 }
 0x133   : > { %5995 = vmatpush3.msra.mxu0 %v8049_v29  ;;  %6030 = vmatpush3.msra.mxu1 %v8054_v32  ;;  %v8312_v32 = vld [vmem:[%s10661_s26 + $0x2c8] sm:$0xff] }
 0x134   : > { %5996 = vmatprep.subr.mxu0 %v7468_v2  ;;  %6031 = vmatprep.subr.mxu1 %v7468_v2  ;;  %10683 = vst [vmem:[#allocation27_spill] sm:$0xff] %v8312_v32 }
 0x135   : > { %5997 = vmatpush3.msra.mxu0 %v8063_v33  ;;  %6032 = vmatpush3.msra.mxu1 %v8068_v34  ;;  %v8298_v34 = vld [vmem:[%s10661_s26 + $0x2d0] sm:$0xff] }
 0x136   : > { %5998 = vmatprep.subr.mxu0 %v7468_v2  ;;  %6033 = vmatprep.subr.mxu1 %v7468_v2  ;;  %10681 = vst [vmem:[#allocation25_spill] sm:$0xff] %v8298_v34 }
 0x137   : > { %5999 = vmatpush3.msra.mxu0 %v8077_v35  ;;  %6034 = vmatpush3.msra.mxu1 %v8082_v36  ;;  %v8284_v36 = vld [vmem:[%s10661_s26 + $0x2d8] sm:$0xff] }
 0x138   : > { %6000 = vmatprep.subr.mxu0 %v7468_v2  ;;  %6035 = vmatprep.subr.mxu1 %v7468_v2  ;;  %10679 = vst [vmem:[#allocation23_spill] sm:$0xff] %v8284_v36 }
 0x139   : > { %6001 = vmatpush3.msra.mxu0 %v8091_v37  ;;  %6036 = vmatpush3.msra.mxu1 %v8096_v38  ;;  %v8270_v38 = vld [vmem:[%s10661_s26 + $0x2e0] sm:$0xff] }
 0x13a   : > { %6002 = vmatprep.subr.mxu0 %v7468_v2  ;;  %6037 = vmatprep.subr.mxu1 %v7468_v2  ;;  %10677 = vst [vmem:[#allocation21_spill] sm:$0xff] %v8270_v38 }
 0x13b   : > { %6003 = vmatpush3.msra.mxu0 %v8105_v41  ;;  %6038 = vmatpush3.msra.mxu1 %v8110_v42  ;;  %v8256_v42 = vld [vmem:[%s10661_s26 + $0x2e8] sm:$0xff] }
 0x13c   : > { %6004 = vmatprep.subr.mxu0 %v7468_v2  ;;  %6039 = vmatprep.subr.mxu1 %v7468_v2  ;;  %10676 = vst [vmem:[#allocation20_spill] sm:$0xff] %v8256_v42 }
 0x13d   : > { %6005 = vmatpush3.msra.mxu0 %v8119_v63  ;;  %6040 = vmatpush3.msra.mxu1 %v8124_v3  ;;  %v8251_v3 = vld [vmem:[%s10661_s26 + $0x268] sm:$0xff] }
 0x13e   : > { %6006 = vmatprep.subr.mxu0 %v7468_v2  ;;  %6041 = vmatprep.subr.mxu1 %v7468_v2 }
 0x13f   : > { %6007 = vmatpush3.msra.mxu0 %v8133_v6  ;;  %6042 = vmatpush3.msra.mxu1 %v8138_v9  ;;  %v8242_v9 = vld [vmem:[%s10661_s26 + $0x2f0] sm:$0xff] }
 0x140   : > { %6008 = vmatprep.subr.mxu0 %v7468_v2  ;;  %6043 = vmatprep.subr.mxu1 %v7468_v2  ;;  %10675 = vst [vmem:[#allocation19_spill] sm:$0xff] %v8242_v9 }
 0x141   : > { %6009 = vmatpush3.msra.mxu0 %v8147_v31  ;;  %6044 = vmatpush3.msra.mxu1 %v8152_v28  ;;  %v8210_v28 = vld [vmem:[%s10661_s26 + $0x180] sm:$0xff] }
 0x142   : > { %6010 = vmatprep.subr.mxu0 %v7468_v2  ;;  %6045 = vmatprep.subr.mxu1 %v7468_v2  ;;  %10673 = vst [vmem:[#allocation17_spill] sm:$0xff] %v8210_v28 }
 0x143   : > { %6011 = vmatpush3.msra.mxu0 %v8161_v27  ;;  %6046 = vmatpush3.msra.mxu1 %v8166_v26  ;;  %v8203_v26 = vld [vmem:[%s10661_s26 + $0x100] sm:$0xff] }
 0x144   : > { %6012 = vmatprep.subr.mxu0 %v7468_v2  ;;  %6047 = vmatprep.subr.mxu1 %v7468_v2 }
 0x145   : > { %6013 = vmatpush3.msra.mxu0 %v8175_v25  ;;  %6048 = vmatpush3.msra.mxu1 %v8180_v30  ;;  %v8227_v30 = vld [vmem:[%s10661_s26 + $0x2f8] sm:$0xff] }
 0x146   : > { %6014 = vmatprep.subr.mxu0 %v7468_v2  ;;  %6049 = vmatprep.subr.mxu1 %v7468_v2  ;;  %10674 = vst [vmem:[#allocation18_spill] sm:$0xff] %v8227_v30 }
 0x147   : > { %6015 = vmatpush3.msra.mxu0 %v8189_v22  ;;  %6050 = vmatpush3.msra.mxu1 %v8194_v20  ;;  %v8222_v20 = vld [vmem:[%s10661_s26 + $0x278] sm:$0xff] }
 0x148   : > { %6016 = vmatprep.subr.mxu0 %v7468_v2  ;;  %6051 = vmatprep.subr.mxu1 %v7468_v2 }
 0x149   : > { %6017 = vmatpush3.msra.mxu0 %v8203_v26  ;;  %6018 = vmatprep.mubr.msk.f32.mxu0 %vm7469_vm0, %v7468_v2 }
 0x14a   : > { %6052 = vmatpush3.msra.mxu1 %v8210_v28  ;;  %6019 = vmatmul.mubr.f32.vlgmr.msra.gmra.mxu0 %v7683_v18  ;;  %v8237_v28 = vld [vmem:[%s10661_s26 + $0x270] sm:$0xff] }
 0x14b   : > { %6053 = vmatprep.mubr.msk.f32.mxu1 %vm7469_vm0, %v7468_v2  ;;  %6056 = vmatprep.subr.mxu0 %v7468_v2 }
 0x14c   : > { %6091 = vmatprep.subr.mxu1 %v7468_v2  ;;  %6054 = vmatmul.mubr.f32.vlgmr.msra.gmra.mxu1 %v7683_v18 }
 0x14d   : > { %6057 = vmatpush3.msra.mxu0 %v8222_v20  ;;  %6092 = vmatpush3.msra.mxu1 %v8227_v30  ;;  %v8265_v30 = vld [vmem:[%s10661_s26 + $0x260] sm:$0xff] }
 0x14e   : > { %6058 = vmatprep.subr.mxu0 %v7468_v2  ;;  %6093 = vmatprep.subr.mxu1 %v7468_v2 }
 0x14f   : > { %6059 = vmatpush3.msra.mxu0 %v8237_v28  ;;  %6094 = vmatpush3.msra.mxu1 %v8242_v9  ;;  %v8279_v9 = vld [vmem:[%s10661_s26 + $0x258] sm:$0xff] }
 0x150   : > { %6060 = vmatprep.subr.mxu0 %v7468_v2  ;;  %6095 = vmatprep.subr.mxu1 %v7468_v2  ;;  %10678 = vst [vmem:[#allocation22_spill] sm:$0xff] %v8279_v9 }
 0x151   : > { %6061 = vmatpush3.msra.mxu0 %v8251_v3  ;;  %6096 = vmatpush3.msra.mxu1 %v8256_v42  ;;  %v8293_v42 = vld [vmem:[%s10661_s26 + $0x250] sm:$0xff] }
 0x152   : > { %6062 = vmatprep.subr.mxu0 %v7468_v2  ;;  %6097 = vmatprep.subr.mxu1 %v7468_v2  ;;  %10680 = vst [vmem:[#allocation24_spill] sm:$0xff] %v8293_v42 }
 0x153   : > { %6063 = vmatpush3.msra.mxu0 %v8265_v30  ;;  %6098 = vmatpush3.msra.mxu1 %v8270_v38  ;;  %v8307_v38 = vld [vmem:[%s10661_s26 + $0x248] sm:$0xff] }
 0x154   : > { %6064 = vmatprep.subr.mxu0 %v7468_v2  ;;  %6099 = vmatprep.subr.mxu1 %v7468_v2  ;;  %10682 = vst [vmem:[#allocation26_spill] sm:$0xff] %v8307_v38 }
 0x155   : > { %6065 = vmatpush3.msra.mxu0 %v8279_v9  ;;  %6100 = vmatpush3.msra.mxu1 %v8284_v36  ;;  %v8321_v36 = vld [vmem:[%s10661_s26 + $0x240] sm:$0xff] }
 0x156   : > { %6066 = vmatprep.subr.mxu0 %v7468_v2  ;;  %6101 = vmatprep.subr.mxu1 %v7468_v2  ;;  %10684 = vst [vmem:[#allocation28_spill] sm:$0xff] %v8321_v36  ;;  %v8326_v9 = vld [vmem:[%s10661_s26 + $0x2c0] sm:$0xff] }
 0x157   : > { %6067 = vmatpush3.msra.mxu0 %v8293_v42  ;;  %6102 = vmatpush3.msra.mxu1 %v8298_v34  ;;  %10685 = vst [vmem:[#allocation29_spill] sm:$0xff] %v8326_v9  ;;  %v8335_v34 = vld [vmem:[%s10661_s26 + $0x238] sm:$0xff] }
 0x158   : > { %6068 = vmatprep.subr.mxu0 %v7468_v2  ;;  %6103 = vmatprep.subr.mxu1 %v7468_v2  ;;  %10686 = vst [vmem:[#allocation30_spill] sm:$0xff] %v8335_v34  ;;  %v8340_v42 = vld [vmem:[%s10661_s26 + $0x2b8] sm:$0xff] }
 0x159   : > { %6069 = vmatpush3.msra.mxu0 %v8307_v38  ;;  %6104 = vmatpush3.msra.mxu1 %v8312_v32  ;;  %10687 = vst [vmem:[#allocation31_spill] sm:$0xff] %v8340_v42  ;;  %v8349_v32 = vld [vmem:[%s10661_s26 + $0x230] sm:$0xff] }
 0x15a   : > { %6070 = vmatprep.subr.mxu0 %v7468_v2  ;;  %6105 = vmatprep.subr.mxu1 %v7468_v2  ;;  %10688 = vst [vmem:[#allocation32_spill] sm:$0xff] %v8349_v32  ;;  %v8354_v38 = vld [vmem:[%s10661_s26 + $0x2b0] sm:$0xff] }
 0x15b   : > { %6071 = vmatpush3.msra.mxu0 %v8321_v36  ;;  %6106 = vmatpush3.msra.mxu1 %v8326_v9  ;;  %10689 = vst [vmem:[#allocation33_spill] sm:$0xff] %v8354_v38  ;;  %v8363_v9 = vld [vmem:[%s10661_s26 + $0x228] sm:$0xff] }
 0x15c   : > { %6072 = vmatprep.subr.mxu0 %v7468_v2  ;;  %6107 = vmatprep.subr.mxu1 %v7468_v2  ;;  %10690 = vst [vmem:[#allocation34_spill] sm:$0xff] %v8363_v9  ;;  %v8368_v36 = vld [vmem:[%s10661_s26 + $0x2a8] sm:$0xff] }
 0x15d   : > { %6073 = vmatpush3.msra.mxu0 %v8335_v34  ;;  %6108 = vmatpush3.msra.mxu1 %v8340_v42  ;;  %10691 = vst [vmem:[#allocation35_spill] sm:$0xff] %v8368_v36  ;;  %v8377_v42 = vld [vmem:[%s10661_s26 + $0x220] sm:$0xff] }
 0x15e   : > { %6074 = vmatprep.subr.mxu0 %v7468_v2  ;;  %6109 = vmatprep.subr.mxu1 %v7468_v2  ;;  %10692 = vst [vmem:[#allocation36_spill] sm:$0xff] %v8377_v42  ;;  %v8382_v34 = vld [vmem:[%s10661_s26 + $0x2a0] sm:$0xff] }
 0x15f   : > { %6075 = vmatpush3.msra.mxu0 %v8349_v32  ;;  %6110 = vmatpush3.msra.mxu1 %v8354_v38  ;;  %10693 = vst [vmem:[#allocation37_spill] sm:$0xff] %v8382_v34  ;;  %v8391_v38 = vld [vmem:[%s10661_s26 + $0x218] sm:$0xff] }
 0x160   : > { %6076 = vmatprep.subr.mxu0 %v7468_v2  ;;  %6111 = vmatprep.subr.mxu1 %v7468_v2  ;;  %10694 = vst [vmem:[#allocation38_spill] sm:$0xff] %v8391_v38  ;;  %v8396_v32 = vld [vmem:[%s10661_s26 + $0x298] sm:$0xff] }
 0x161   : > { %6077 = vmatpush3.msra.mxu0 %v8363_v9  ;;  %6112 = vmatpush3.msra.mxu1 %v8368_v36  ;;  %10695 = vst [vmem:[#allocation39_spill] sm:$0xff] %v8396_v32  ;;  %v8405_v36 = vld [vmem:[%s10661_s26 + $0x210] sm:$0xff] }
 0x162   : > { %6078 = vmatprep.subr.mxu0 %v7468_v2  ;;  %6113 = vmatprep.subr.mxu1 %v7468_v2  ;;  %10696 = vst [vmem:[#allocation40_spill] sm:$0xff] %v8405_v36  ;;  %v8410_v9 = vld [vmem:[%s10661_s26 + $0x290] sm:$0xff] }
 0x163   : > { %6079 = vmatpush3.msra.mxu0 %v8377_v42  ;;  %6114 = vmatpush3.msra.mxu1 %v8382_v34  ;;  %10697 = vst [vmem:[#allocation41_spill] sm:$0xff] %v8410_v9  ;;  %v8419_v34 = vld [vmem:[%s10661_s26 + $0x208] sm:$0xff] }
 0x164   : > { %6080 = vmatprep.subr.mxu0 %v7468_v2  ;;  %6115 = vmatprep.subr.mxu1 %v7468_v2  ;;  %10698 = vst [vmem:[#allocation42_spill] sm:$0xff] %v8419_v34  ;;  %v8424_v42 = vld [vmem:[%s10661_s26 + $0x288] sm:$0xff] }
 0x165   : > { %6081 = vmatpush3.msra.mxu0 %v8391_v38  ;;  %6116 = vmatpush3.msra.mxu1 %v8396_v32  ;;  %10699 = vst [vmem:[#allocation43_spill] sm:$0xff] %v8424_v42  ;;  %v8433_v32 = vld [vmem:[%s10661_s26 + $0x200] sm:$0xff] }
 0x166   : > { %6082 = vmatprep.subr.mxu0 %v7468_v2  ;;  %6117 = vmatprep.subr.mxu1 %v7468_v2  ;;  %10700 = vst [vmem:[#allocation44_spill] sm:$0xff] %v8433_v32  ;;  %v8440_v38 = vld [vmem:[%s10661_s26 + $0x280] sm:$0xff] }
 0x167   : > { %6083 = vmatpush3.msra.mxu0 %v8405_v36  ;;  %6118 = vmatpush3.msra.mxu1 %v8410_v9  ;;  %10701 = vst [vmem:[#allocation45_spill] sm:$0xff] %v8440_v38  ;;  %v8457_v9 = vld [vmem:[%s10661_s26 + $0x3f8] sm:$0xff]  ;;  %v8486_v36 = vld [vmem:[%s10661_s26 + $0x3e8] sm:$0xff] }
 0x168   : > { %6084 = vmatprep.subr.mxu0 %v7468_v2  ;;  %6119 = vmatprep.subr.mxu1 %v7468_v2  ;;  %10703 = vst [vmem:[#allocation47_spill] sm:$0xff] %v8457_v9  ;;  %10707 = vst [vmem:[#allocation51_spill] sm:$0xff] %v8486_v36 }
 0x169   : > { %6085 = vmatpush3.msra.mxu0 %v8419_v34  ;;  %6120 = vmatpush3.msra.mxu1 %v8424_v42  ;;  %v8452_v42 = vld [vmem:[%s10661_s26 + $0x378] sm:$0xff]  ;;  %v8481_v34 = vld [vmem:[%s10661_s26 + $0x368] sm:$0xff] }
 0x16a   : > { %6086 = vmatprep.subr.mxu0 %v7468_v2  ;;  %6121 = vmatprep.subr.mxu1 %v7468_v2  ;;  %10702 = vst [vmem:[#allocation46_spill] sm:$0xff] %v8452_v42  ;;  %10706 = vst [vmem:[#allocation50_spill] sm:$0xff] %v8481_v34 }
 0x16b   : > { %6087 = vmatpush3.msra.mxu0 %v8433_v32  ;;  %6088 = vmatprep.mubr.msk.f32.mxu0 %vm7469_vm0, %v7468_v2  ;;  %v8472_v32 = vld [vmem:[%s10661_s26 + $0x3f0] sm:$0xff] }
 0x16c   : > { %6122 = vmatpush3.msra.mxu1 %v8440_v38  ;;  %6089 = vmatmul.mubr.f32.vlgmr.msra.gmra.mxu0 %v7683_v18  ;;  %v8467_v38 = vld [vmem:[%s10661_s26 + $0x370] sm:$0xff]  ;;  %10705 = vst [vmem:[#allocation49_spill] sm:$0xff] %v8472_v32 }
 0x16d   : > { %6123 = vmatprep.mubr.msk.f32.mxu1 %vm7469_vm0, %v7468_v2  ;;  %6126 = vmatprep.subr.mxu0 %v7468_v2  ;;  %10704 = vst [vmem:[#allocation48_spill] sm:$0xff] %v8467_v38 }
 0x16e   : > { %6161 = vmatprep.subr.mxu1 %v7468_v2  ;;  %6124 = vmatmul.mubr.f32.vlgmr.msra.gmra.mxu1 %v7683_v18 }
 0x16f   : > { %6127 = vmatpush3.msra.mxu0 %v8452_v42  ;;  %6162 = vmatpush3.msra.mxu1 %v8457_v9  ;;  %v8495_v9 = vld [vmem:[%s10661_s26 + $0x360] sm:$0xff] }
 0x170   : > { %6128 = vmatprep.subr.mxu0 %v7468_v2  ;;  %6163 = vmatprep.subr.mxu1 %v7468_v2  ;;  %10708 = vst [vmem:[#allocation52_spill] sm:$0xff] %v8495_v9  ;;  %v8500_v42 = vld [vmem:[%s10661_s26 + $0x3e0] sm:$0xff] }
 0x171   : > { %6129 = vmatpush3.msra.mxu0 %v8467_v38  ;;  %6164 = vmatpush3.msra.mxu1 %v8472_v32  ;;  %10709 = vst [vmem:[#allocation53_spill] sm:$0xff] %v8500_v42  ;;  %v8509_v32 = vld [vmem:[%s10661_s26 + $0x358] sm:$0xff] }
 0x172   : > { %6130 = vmatprep.subr.mxu0 %v7468_v2  ;;  %6165 = vmatprep.subr.mxu1 %v7468_v2  ;;  %10710 = vst [vmem:[#allocation54_spill] sm:$0xff] %v8509_v32  ;;  %v8514_v38 = vld [vmem:[%s10661_s26 + $0x3d8] sm:$0xff] }
 0x173   : > { %6131 = vmatpush3.msra.mxu0 %v8481_v34  ;;  %6166 = vmatpush3.msra.mxu1 %v8486_v36  ;;  %10711 = vst [vmem:[#allocation55_spill] sm:$0xff] %v8514_v38  ;;  %v8523_v36 = vld [vmem:[%s10661_s26 + $0x350] sm:$0xff] }
 0x174   : > { %6132 = vmatprep.subr.mxu0 %v7468_v2  ;;  %6167 = vmatprep.subr.mxu1 %v7468_v2  ;;  %10712 = vst [vmem:[#allocation56_spill] sm:$0xff] %v8523_v36  ;;  %v8528_v34 = vld [vmem:[%s10661_s26 + $0x3d0] sm:$0xff] }
 0x175   : > { %6133 = vmatpush3.msra.mxu0 %v8495_v9  ;;  %6168 = vmatpush3.msra.mxu1 %v8500_v42  ;;  %10713 = vst [vmem:[#allocation57_spill] sm:$0xff] %v8528_v34  ;;  %v8537_v42 = vld [vmem:[%s10661_s26 + $0x348] sm:$0xff] }
 0x176   : > { %6134 = vmatprep.subr.mxu0 %v7468_v2  ;;  %6169 = vmatprep.subr.mxu1 %v7468_v2  ;;  %10714 = vst [vmem:[#allocation58_spill] sm:$0xff] %v8537_v42  ;;  %v8542_v9 = vld [vmem:[%s10661_s26 + $0x3c8] sm:$0xff] }
 0x177   : > { %6135 = vmatpush3.msra.mxu0 %v8509_v32  ;;  %6170 = vmatpush3.msra.mxu1 %v8514_v38  ;;  %10715 = vst [vmem:[#allocation59_spill] sm:$0xff] %v8542_v9  ;;  %v8551_v38 = vld [vmem:[%s10661_s26 + $0x340] sm:$0xff] }
 0x178   : > { %6136 = vmatprep.subr.mxu0 %v7468_v2  ;;  %6171 = vmatprep.subr.mxu1 %v7468_v2  ;;  %10716 = vst [vmem:[#allocation60_spill] sm:$0xff] %v8551_v38  ;;  %v8556_v32 = vld [vmem:[%s10661_s26 + $0x3c0] sm:$0xff] }
 0x179   : > { %6137 = vmatpush3.msra.mxu0 %v8523_v36  ;;  %6172 = vmatpush3.msra.mxu1 %v8528_v34  ;;  %10717 = vst [vmem:[#allocation61_spill] sm:$0xff] %v8556_v32  ;;  %v8565_v34 = vld [vmem:[%s10661_s26 + $0x338] sm:$0xff] }
 0x17a   : > { %6138 = vmatprep.subr.mxu0 %v7468_v2  ;;  %6173 = vmatprep.subr.mxu1 %v7468_v2  ;;  %10718 = vst [vmem:[#allocation62_spill] sm:$0xff] %v8565_v34  ;;  %v8570_v36 = vld [vmem:[%s10661_s26 + $0x3b8] sm:$0xff] }
 0x17b   : > { %6139 = vmatpush3.msra.mxu0 %v8537_v42  ;;  %6174 = vmatpush3.msra.mxu1 %v8542_v9  ;;  %10719 = vst [vmem:[#allocation63_spill] sm:$0xff] %v8570_v36  ;;  %v8579_v9 = vld [vmem:[%s10661_s26 + $0x330] sm:$0xff] }
 0x17c   : > { %6140 = vmatprep.subr.mxu0 %v7468_v2  ;;  %6175 = vmatprep.subr.mxu1 %v7468_v2  ;;  %10720 = vst [vmem:[#allocation64_spill] sm:$0xff] %v8579_v9  ;;  %v8584_v42 = vld [vmem:[%s10661_s26 + $0x3b0] sm:$0xff] }
 0x17d   : > { %6141 = vmatpush3.msra.mxu0 %v8551_v38  ;;  %6176 = vmatpush3.msra.mxu1 %v8556_v32  ;;  %10721 = vst [vmem:[#allocation65_spill] sm:$0xff] %v8584_v42  ;;  %v8593_v32 = vld [vmem:[%s10661_s26 + $0x328] sm:$0xff] }
 0x17e   : > { %6142 = vmatprep.subr.mxu0 %v7468_v2  ;;  %6177 = vmatprep.subr.mxu1 %v7468_v2  ;;  %10722 = vst [vmem:[#allocation66_spill] sm:$0xff] %v8593_v32  ;;  %v8598_v38 = vld [vmem:[%s10661_s26 + $0x3a8] sm:$0xff] }
 0x17f   : > { %6143 = vmatpush3.msra.mxu0 %v8565_v34  ;;  %6178 = vmatpush3.msra.mxu1 %v8570_v36  ;;  %10723 = vst [vmem:[#allocation67_spill] sm:$0xff] %v8598_v38  ;;  %v8607_v36 = vld [vmem:[%s10661_s26 + $0x320] sm:$0xff] }
 0x180   : > { %6144 = vmatprep.subr.mxu0 %v7468_v2  ;;  %6179 = vmatprep.subr.mxu1 %v7468_v2  ;;  %10724 = vst [vmem:[#allocation68_spill] sm:$0xff] %v8607_v36  ;;  %v8612_v34 = vld [vmem:[%s10661_s26 + $0x3a0] sm:$0xff] }
 0x181   : > { %6145 = vmatpush3.msra.mxu0 %v8579_v9  ;;  %6180 = vmatpush3.msra.mxu1 %v8584_v42  ;;  %10725 = vst [vmem:[#allocation69_spill] sm:$0xff] %v8612_v34  ;;  %v8621_v42 = vld [vmem:[%s10661_s26 + $0x318] sm:$0xff] }
 0x182   : > { %6146 = vmatprep.subr.mxu0 %v7468_v2  ;;  %6181 = vmatprep.subr.mxu1 %v7468_v2  ;;  %10726 = vst [vmem:[#allocation70_spill] sm:$0xff] %v8621_v42  ;;  %v8626_v9 = vld [vmem:[%s10661_s26 + $0x398] sm:$0xff] }
 0x183   : > { %6147 = vmatpush3.msra.mxu0 %v8593_v32  ;;  %6182 = vmatpush3.msra.mxu1 %v8598_v38  ;;  %10727 = vst [vmem:[#allocation71_spill] sm:$0xff] %v8626_v9  ;;  %v8635_v38 = vld [vmem:[%s10661_s26 + $0x310] sm:$0xff] }
 0x184   : > { %6148 = vmatprep.subr.mxu0 %v7468_v2  ;;  %6183 = vmatprep.subr.mxu1 %v7468_v2  ;;  %v8640_v32 = vld [vmem:[%s10661_s26 + $0x390] sm:$0xff] }
 0x185   : > { %6149 = vmatpush3.msra.mxu0 %v8607_v36  ;;  %6184 = vmatpush3.msra.mxu1 %v8612_v34  ;;  %10728 = vst [vmem:[#allocation72_spill] sm:$0xff] %v8640_v32  ;;  %v8649_v34 = vld [vmem:[%s10661_s26 + $0x308] sm:$0xff] }
 0x186   : > { %6150 = vmatprep.subr.mxu0 %v7468_v2  ;;  %6185 = vmatprep.subr.mxu1 %v7468_v2  ;;  %v8654_v36 = vld [vmem:[%s10661_s26 + $0x388] sm:$0xff] }
 0x187   : > { %6151 = vmatpush3.msra.mxu0 %v8621_v42  ;;  %6186 = vmatpush3.msra.mxu1 %v8626_v9  ;;  %10729 = vst [vmem:[#allocation73_spill] sm:$0xff] %v8654_v36  ;;  %v8663_v9 = vld [vmem:[%s10661_s26 + $0x300] sm:$0xff] }
 0x188   : > { %6152 = vmatprep.subr.mxu0 %v7468_v2  ;;  %6187 = vmatprep.subr.mxu1 %v7468_v2  ;;  %v8670_v42 = vld [vmem:[%s10661_s26 + $0x380] sm:$0xff] }
 0x189   : > { %6153 = vmatpush3.msra.mxu0 %v8635_v38  ;;  %6188 = vmatpush3.msra.mxu1 %v8640_v32  ;;  %10730 = vst [vmem:[#allocation74_spill] sm:$0xff] %v8670_v42  ;;  %v8701_v32 = vld [vmem:[%s10661_s26 + $0x468] sm:$0xff] }
 0x18a   : > { %6154 = vmatprep.subr.mxu0 %v7468_v2  ;;  %6189 = vmatprep.subr.mxu1 %v7468_v2 }
 0x18b   : > { %6155 = vmatpush3.msra.mxu0 %v8649_v34  ;;  %6190 = vmatpush3.msra.mxu1 %v8654_v36  ;;  %v8682_v36 = vld [vmem:[%s10661_s26 + $0x478] sm:$0xff] }
 0x18c   : > { %6156 = vmatprep.subr.mxu0 %v7468_v2  ;;  %6191 = vmatprep.subr.mxu1 %v7468_v2 }
 0x18d   : > { %6157 = vmatpush3.msra.mxu0 %v8663_v9  ;;  %6158 = vmatprep.mubr.msk.f32.mxu0 %vm7469_vm0, %v7468_v2 }
 0x18e   : > { %6192 = vmatpush3.msra.mxu1 %v8670_v42  ;;  %6159 = vmatmul.mubr.f32.vlgmr.msra.gmra.mxu0 %v7683_v18  ;;  %v8692_v42 = vld [vmem:[%s10661_s26 + $0x470] sm:$0xff] }
 0x18f   : > { %6193 = vmatprep.mubr.msk.f32.mxu1 %vm7469_vm0, %v7468_v2  ;;  %6196 = vmatprep.subr.mxu0 %v7468_v2 }
 0x190   : > { %6231 = vmatprep.subr.mxu1 %v7468_v2  ;;  %6194 = vmatmul.mubr.f32.vlgmr.msra.gmra.mxu1 %v7683_v18  ;;  %v8710_v18 = vld [vmem:[%s10661_s26 + $0x460] sm:$0xff] }
 0x191   : > { %6197 = vmatpush3.msra.mxu0 %v8682_v36  ;;  %6232 = vmatpush3.msra.mxu1 %v7739_v39  ;;  %v8719_v39 = vld [vmem:[%s10661_s26 + $0x458] sm:$0xff] }
 0x192   : > { %6198 = vmatprep.subr.mxu0 %v7468_v2  ;;  %6233 = vmatprep.subr.mxu1 %v7468_v2 }
 0x193   : > { %6199 = vmatpush3.msra.mxu0 %v8692_v42  ;;  %6234 = vmatpush3.msra.mxu1 %v7753_v43  ;;  %v8728_v43 = vld [vmem:[%s10661_s26 + $0x450] sm:$0xff] }
 0x194   : > { %6200 = vmatprep.subr.mxu0 %v7468_v2  ;;  %6235 = vmatprep.subr.mxu1 %v7468_v2 }
 0x195   : > { %6201 = vmatpush3.msra.mxu0 %v8701_v32  ;;  %6236 = vmatpush3.msra.mxu1 %v7767_v45  ;;  %v8737_v45 = vld [vmem:[%s10661_s26 + $0x448] sm:$0xff] }
 0x196   : > { %6202 = vmatprep.subr.mxu0 %v7468_v2  ;;  %6237 = vmatprep.subr.mxu1 %v7468_v2 }
 0x197   : > { %6203 = vmatpush3.msra.mxu0 %v8710_v18  ;;  %6238 = vmatpush3.msra.mxu1 %v7781_v47  ;;  %v8746_v47 = vld [vmem:[%s10661_s26 + $0x440] sm:$0xff] }
 0x198   : > { %6204 = vmatprep.subr.mxu0 %v7468_v2  ;;  %6239 = vmatprep.subr.mxu1 %v7468_v2 }
 0x199   : > { %6205 = vmatpush3.msra.mxu0 %v8719_v39  ;;  %6240 = vmatpush3.msra.mxu1 %v7795_v49  ;;  %v8755_v49 = vld [vmem:[%s10661_s26 + $0x438] sm:$0xff] }
 0x19a   : > { %6206 = vmatprep.subr.mxu0 %v7468_v2  ;;  %6241 = vmatprep.subr.mxu1 %v7468_v2 }
 0x19b   : > { %6207 = vmatpush3.msra.mxu0 %v8728_v43  ;;  %6242 = vmatpush3.msra.mxu1 %v7809_v51  ;;  %v8764_v51 = vld [vmem:[%s10661_s26 + $0x430] sm:$0xff] }
 0x19c   : > { %6208 = vmatprep.subr.mxu0 %v7468_v2  ;;  %6243 = vmatprep.subr.mxu1 %v7468_v2 }
 0x19d   : > { %6209 = vmatpush3.msra.mxu0 %v8737_v45  ;;  %6244 = vmatpush3.msra.mxu1 %v7823_v53  ;;  %v8773_v53 = vld [vmem:[%s10661_s26 + $0x428] sm:$0xff] }
 0x19e   : > { %6210 = vmatprep.subr.mxu0 %v7468_v2  ;;  %6245 = vmatprep.subr.mxu1 %v7468_v2 }
 0x19f   : > { %6211 = vmatpush3.msra.mxu0 %v8746_v47  ;;  %6246 = vmatpush3.msra.mxu1 %v7837_v55  ;;  %v8782_v55 = vld [vmem:[%s10661_s26 + $0x420] sm:$0xff] }
 0x1a0   : > { %6212 = vmatprep.subr.mxu0 %v7468_v2  ;;  %6247 = vmatprep.subr.mxu1 %v7468_v2 }
 0x1a1   : > { %6213 = vmatpush3.msra.mxu0 %v8755_v49  ;;  %6248 = vmatpush3.msra.mxu1 %v7851_v57  ;;  %v8791_v57 = vld [vmem:[%s10661_s26 + $0x418] sm:$0xff] }
 0x1a2   : > { %6214 = vmatprep.subr.mxu0 %v7468_v2  ;;  %6249 = vmatprep.subr.mxu1 %v7468_v2 }
 0x1a3   : > { %6215 = vmatpush3.msra.mxu0 %v8764_v51  ;;  %6250 = vmatpush3.msra.mxu1 %v7865_v59  ;;  %v8800_v59 = vld [vmem:[%s10661_s26 + $0x410] sm:$0xff] }
 0x1a4   : > { %6216 = vmatprep.subr.mxu0 %v7468_v2  ;;  %6251 = vmatprep.subr.mxu1 %v7468_v2 }
 0x1a5   : > { %6217 = vmatpush3.msra.mxu0 %v8773_v53  ;;  %6252 = vmatpush3.msra.mxu1 %v7879_v61  ;;  %v8809_v61 = vld [vmem:[%s10661_s26 + $0x408] sm:$0xff] }
 0x1a6   : > { %6218 = vmatprep.subr.mxu0 %v7468_v2  ;;  %6253 = vmatprep.subr.mxu1 %v7468_v2 }
 0x1a7   : > { %6219 = vmatpush3.msra.mxu0 %v8782_v55  ;;  %6254 = vmatpush3.msra.mxu1 %v7898_v0  ;;  %v8818_v0 = vld [vmem:[%s10661_s26 + $0x400] sm:$0xff] }
 0x1a8   : > { %6220 = vmatprep.subr.mxu0 %v7468_v2  ;;  %6255 = vmatprep.subr.mxu1 %v7468_v2 }
 0x1a9   : > { %6221 = vmatpush3.msra.mxu0 %v8791_v57  ;;  %6256 = vmatpush3.msra.mxu1 %v7918_v4  ;;  %v7375_v4 = vld [vmem:[%s7595_s27] sm:$0xf] }
 0x1aa   : > { %6222 = vmatprep.subr.mxu0 %v7468_v2  ;;  %6257 = vmatprep.subr.mxu1 %v7468_v2 }
 0x1ab   : > { %6223 = vmatpush3.msra.mxu0 %v8800_v59  ;;  %6258 = vmatpush3.msra.mxu1 %v7938_v7  ;;  %v8833_v7 = vld [vmem:[#allocation2] sm:$0xff] }
 0x1ac   : > { %6224 = vmatprep.subr.mxu0 %v7468_v2  ;;  %6259 = vmatprep.subr.mxu1 %v7468_v2 }
 0x1ad   : > { %6225 = vmatpush3.msra.mxu0 %v8809_v61  ;;  %6260 = vmatpush3.msra.mxu1 %v7958_v10  ;;  %v10739_v10 = vld [vmem:[#allocation10_spill] sm:$0xff] }
 0x1ae   : > { %6226 = vmatprep.subr.mxu0 %v7468_v2  ;;  %6261 = vmatprep.subr.mxu1 %v7468_v2 }
 0x1af   : > { %6227 = vmatpush3.msra.mxu0 %v8818_v0  ;;  %6228 = vmatprep.mubr.msk.f32.mxu0 %vm7469_vm0, %v7468_v2 }
 0x1b0   : > { %6262 = vmatpush3.msra.mxu1 %v7973_v12  ;;  %6229 = vmatmul.mubr.f32.vlgmr.msra.gmra.mxu0 %v7375_v4  ;;  %v10749_v4 = vld [vmem:[#allocation15_spill] sm:$0xff] }
 0x1b1   : > { %6263 = vmatprep.mubr.msk.f32.mxu1 %vm7469_vm0, %v7468_v2  ;;  %6266 = vmatprep.subr.mxu0 %v7468_v2 }
 0x1b2   : > { %6301 = vmatprep.subr.mxu1 %v7468_v2  ;;  %6264 = vmatmul.mubr.f32.vlgmr.msra.gmra.mxu1 %v8833_v7 }
 0x1b3   : > { %6267 = vmatpush3.msra.mxu0 %v7744_v40  ;;  %6302 = vmatpush3.msra.mxu1 %v7992_v14  ;;  %v10741_v14 = vld [vmem:[#allocation11_spill] sm:$0xff] }
 0x1b4   : > { %6268 = vmatprep.subr.mxu0 %v7468_v2  ;;  %6303 = vmatprep.subr.mxu1 %v7468_v2 }
 0x1b5   : > { %6269 = vmatpush3.msra.mxu0 %v7758_v44  ;;  %6304 = vmatpush3.msra.mxu1 %v8007_v16 }
 0x1b6   : > { %6270 = vmatprep.subr.mxu0 %v7468_v2  ;;  %6305 = vmatprep.subr.mxu1 %v7468_v2 }
 0x1b7   : > { %6271 = vmatpush3.msra.mxu0 %v7772_v46  ;;  %6306 = vmatpush3.msra.mxu1 %v8021_v19  ;;  %v10743_v19 = vld [vmem:[#allocation12_spill] sm:$0xff] }
 0x1b8   : > { %6272 = vmatprep.subr.mxu0 %v7468_v2  ;;  %6307 = vmatprep.subr.mxu1 %v7468_v2 }
 0x1b9   : > { %6273 = vmatpush3.msra.mxu0 %v7786_v48  ;;  %6308 = vmatpush3.msra.mxu1 %v8035_v23 }
 0x1ba   : > { %6274 = vmatprep.subr.mxu0 %v7468_v2  ;;  %6309 = vmatprep.subr.mxu1 %v7468_v2 }
 0x1bb   : > { %6275 = vmatpush3.msra.mxu0 %v7800_v50  ;;  %6310 = vmatpush3.msra.mxu1 %v8049_v29 }
 0x1bc   : > { %6276 = vmatprep.subr.mxu0 %v7468_v2  ;;  %6311 = vmatprep.subr.mxu1 %v7468_v2 }
 0x1bd   : > { %6277 = vmatpush3.msra.mxu0 %v7814_v52  ;;  %6312 = vmatpush3.msra.mxu1 %v8063_v33  ;;  %v10745_v33 = vld [vmem:[#allocation13_spill] sm:$0xff] }
 0x1be   : > { %6278 = vmatprep.subr.mxu0 %v7468_v2  ;;  %6313 = vmatprep.subr.mxu1 %v7468_v2 }
 0x1bf   : > { %6279 = vmatpush3.msra.mxu0 %v7828_v54  ;;  %6314 = vmatpush3.msra.mxu1 %v8077_v35  ;;  %v10735_v54 = vld [vmem:[#allocation8_spill] sm:$0xff] }
 0x1c0   : > { %6280 = vmatprep.subr.mxu0 %v7468_v2  ;;  %6315 = vmatprep.subr.mxu1 %v7468_v2  ;;  %v10746_v35 = vld [vmem:[#allocation36_spill] sm:$0xff] }
 0x1c1   : > { %6281 = vmatpush3.msra.mxu0 %v7842_v56  ;;  %6316 = vmatpush3.msra.mxu1 %v8091_v37  ;;  %v10736_v56 = vld [vmem:[#allocation26_spill] sm:$0xff] }
 0x1c2   : > { %6282 = vmatprep.subr.mxu0 %v7468_v2  ;;  %6317 = vmatprep.subr.mxu1 %v7468_v2 }
 0x1c3   : > { %6283 = vmatpush3.msra.mxu0 %v7856_v58  ;;  %6318 = vmatpush3.msra.mxu1 %v8105_v41  ;;  %v872_v40 = vpop.f32.mrf.mxu0 }
 0x1c4   : > { %6284 = vmatprep.subr.mxu0 %v7468_v2  ;;  %6319 = vmatprep.subr.mxu1 %v7468_v2  ;;  %v966_v44 = vpop.f32.mrf.mxu1 }
 0x1c5   : > { %6285 = vmatpush3.msra.mxu0 %v7870_v60  ;;  %6320 = vmatpush3.msra.mxu1 %v8119_v63  ;;  %v8874_v46 = vadd.f32 %v966_v44, %v872_v40  ;;  %v5898_v48 = vpop.f32.mrf.mxu0  ;;  %v1109_v60 = vpop.permute.xlu0 %1108  ;;  %v10747_v63 = vld [vmem:[#allocation14_spill] sm:$0xff]  ;;  %v10750_v40 = vld [vmem:[#allocation40_spill] sm:$0xff] }
 0x1c6   : > { %6286 = vmatprep.subr.mxu0 %v7468_v2  ;;  %6321 = vmatprep.subr.mxu1 %v7468_v2  ;;  %v5909_v50 = vpop.f32.mrf.mxu1  ;;  %v10751_v44 = vld [vmem:[#allocation16_spill] sm:$0xff]  ;;  %v10752_v48 = vld [vmem:[#allocation42_spill] sm:$0xff] }
 0x1c7   : > { %6287 = vmatpush3.msra.mxu0 %v7884_v62  ;;  %6322 = vmatpush3.msra.mxu1 %v8133_v6  ;;  %v10737_v62 = vld [vmem:[#allocation9_spill] sm:$0xff] }
 0x1c8   : > { %6288 = vmatprep.subr.mxu0 %v7468_v2  ;;  %6323 = vmatprep.subr.mxu1 %v7468_v2  ;;  %v10753_v50 = vld [vmem:[#allocation17_spill] sm:$0xff] }
 0x1c9   : > { %6289 = vmatpush3.msra.mxu0 %v7903_v1  ;;  %6324 = vmatpush3.msra.mxu1 %v8147_v31  ;;  %v10734_v31 = vld [vmem:[#allocation24_spill] sm:$0xff] }
 0x1ca   : > { %6290 = vmatprep.subr.mxu0 %v7468_v2  ;;  %6325 = vmatprep.subr.mxu1 %v7468_v2  ;;  %v10738_v1 = vld [vmem:[#allocation28_spill] sm:$0xff] }
 0x1cb   : > { %6291 = vmatpush3.msra.mxu0 %v7923_v5  ;;  %6326 = vmatpush3.msra.mxu1 %v8161_v27 }
 0x1cc   : > { %6292 = vmatprep.subr.mxu0 %v7468_v2  ;;  %6327 = vmatprep.subr.mxu1 %v7468_v2 }
 0x1cd   : > { %6293 = vmatpush3.msra.mxu0 %v7943_v8  ;;  %6328 = vmatpush3.msra.mxu1 %v8175_v25  ;;  %v10732_v25 = vld [vmem:[#allocation22_spill] sm:$0xff] }
 0x1ce   : > { %6294 = vmatprep.subr.mxu0 %v7468_v2  ;;  %6329 = vmatprep.subr.mxu1 %v7468_v2 }
 0x1cf   : > { %6295 = vmatpush3.msra.mxu0 %v7963_v11  ;;  %6330 = vmatpush3.msra.mxu1 %v8189_v22  ;;  %v10731_v22 = vld [vmem:[#allocation6_spill] sm:$0xff] }
 0x1d0   : > { %6296 = vmatprep.subr.mxu0 %v7468_v2  ;;  %6331 = vmatprep.subr.mxu1 %v7468_v2  ;;  %v10740_v11 = vld [vmem:[#allocation30_spill] sm:$0xff] }
 0x1d1   : > { %6297 = vmatpush3.msra.mxu0 %v7980_v13  ;;  %6298 = vmatprep.mubr.msk.f32.mxu0 %vm7469_vm0, %v7468_v2 }
 0x1d2   : > { %6332 = vmatpush3.msra.mxu1 %v8203_v26  ;;  %6299 = vmatmul.mubr.f32.vlgmr.msra.gmra.mxu0 %v8833_v7 }
 0x1d3   : > { %6333 = vmatprep.mubr.msk.f32.mxu1 %vm7469_vm0, %v7468_v2  ;;  %6336 = vmatprep.subr.mxu0 %v7468_v2 }
 0x1d4   : > { %6371 = vmatprep.subr.mxu1 %v7468_v2  ;;  %6334 = vmatmul.mubr.f32.vlgmr.msra.gmra.mxu1 %v8833_v7 }
 0x1d5   : > { %6337 = vmatpush3.msra.mxu0 %v7997_v15  ;;  %6372 = vmatpush3.msra.mxu1 %v8222_v20  ;;  %v10742_v15 = vld [vmem:[#allocation32_spill] sm:$0xff] }
 0x1d6   : > { %6338 = vmatprep.subr.mxu0 %v7468_v2  ;;  %6373 = vmatprep.subr.mxu1 %v7468_v2 }
 0x1d7   : > { %6339 = vmatpush3.msra.mxu0 %v8012_v17  ;;  %6374 = vmatpush3.msra.mxu1 %v8237_v28  ;;  %v10733_v28 = vld [vmem:[#allocation7_spill] sm:$0xff]  ;;  %v1202_v17 = vpop.permute.xlu0 %1201 }
 0x1d8   : > { %6340 = vmatprep.subr.mxu0 %v7468_v2  ;;  %6375 = vmatprep.subr.mxu1 %v7468_v2 }
 0x1d9   : > { %6341 = vmatpush3.msra.mxu0 %v8026_v21  ;;  %6376 = vmatpush3.msra.mxu1 %v8251_v3  ;;  %v10744_v21 = vld [vmem:[#allocation34_spill] sm:$0xff] }
 0x1da   : > { %6342 = vmatprep.subr.mxu0 %v7468_v2  ;;  %6377 = vmatprep.subr.mxu1 %v7468_v2  ;;  %v10748_v3 = vld [vmem:[#allocation38_spill] sm:$0xff] }
 0x1db   : > { %6343 = vmatpush3.msra.mxu0 %v8040_v24  ;;  %6378 = vmatpush3.msra.mxu1 %v8265_v30  ;;  %v877_v20 = vpop.f32.mrf.mxu0 }
 0x1dc   : > { %6344 = vmatprep.subr.mxu0 %v7468_v2  ;;  %6379 = vmatprep.subr.mxu1 %v7468_v2 }
 0x1dd   : > { %6345 = vmatpush3.msra.mxu0 %v10731_v22  ;;  %6380 = vmatpush3.msra.mxu1 %v10732_v25  ;;  %v5901_v26 = vpop.f32.mrf.mxu0  ;;  %v10755_v22 = vld [vmem:[#allocation18_spill] sm:$0xff] }
 0x1de   : > { %6346 = vmatprep.subr.mxu0 %v7468_v2  ;;  %6381 = vmatprep.subr.mxu1 %v7468_v2  ;;  %v971_v27 = vpop.f32.mrf.mxu1  ;;  %v10756_v25 = vld [vmem:[#allocation46_spill] sm:$0xff]  ;;  %v10757_v26 = vld [vmem:[#allocation19_spill] sm:$0xff] }
 0x1df   : > { %6347 = vmatpush3.msra.mxu0 %v10733_v28  ;;  %6382 = vmatpush3.msra.mxu1 %v10734_v31  ;;  %v8930_v30 = vadd.f32 %v971_v27, %v877_v20  ;;  %v10754_v20 = vld [vmem:[#allocation44_spill] sm:$0xff]  ;;  %v10760_v31 = vld [vmem:[#allocation50_spill] sm:$0xff] }
 0x1e0   : > { %6348 = vmatprep.subr.mxu0 %v7468_v2  ;;  %6383 = vmatprep.subr.mxu1 %v7468_v2  ;;  %v5912_v52 = vpop.f32.mrf.mxu1  ;;  %v10758_v27 = vld [vmem:[#allocation48_spill] sm:$0xff] }
 0x1e1   : > { %6349 = vmatpush3.msra.mxu0 %v10735_v54  ;;  %6384 = vmatpush3.msra.mxu1 %v10736_v56  ;;  %v882_v58 = vpop.f32.mrf.mxu0  ;;  %v10759_v28 = vld [vmem:[#allocation20_spill] sm:$0xff]  ;;  %v10761_v52 = vld [vmem:[#allocation21_spill] sm:$0xff]  ;;  %v10763_v56 = vld [vmem:[#allocation23_spill] sm:$0xff] }
 0x1e2   : > { %6350 = vmatprep.subr.mxu0 %v7468_v2  ;;  %6385 = vmatprep.subr.mxu1 %v7468_v2  ;;  %v10762_v54 = vld [vmem:[#allocation52_spill] sm:$0xff] }
 0x1e3   : > { %6351 = vmatpush3.msra.mxu0 %v10737_v62  ;;  %6386 = vmatpush3.msra.mxu1 %v10738_v1  ;;  %v5904_v5 = vpop.f32.mrf.mxu0  ;;  %v10766_v62 = vld [vmem:[#allocation56_spill] sm:$0xff]  ;;  %v10767_v1 = vld [vmem:[#allocation27_spill] sm:$0xff] }
 0x1e4   : > { %6352 = vmatprep.subr.mxu0 %v7468_v2  ;;  %6387 = vmatprep.subr.mxu1 %v7468_v2  ;;  %v976_v8 = vpop.f32.mrf.mxu1  ;;  %v10768_v5 = vld [vmem:[#allocation58_spill] sm:$0xff] }
 0x1e5   : > { %6353 = vmatpush3.msra.mxu0 %v10739_v10  ;;  %6388 = vmatpush3.msra.mxu1 %v10740_v11  ;;  %v8944_v12 = vadd.f32 %v976_v8, %v882_v58  ;;  %v10764_v58 = vld [vmem:[#allocation54_spill] sm:$0xff]  ;;  %v10769_v8 = vld [vmem:[#allocation29_spill] sm:$0xff]  ;;  %v10770_v10 = vld [vmem:[#allocation60_spill] sm:$0xff] }
 0x1e6   : > { %6354 = vmatprep.subr.mxu0 %v7468_v2  ;;  %6389 = vmatprep.subr.mxu1 %v7468_v2  ;;  %v5915_v13 = vpop.f32.mrf.mxu1  ;;  %v10771_v11 = vld [vmem:[#allocation31_spill] sm:$0xff] }
 0x1e7   : > { %6355 = vmatpush3.msra.mxu0 %v10741_v14  ;;  %6390 = vmatpush3.msra.mxu1 %v10742_v15  ;;  %v10772_v13 = vld [vmem:[#allocation62_spill] sm:$0xff]  ;;  %v10773_v14 = vld [vmem:[#allocation33_spill] sm:$0xff]  ;;  %v10774_v15 = vld [vmem:[#allocation64_spill] sm:$0xff] }
 0x1e8   : > { %6356 = vmatprep.subr.mxu0 %v7468_v2  ;;  %6391 = vmatprep.subr.mxu1 %v7468_v2  ;;  %v1102_v16 = vpop.f32.mrf.mxu0 }
 0x1e9   : > { %6357 = vmatpush3.msra.mxu0 %v10743_v19  ;;  %6392 = vmatpush3.msra.mxu1 %v10744_v21  ;;  %v1111_v23 = vmul.f32 %v1109_v60, %v1102_v16  ;;  %v10765_v60 = vld [vmem:[#allocation25_spill] sm:$0xff]  ;;  %v1295_v16 = vpop.permute.xlu1 %1294  ;;  %v1388_v19 = vpop.permute.xlu0 %1387  ;;  %v10775_v21 = vld [vmem:[#allocation35_spill] sm:$0xff] }
 0x1ea   : > { %6358 = vmatprep.subr.mxu0 %v7468_v2  ;;  %6393 = vmatprep.subr.mxu1 %v7468_v2  ;;  %v1196_v24 = vpop.f32.mrf.mxu1  ;;  %v5950_v29 = vpop.f32.mrf.mxu0 }
 0x1eb   : > { %6359 = vmatpush3.msra.mxu0 %v10745_v33  ;;  %6394 = vmatpush3.msra.mxu1 %v10746_v35  ;;  %v1204_v37 = vmul.f32 %v1202_v17, %v1196_v24  ;;  %v10777_v35 = vld [vmem:[#allocation37_spill] sm:$0xff] }
 0x1ec   : > { %6360 = vmatprep.subr.mxu0 %v7468_v2  ;;  %6395 = vmatprep.subr.mxu1 %v7468_v2  ;;  %v5985_v41 = vpop.f32.mrf.mxu1 }
 0x1ed   : > { %6361 = vmatpush3.msra.mxu0 %v10747_v63  ;;  %6396 = vmatpush3.msra.mxu1 %v10748_v3  ;;  %v8962_v6 = vadd.f32 %v1204_v37, %v1111_v23  ;;  %v10776_v23 = vld [vmem:[#allocation66_spill] sm:$0xff]  ;;  %v10778_v37 = vld [vmem:[#allocation68_spill] sm:$0xff] }
 0x1ee   : > { %6362 = vmatprep.subr.mxu0 %v7468_v2  ;;  %6397 = vmatprep.subr.mxu1 %v7468_v2 }
 0x1ef   : > { %6363 = vmatpush3.msra.mxu0 %v10749_v4  ;;  %6398 = vmatpush3.msra.mxu1 %v10750_v40  ;;  %v10779_v4 = vld [vmem:[#allocation39_spill] sm:$0xff]  ;;  %v10780_v40 = vld [vmem:[#allocation70_spill] sm:$0xff] }
 0x1f0   : > { %6364 = vmatprep.subr.mxu0 %v7468_v2  ;;  %6399 = vmatprep.subr.mxu1 %v7468_v2 }
 0x1f1   : > { %6365 = vmatpush3.msra.mxu0 %v10751_v44  ;;  %6400 = vmatpush3.msra.mxu1 %v10752_v48  ;;  %v10781_v48 = vld [vmem:[#allocation41_spill] sm:$0xff] }
 0x1f2   : > { %6366 = vmatprep.subr.mxu0 %v7468_v2  ;;  %6401 = vmatprep.subr.mxu1 %v7468_v2 }
 0x1f3   : > { %6367 = vmatpush3.msra.mxu0 %v10753_v50  ;;  %6368 = vmatprep.mubr.msk.f32.mxu0 %vm7469_vm0, %v7468_v2  ;;  %v10783_v50 = vld [vmem:[#allocation45_spill] sm:$0xff] }
 0x1f4   : > { %6402 = vmatpush3.msra.mxu1 %v10754_v20  ;;  %6369 = vmatmul.mubr.f32.vlgmr.msra.gmra.mxu0 %v8833_v7  ;;  %v10794_v20 = vld [vmem:[#allocation67_spill] sm:$0xff] }
 0x1f5   : > { %6403 = vmatprep.mubr.msk.f32.mxu1 %vm7469_vm0, %v7468_v2  ;;  %6406 = vmatprep.subr.mxu0 %v7468_v2 }
 0x1f6   : > { %6441 = vmatprep.subr.mxu1 %v7468_v2  ;;  %6404 = vmatmul.mubr.f32.vlgmr.msra.gmra.mxu1 %v8833_v7 }
 0x1f7   : > { %6407 = vmatpush3.msra.mxu0 %v10755_v22  ;;  %6442 = vmatpush3.msra.mxu1 %v10756_v25  ;;  %v10795_v25 = vld [vmem:[#allocation69_spill] sm:$0xff] }
 0x1f8   : > { %6408 = vmatprep.subr.mxu0 %v7468_v2  ;;  %6443 = vmatprep.subr.mxu1 %v7468_v2 }
 0x1f9   : > { %6409 = vmatpush3.msra.mxu0 %v10757_v26  ;;  %6444 = vmatpush3.msra.mxu1 %v10758_v27  ;;  %v10796_v26 = vld [vmem:[#allocation71_spill] sm:$0xff] }
 0x1fa   : > { %6410 = vmatprep.subr.mxu0 %v7468_v2  ;;  %6445 = vmatprep.subr.mxu1 %v7468_v2 }
 0x1fb   : > { %6411 = vmatpush3.msra.mxu0 %v10759_v28  ;;  %6446 = vmatpush3.msra.mxu1 %v10760_v31 }
 0x1fc   : > { %6412 = vmatprep.subr.mxu0 %v7468_v2  ;;  %6447 = vmatprep.subr.mxu1 %v7468_v2 }
 0x1fd   : > { %6413 = vmatpush3.msra.mxu0 %v10761_v52  ;;  %6448 = vmatpush3.msra.mxu1 %v10762_v54 }
 0x1fe   : > { %6414 = vmatprep.subr.mxu0 %v7468_v2  ;;  %6449 = vmatprep.subr.mxu1 %v7468_v2 }
 0x1ff   : > { %6415 = vmatpush3.msra.mxu0 %v10763_v56  ;;  %6450 = vmatpush3.msra.mxu1 %v10764_v58  ;;  %v9137_v56 = vpop.permute.xlu0 %2165 }
 0x200   : > { %6416 = vmatprep.subr.mxu0 %v7468_v2  ;;  %6451 = vmatprep.subr.mxu1 %v7468_v2 }
 0x201   : > { %6417 = vmatpush3.msra.mxu0 %v10765_v60  ;;  %6452 = vmatpush3.msra.mxu1 %v10766_v62 }
 0x202   : > { %6418 = vmatprep.subr.mxu0 %v7468_v2  ;;  %6453 = vmatprep.subr.mxu1 %v7468_v2 }
 0x203   : > { %6419 = vmatpush3.msra.mxu0 %v10767_v1  ;;  %6454 = vmatpush3.msra.mxu1 %v10768_v5  ;;  %v9139_v60 = vpop.permute.xlu0 %2241 }
 0x204   : > { %6420 = vmatprep.subr.mxu0 %v7468_v2  ;;  %6455 = vmatprep.subr.mxu1 %v7468_v2 }
 0x205   : > { %6421 = vmatpush3.msra.mxu0 %v10769_v8  ;;  %6456 = vmatpush3.msra.mxu1 %v10770_v10 }
 0x206   : > { %6422 = vmatprep.subr.mxu0 %v7468_v2  ;;  %6457 = vmatprep.subr.mxu1 %v7468_v2 }
 0x207   : > { %6423 = vmatpush3.msra.mxu0 %v10771_v11  ;;  %6458 = vmatpush3.msra.mxu1 %v10772_v13  ;;  %v1760_v10 = vpop.permute.xlu0 %1759 }
 0x208   : > { %6424 = vmatprep.subr.mxu0 %v7468_v2  ;;  %6459 = vmatprep.subr.mxu1 %v7468_v2 }
 0x209   : > { %6425 = vmatpush3.msra.mxu0 %v10773_v14  ;;  %6460 = vmatpush3.msra.mxu1 %v10774_v15 }
 0x20a   : > { %6426 = vmatprep.subr.mxu0 %v7468_v2  ;;  %6461 = vmatprep.subr.mxu1 %v7468_v2  ;;  %v1289_v17 = vpop.f32.mrf.mxu0 }
 0x20b   : > { %6427 = vmatpush3.msra.mxu0 %v10775_v21  ;;  %6462 = vmatpush3.msra.mxu1 %v10776_v23  ;;  %v1297_v24 = vmul.f32 %v1295_v16, %v1289_v17  ;;  %v9146_v17 = vpop.permute.xlu0 %2469 }
 0x20c   : > { %6428 = vmatprep.subr.mxu0 %v7468_v2  ;;  %6463 = vmatprep.subr.mxu1 %v7468_v2  ;;  %v1382_v29 = vpop.f32.mrf.mxu1  ;;  %v6020_v33 = vpop.f32.mrf.mxu0 }
 0x20d   : > { %6429 = vmatpush3.msra.mxu0 %v10777_v35  ;;  %6464 = vmatpush3.msra.mxu1 %v10778_v37  ;;  %v1298_v41 = vadd.f32 %v1297_v24, %v8962_v6  ;;  %v1390_v63 = vmul.f32 %v1388_v19, %v1382_v29  ;;  %v10782_v6 = vld [vmem:[#allocation43_spill] sm:$0xff] }
 0x20e   : > { %6430 = vmatprep.subr.mxu0 %v7468_v2  ;;  %6465 = vmatprep.subr.mxu1 %v7468_v2  ;;  %v6055_v3 = vpop.f32.mrf.mxu1 }
 0x20f   : > { %6431 = vmatpush3.msra.mxu0 %v10779_v4  ;;  %6466 = vmatpush3.msra.mxu1 %v10780_v40  ;;  %v9035_v44 = vadd.f32 %v1390_v63, %v1298_v41  ;;  %v1861_v37 = vpop.permute.xlu0 %1860  ;;  %v2550_v3 = vld [vmem:[%s10552_s9] sm:$0xff]  ;;  %v9159_v4 = vld [vmem:[%s10658_s21 + $0x78] sm:$0xff]  ;;  %v9164_v40 = vld [vmem:[%s10658_s21 + $0x70] sm:$0xff] }
 0x210   : > { %6432 = vmatprep.subr.mxu0 %v7468_v2  ;;  %6467 = vmatprep.subr.mxu1 %v7468_v2 }
 0x211   : > { %6433 = vmatpush3.msra.mxu0 %v10781_v48  ;;  %6468 = vmatpush3.msra.mxu1 %v8635_v38  ;;  %v10785_v38 = vld [vmem:[#allocation49_spill] sm:$0xff]  ;;  %v9178_v48 = vld [vmem:[%s10658_s21 + $0x60] sm:$0xff] }
 0x212   : > { %6434 = vmatprep.subr.mxu0 %v7468_v2  ;;  %6469 = vmatprep.subr.mxu1 %v7468_v2 }
 0x213   : > { %6435 = vmatpush3.msra.mxu0 %v10782_v6  ;;  %6470 = vmatpush3.msra.mxu1 %v8649_v34  ;;  %v10784_v34 = vld [vmem:[#allocation47_spill] sm:$0xff]  ;;  %v9184_v6 = vld [vmem:[%s10557_s14] sm:$0xff] }
 0x214   : > { %6436 = vmatprep.subr.mxu0 %v7468_v2  ;;  %6471 = vmatprep.subr.mxu1 %v7468_v2 }
 0x215   : > { %6437 = vmatpush3.msra.mxu0 %v10783_v50  ;;  %6438 = vmatprep.mubr.msk.f32.mxu0 %vm7469_vm0, %v7468_v2  ;;  %v9190_v50 = vld [vmem:[%s10658_s21 + $0x58] sm:$0xff] }
 0x216   : > { %6472 = vmatpush3.msra.mxu1 %v8663_v9  ;;  %6439 = vmatmul.mubr.f32.vlgmr.msra.gmra.mxu0 %v8833_v7  ;;  %v10786_v9 = vld [vmem:[#allocation51_spill] sm:$0xff] }
 0x217   : > { %6473 = vmatprep.mubr.msk.f32.mxu1 %vm7469_vm0, %v7468_v2  ;;  %6476 = vmatprep.subr.mxu0 %v7468_v2 }
 0x218   : > { %6511 = vmatprep.subr.mxu1 %v7468_v2  ;;  %6474 = vmatmul.mubr.f32.vlgmr.msra.gmra.mxu1 %v8833_v7 }
 0x219   : > { %6477 = vmatpush3.msra.mxu0 %v10784_v34  ;;  %6512 = vmatpush3.msra.mxu1 %v8682_v36  ;;  %v10787_v36 = vld [vmem:[#allocation53_spill] sm:$0xff]  ;;  %v9199_v34 = vld [vmem:[%s10658_s21 + $0x50] sm:$0xff] }
 0x21a   : > { %6478 = vmatprep.subr.mxu0 %v7468_v2  ;;  %6513 = vmatprep.subr.mxu1 %v7468_v2 }
 0x21b   : > { %6479 = vmatpush3.msra.mxu0 %v10785_v38  ;;  %6514 = vmatpush3.msra.mxu1 %v8692_v42  ;;  %v10788_v42 = vld [vmem:[#allocation55_spill] sm:$0xff] }
 0x21c   : > { %6480 = vmatprep.subr.mxu0 %v7468_v2  ;;  %6515 = vmatprep.subr.mxu1 %v7468_v2  ;;  %v9206_v38 = vld [vmem:[%s10658_s21 + $0x48] sm:$0xff] }
 0x21d   : > { %6481 = vmatpush3.msra.mxu0 %v10786_v9  ;;  %6516 = vmatpush3.msra.mxu1 %v8701_v32  ;;  %v10789_v32 = vld [vmem:[#allocation57_spill] sm:$0xff]  ;;  %v10800_v9 = vmov 2  }
 0x21e   : > { %6482 = vmatprep.subr.mxu0 %v7468_v2  ;;  %6517 = vmatprep.subr.mxu1 %v7468_v2 }
 0x21f   : > { %6483 = vmatpush3.msra.mxu0 %v10787_v36  ;;  %6518 = vmatpush3.msra.mxu1 %v8710_v18  ;;  %v10790_v18 = vld [vmem:[#allocation59_spill] sm:$0xff]  ;;  %v9215_v36 = vld [vmem:[%s10658_s21 + $0x40] sm:$0xff] }
 0x220   : > { %6484 = vmatprep.subr.mxu0 %v7468_v2  ;;  %6519 = vmatprep.subr.mxu1 %v7468_v2 }
 0x221   : > { %6485 = vmatpush3.msra.mxu0 %v10788_v42  ;;  %6520 = vmatpush3.msra.mxu1 %v8719_v39  ;;  %v10791_v39 = vld [vmem:[#allocation61_spill] sm:$0xff] }
 0x222   : > { %6486 = vmatprep.subr.mxu0 %v7468_v2  ;;  %6521 = vmatprep.subr.mxu1 %v7468_v2  ;;  %v9222_v42 = vld [vmem:[%s10658_s21 + $0x38] sm:$0xff] }
 0x223   : > { %6487 = vmatpush3.msra.mxu0 %v10789_v32  ;;  %6522 = vmatpush3.msra.mxu1 %v8728_v43  ;;  %v10792_v43 = vld [vmem:[#allocation63_spill] sm:$0xff]  ;;  %v10801_v32 = vmov 0  }
 0x224   : > { %6488 = vmatprep.subr.mxu0 %v7468_v2  ;;  %6523 = vmatprep.subr.mxu1 %v7468_v2 }
 0x225   : > { %6489 = vmatpush3.msra.mxu0 %v10790_v18  ;;  %6524 = vmatpush3.msra.mxu1 %v8737_v45  ;;  %v10793_v45 = vld [vmem:[#allocation65_spill] sm:$0xff]  ;;  %v9230_v18 = vld [vmem:[%s10658_s21 + $0x30] sm:$0xff] }
 0x226   : > { %6490 = vmatprep.subr.mxu0 %v7468_v2  ;;  %6525 = vmatprep.subr.mxu1 %v7468_v2 }
 0x227   : > { %6491 = vmatpush3.msra.mxu0 %v10791_v39  ;;  %6526 = vmatpush3.msra.mxu1 %v8746_v47 }
 0x228   : > { %6492 = vmatprep.subr.mxu0 %v7468_v2  ;;  %6527 = vmatprep.subr.mxu1 %v7468_v2 }
 0x229   : > { %6493 = vmatpush3.msra.mxu0 %v10792_v43  ;;  %6528 = vmatpush3.msra.mxu1 %v8755_v49 }
 0x22a   : > { %6494 = vmatprep.subr.mxu0 %v7468_v2  ;;  %6529 = vmatprep.subr.mxu1 %v7468_v2 }
 0x22b   : > { %6495 = vmatpush3.msra.mxu0 %v10793_v45  ;;  %6530 = vmatpush3.msra.mxu1 %v8764_v51 }
 0x22c   : > { %6496 = vmatprep.subr.mxu0 %v7468_v2  ;;  %6531 = vmatprep.subr.mxu1 %v7468_v2  ;;  %v1475_v47 = vpop.f32.mrf.mxu0 }
 0x22d   : > { %6497 = vmatpush3.msra.mxu0 %v10794_v20  ;;  %6532 = vmatpush3.msra.mxu1 %v8773_v53  ;;  %v10797_v53 = vld [vmem:[#allocation72_spill] sm:$0xff] }
 0x22e   : > { %6498 = vmatprep.subr.mxu0 %v7468_v2  ;;  %6533 = vmatprep.subr.mxu1 %v7468_v2  ;;  %v1568_v49 = vpop.f32.mrf.mxu1  ;;  %v6090_v22 = vpop.f32.mrf.mxu0 }
 0x22f   : > { %6499 = vmatpush3.msra.mxu0 %v10795_v25  ;;  %6534 = vmatpush3.msra.mxu1 %v8782_v55  ;;  %v10798_v55 = vld [vmem:[#allocation73_spill] sm:$0xff] }
 0x230   : > { %6500 = vmatprep.subr.mxu0 %v7468_v2  ;;  %6535 = vmatprep.subr.mxu1 %v7468_v2  ;;  %v6125_v51 = vpop.f32.mrf.mxu1 }
 0x231   : > { %6501 = vmatpush3.msra.mxu0 %v10796_v26  ;;  %6536 = vmatpush3.msra.mxu1 %v8791_v57  ;;  %v10799_v57 = vld [vmem:[#allocation74_spill] sm:$0xff] }
 0x232   : > { %6502 = vmatprep.subr.mxu0 %v7468_v2  ;;  %6537 = vmatprep.subr.mxu1 %v7468_v2  ;;  %v9247_v51 = vld [vmem:[%s10658_s21 + $0x20] sm:$0xff] }
 0x233   : > { %6503 = vmatpush3.msra.mxu0 %v10797_v53  ;;  %6538 = vmatpush3.msra.mxu1 %v8800_v59  ;;  %v9131_v59 = vpop.permute.xlu1 %1937 }
 0x234   : > { %6504 = vmatprep.subr.mxu0 %v7468_v2  ;;  %6539 = vmatprep.subr.mxu1 %v7468_v2 }
 0x235   : > { %6505 = vmatpush3.msra.mxu0 %v10798_v55  ;;  %6540 = vmatpush3.msra.mxu1 %v8809_v61  ;;  %v9254_v55 = vld [vmem:[%s10658_s21 + $0x18] sm:$0xff] }
 0x236   : > { %6506 = vmatprep.subr.mxu0 %v7468_v2  ;;  %6541 = vmatprep.subr.mxu1 %v7468_v2 }
 0x237   : > { %6507 = vmatpush3.msra.mxu0 %v10799_v57  ;;  %6508 = vmatprep.mubr.msk.f32.mxu0 %vm7469_vm0, %v7468_v2  ;;  %v9133_v61 = vpop.permute.xlu1 %2013  ;;  %v9261_v57 = vld [vmem:[%s10658_s21 + $0x10] sm:$0xff] }
 0x238   : > { %6542 = vmatpush3.msra.mxu1 %v8818_v0  ;;  %6543 = vmatprep.mubr.msk.f32.mxu1 %vm7469_vm0, %v7468_v2 }
 0x239   : > { %6509 = vmatmul.mubr.f32.vlgmr.msra.gmra.mxu0 %v8833_v7  ;;  %6544 = vmatmul.mubr.f32.vlgmr.msra.gmra.mxu1 %v8833_v7 }
 0x23a   : > { %6551 = vmatprep.subr.mxu1 %v7468_v2  ;;  %6553 = vmatprep.mubr.msk.f32.mxu1 %vm7469_vm0, %v7468_v2 }
 0x23b   : > { %6546 = vmatprep.subr.mxu0 %v7468_v2  ;;  %6548 = vmatprep.mubr.msk.f32.mxu0 %vm7469_vm0, %v7468_v2  ;;  %v9135_v0 = vpop.permute.xlu1 %2089 }
 0x23c   : > { %3179 = vperm.xlu1 %7324, %v9184_v6   ;;  %3271 = vperm.xlu0 %7325, %v9184_v6  }
 0x23f   : > { %v1481_v7 = vpop.permute.xlu1 %1480 }
 0x240   : > { %v1483_v62 = vmul.f32 %v1481_v7, %v1475_v47  ;;  %7326 = vset.pattern.permute.xlu1 %v10800_v9  ;;  %v9239_v47 = vld [vmem:[%s10658_s21 + $0x28] sm:$0xff] }
 0x241   : > { %3363 = vperm.xlu1 %7326, %v9184_v6  }
 0x242   : > { %v1484_v5 = vadd.f32 %v1483_v62, %v9035_v44  ;;  %v9171_v44 = vld [vmem:[%s10658_s21 + $0x68] sm:$0xff] }
 0x243   : > { %v1574_v54 = vpop.permute.xlu1 %1573 }
 0x244   : > { %v1576_v8 = vmul.f32 %v1574_v54, %v1568_v49 }
 0x245   : > { %7327 = vset.pattern.permute.xlu1 %v10801_v32 }
 0x246   : > { %v1577_v14 = vadd.f32 %v1576_v8, %v1484_v5 }
 0x247   : > { %v1667_v58 = vpop.permute.xlu1 %1666 }
 0x24b   : > { %v9141_v1 = vpop.permute.xlu1 %2317 }
 0x24e   : > { %v1661_v27 = vpop.f32.mrf.mxu0 }
 0x24f   : > { %v1669_v11 = vmul.f32 %v1667_v58, %v1661_v27  ;;  %v9144_v13 = vpop.permute.xlu1 %2393 }
 0x250   : > { %v1754_v28 = vpop.f32.mrf.mxu1  ;;  %v6160_v31 = vpop.f32.mrf.mxu0 }
 0x251   : > { %v1670_v15 = vadd.f32 %v1669_v11, %v1577_v14  ;;  %v1762_v16 = vmul.f32 %v1760_v10, %v1754_v28 }
 0x252   : > { %v6195_v52 = vpop.f32.mrf.mxu1 }
 0x253   : > { %v1853_v19 = vpop.permute.xlu1 %1852  ;;  %v1763_v23 = vadd.f32 %v1762_v16, %v1670_v15 }
 0x270   : > { %v1847_v21 = vpop.f32.mrf.mxu0 }
 0x271   : > { %v1855_v24 = vmul.f32 %v1853_v19, %v1847_v21 }
 0x272   : > { %v1931_v29 = vpop.f32.mrf.mxu1  ;;  %v6230_v33 = vpop.f32.mrf.mxu0 }
 0x273   : > { %v1856_v35 = vadd.f32 %v1855_v24, %v1763_v23  ;;  %v1940_v43 = vmul.f32 %v9131_v59, %v1931_v29  ;;  %v9268_v59 = vld [vmem:[%s10658_s21 + $0x8] sm:$0xff]  ;;  %v2546_v23 = vpop.permute.xlu1 %2545 }
 0x274   : > { %v6265_v41 = vpop.f32.mrf.mxu1 }
 0x275   : > { %v1863_v63 = vadd.f32 %v1861_v37, %v1856_v35 }
 0x277   : > { %6552 = vmatpush3.msk.msra.mxu1 %vm896_vm1, %v1863_v63 }
 0x278   : > { %6591 = vmatprep.subr.mxu1 %v7468_v2  ;;  %6554 = vmatmul.mubr.msk.f32.vlgmr.msra.gmra.mxu1 %vm886_vm3, %v2550_v3  ;;  %v986_v3 = vpop.permute.xlu1 %985 }
 0x279   : > { %6623 = vmatprep.mubr.msk.f32.mxu1 %vm7469_vm0, %v7468_v2  ;;  %6592 = vmatpush3.msra.mxu1 %v9159_v4 }
 0x27a   : > { %6593 = vmatprep.subr.mxu1 %v7468_v2 }
 0x27b   : > { %6594 = vmatpush3.msra.mxu1 %v9164_v40 }
 0x27c   : > { %6595 = vmatprep.subr.mxu1 %v7468_v2 }
 0x27d   : > { %6596 = vmatpush3.msra.mxu1 %v9171_v44 }
 0x27e   : > { %6597 = vmatprep.subr.mxu1 %v7468_v2 }
 0x27f   : > { %6598 = vmatpush3.msra.mxu1 %v9178_v48 }
 0x280   : > { %6599 = vmatprep.subr.mxu1 %v7468_v2 }
 0x281   : > { %6600 = vmatpush3.msra.mxu1 %v9190_v50 }
 0x282   : > { %6601 = vmatprep.subr.mxu1 %v7468_v2 }
 0x283   : > { %6602 = vmatpush3.msra.mxu1 %v9199_v34 }
 0x284   : > { %6603 = vmatprep.subr.mxu1 %v7468_v2 }
 0x285   : > { %6604 = vmatpush3.msra.mxu1 %v9206_v38 }
 0x286   : > { %6605 = vmatprep.subr.mxu1 %v7468_v2 }
 0x287   : > { %6606 = vmatpush3.msra.mxu1 %v9215_v36 }
 0x288   : > { %6607 = vmatprep.subr.mxu1 %v7468_v2 }
 0x289   : > { %6608 = vmatpush3.msra.mxu1 %v9222_v42 }
 0x28a   : > { %6609 = vmatprep.subr.mxu1 %v7468_v2 }
 0x28b   : > { %6610 = vmatpush3.msra.mxu1 %v9230_v18 }
 0x28c   : > { %6611 = vmatprep.subr.mxu1 %v7468_v2 }
 0x28d   : > { %6612 = vmatpush3.msra.mxu1 %v9239_v47 }
 0x28e   : > { %6613 = vmatprep.subr.mxu1 %v7468_v2 }
 0x28f   : > { %6614 = vmatpush3.msra.mxu1 %v9247_v51 }
 0x290   : > { %6615 = vmatprep.subr.mxu1 %v7468_v2 }
 0x291   : > { %6616 = vmatpush3.msra.mxu1 %v9254_v55 }
 0x292   : > { %v2008_v39 = vpop.f32.mrf.mxu0  ;;  %6617 = vmatprep.subr.mxu1 %v7468_v2 }
 0x293   : > { %v2016_v45 = vmul.f32 %v9133_v61, %v2008_v39  ;;  %6618 = vmatpush3.msra.mxu1 %v9261_v57  ;;  %v9275_v61 = vld [vmem:[%s10658_s21] sm:$0xff] }
 0x294   : > { %v2084_v20 = vpop.f32.mrf.mxu1  ;;  %v6300_v49 = vpop.f32.mrf.mxu0  ;;  %6619 = vmatprep.subr.mxu1 %v7468_v2 }
 0x295   : > { %v2017_v22 = vadd.f32 %v2016_v45, %v1940_v43  ;;  %v2092_v25 = vmul.f32 %v9135_v0, %v2084_v20  ;;  %6620 = vmatpush3.msra.mxu1 %v9268_v59  ;;  %v9278_v0 = vld [vmem:[#allocation4] sm:$0xff]  ;;  %v633_v49 = vld [vmem:[#allocation3] sm:$0xff] }
 0x296   : > { %v6335_v26 = vpop.f32.mrf.mxu1  ;;  %6621 = vmatprep.subr.mxu1 %v7468_v2 }
 0x297   : > { %v2093_v53 = vadd.f32 %v2092_v25, %v2017_v22  ;;  %6622 = vmatpush3.msra.mxu1 %v9275_v61 }
 0x298   : > { %6624 = vmatmul.mubr.f32.vlgmr.msra.gmra.mxu1 %v9278_v0  ;;  %6637 = vmatprep.subr.mxu1 %v7468_v2 }
 0x299   : > { %6639 = vmatprep.mubr.msk.f32.mxu1 %vm7469_vm0, %v7468_v2 }
 0x2b4   : > { %v2160_v27 = vpop.f32.mrf.mxu0 }
 0x2b5   : > { %v2168_v5 = vmul.f32 %v9137_v56, %v2160_v27  ;;  %v3106_v27 = vld [vmem:[%s10661_s26 + $0x78] sm:$0xff] }
 0x2b6   : > { %v2236_v28 = vpop.f32.mrf.mxu1  ;;  %v6370_v31 = vpop.f32.mrf.mxu0 }
 0x2b7   : > { %v2169_v8 = vadd.f32 %v2168_v5, %v2093_v53  ;;  %v2244_v10 = vmul.f32 %v9139_v60, %v2236_v28  ;;  %v2551_v60 = vld [vmem:[%s10553_s10] sm:$0xff]  ;;  %v3105_v28 = vld [vmem:[%s10661_s26 + $0x70] sm:$0xff]  ;;  %v2871_v31 = vld [vmem:[%s10555_s12 + $0x8] sm:$0xff] }
 0x2b8   : > { %v6405_v7 = vpop.f32.mrf.mxu1  ;;  %v3100_v5 = vld [vmem:[%s10661_s26 + $0x48] sm:$0xff] }
 0x2b9   : > { %v2245_v14 = vadd.f32 %v2244_v10, %v2169_v8  ;;  %v3104_v7 = vld [vmem:[%s10661_s26 + $0x68] sm:$0xff]  ;;  %v3099_v8 = vld [vmem:[%s10661_s26 + $0x40] sm:$0xff]  ;;  %v3098_v10 = vld [vmem:[%s10661_s26 + $0x38] sm:$0xff] }
 0x2d6   : > { %v2312_v52 = vpop.f32.mrf.mxu0 }
 0x2d7   : > { %v2320_v11 = vmul.f32 %v9141_v1, %v2312_v52  ;;  %v3103_v52 = vld [vmem:[%s10661_s26 + $0x60] sm:$0xff] }
 0x2d8   : > { %v2388_v54 = vpop.f32.mrf.mxu1  ;;  %v6440_v58 = vpop.f32.mrf.mxu0 }
 0x2d9   : > { %v2321_v15 = vadd.f32 %v2320_v11, %v2245_v14  ;;  %v2396_v16 = vmul.f32 %v9144_v13, %v2388_v54  ;;  %v2872_v54 = vld [vmem:[%s10555_s12 + $0x10] sm:$0xff]  ;;  %v3102_v58 = vld [vmem:[%s10661_s26 + $0x58] sm:$0xff]  ;;  %v3096_v14 = vld [vmem:[%s10661_s26 + $0x28] sm:$0xff] }
 0x2da   : > { %v6475_v62 = vpop.f32.mrf.mxu1  ;;  %v3097_v11 = vld [vmem:[%s10661_s26 + $0x30] sm:$0xff] }
 0x2db   : > { %v2397_v24 = vadd.f32 %v2396_v16, %v2321_v15  ;;  %v3101_v62 = vld [vmem:[%s10661_s26 + $0x50] sm:$0xff]  ;;  %v3095_v15 = vld [vmem:[%s10661_s26 + $0x20] sm:$0xff]  ;;  %v3094_v16 = vld [vmem:[%s10661_s26 + $0x18] sm:$0xff] }
 0x2f9   : > { %v2464_v19 = vpop.f32.mrf.mxu0  ;;  %v2540_v21 = vpop.f32.mrf.mxu1 }
 0x2fa   : > { %v2472_v29 = vmul.f32 %v9146_v17, %v2464_v19  ;;  %v2548_v41 = vmul.f32 %v2546_v23, %v2540_v21  ;;  %v3093_v19 = vld [vmem:[%s10661_s26 + $0x10] sm:$0xff]  ;;  %v3092_v21 = vld [vmem:[%s10661_s26 + $0x8] sm:$0xff]  ;;  %v9419_v23 = vld [vmem:[%s10559_s16] sm:$0xff] }
 0x2fb   : > { %v6510_v33 = vpop.f32.mrf.mxu0  ;;  %v6545_v35 = vpop.f32.mrf.mxu1  ;;  %4000 = vperm.xlu1 %7327, %v9419_v23   ;;  %4076 = vperm.xlu0 %7325, %v9419_v23  }
 0x2fc   : > { %v2473_v37 = vadd.f32 %v2472_v29, %v2397_v24  ;;  %v3091_v24 = vld [vmem:[%s10661_s26] sm:$0xff]  ;;  %v5019_v29 = vld [vmem:[%s10661_s26 + $0x178] sm:$0xff]  ;;  %v10802_v33 = vmov 3   ;;  %v5018_v35 = vld [vmem:[%s10661_s26 + $0x170] sm:$0xff] }
 0x2fe   : > { %v2549_v56 = vadd.f32 %v2548_v41, %v2473_v37  ;;  %v5017_v37 = vld [vmem:[%s10661_s26 + $0x168] sm:$0xff]  ;;  %v5016_v41 = vld [vmem:[%s10661_s26 + $0x160] sm:$0xff] }
 0x2ff   : > { %7328 = vset.pattern.permute.xlu1 %v10802_v33  ;;  %7329 = vset.pattern.permute.xlu0 %v10800_v9  ;;  %v5014_v9 = vld [vmem:[%s10661_s26 + $0x150] sm:$0xff] }
 0x300   : > { %6547 = vmatpush3.msra.mxu0 %v2549_v56  ;;  %3455 = vperm.xlu1 %7328, %v9184_v6   ;;  %v5015_v56 = vld [vmem:[%s10661_s26 + $0x158] sm:$0xff] }
 0x301   : > { %6549 = vmatmul.mubr.msk.f32.vlgmr.msra.gmra.mxu0 %vm796_vm2, %v2551_v60  ;;  %6556 = vmatprep.subr.mxu0 %v7468_v2  ;;  %v10803_v60 = vmov 4  }
 0x302   : > { %6557 = vmatpush3.msra.mxu0 %v9159_v4  ;;  %6588 = vmatprep.mubr.msk.f32.mxu0 %vm7469_vm0, %v7468_v2  ;;  %v991_v4 = vpop.permute.xlu1 %990 }
 0x303   : > { %6558 = vmatprep.subr.mxu0 %v7468_v2  ;;  %4152 = vperm.xlu0 %7329, %v9419_v23  }
 0x304   : > { %6559 = vmatpush3.msra.mxu0 %v9164_v40  ;;  %v999_v40 = vadd.f32 %v991_v4, %v8930_v30  ;;  %7330 = vset.pattern.permute.xlu1 %v10803_v60  ;;  %v5009_v4 = vld [vmem:[%s10661_s26 + $0x128] sm:$0xff] }
 0x305   : > { %6560 = vmatprep.subr.mxu0 %v7468_v2  ;;  %3547 = vperm.xlu1 %7330, %v9184_v6  }
 0x306   : > { %6561 = vmatpush3.msra.mxu0 %v9171_v44  ;;  %v998_v44 = vadd.f32 %v986_v3, %v8874_v46  ;;  %v5010_v3 = vld [vmem:[%s10661_s26 + $0x130] sm:$0xff] }
 0x307   : > { %6562 = vmatprep.subr.mxu0 %v7468_v2 }
 0x308   : > { %6563 = vmatpush3.msra.mxu0 %v9178_v48  ;;  %v4846_v48 = vmul.f32 -1.442695, %v999_v40  ;;  %v10805_v40 = vmov 6  }
 0x309   : > { %6564 = vmatprep.subr.mxu0 %v7468_v2  ;;  %7331 = vset.pattern.permute.xlu1 %v10802_v33  ;;  %v5109_v33 = vld [vmem:[%s10661_s26 + $0x448] sm:$0xff] }
 0x30a   : > { %6565 = vmatpush3.msra.mxu0 %v9190_v50  ;;  %v4845_v50 = vmul.f32 -1.442695, %v998_v44  ;;  %7343 = vpow2.f32 %v4846_v48  ;;  %4228 = vperm.xlu1 %7331, %v9419_v23   ;;  %v5008_v44 = vld [vmem:[%s10661_s26 + $0x120] sm:$0xff]  ;;  %v5007_v48 = vld [vmem:[%s10661_s26 + $0x118] sm:$0xff] }
 0x30b   : > { %6566 = vmatprep.subr.mxu0 %v7468_v2 }
 0x30c   : > { %6567 = vmatpush3.msra.mxu0 %v9199_v34  ;;  %7345 = vpow2.f32 %v4845_v50  ;;  %v996_v34 = vpop.permute.xlu0 %995  ;;  %v10806_v50 = vmov 8  }
 0x30d   : > { %6568 = vmatprep.subr.mxu0 %v7468_v2 }
 0x30e   : > { %6569 = vmatpush3.msra.mxu0 %v9206_v38  ;;  %v1000_v38 = vadd.f32 %v996_v34, %v8944_v12  ;;  %7333 = vset.pattern.permute.xlu1 %v10803_v60  ;;  %v5006_v34 = vld [vmem:[%s10661_s26 + $0x110] sm:$0xff]  ;;  %v5104_v60 = vld [vmem:[%s10661_s26 + $0x420] sm:$0xff] }
 0x30f   : > { %6570 = vmatprep.subr.mxu0 %v7468_v2  ;;  %4304 = vperm.xlu1 %7333, %v9419_v23  }
 0x310   : > { %6571 = vmatpush3.msra.mxu0 %v9215_v36 }
 0x311   : > { %6572 = vmatprep.subr.mxu0 %v7468_v2 }
 0x312   : > { %6573 = vmatpush3.msra.mxu0 %v9222_v42 }
 0x313   : > { %6574 = vmatprep.subr.mxu0 %v7468_v2  ;;  %7334 = vset.pattern.permute.xlu1 %v10805_v40 }
 0x314   : > { %6575 = vmatpush3.msra.mxu0 %v9230_v18  ;;  %v4847_v18 = vmul.f32 -1.442695, %v1000_v38  ;;  %3731 = vperm.xlu1 %7334, %v9184_v6   ;;  %v5005_v38 = vld [vmem:[%s10661_s26 + $0x108] sm:$0xff] }
 0x315   : > { %6576 = vmatprep.subr.mxu0 %v7468_v2 }
 0x316   : > { %6577 = vmatpush3.msra.mxu0 %v9239_v47  ;;  %7347 = vpow2.f32 %v4847_v18  ;;  %v5051_v18 = vld [vmem:[%s10661_s26 + $0x278] sm:$0xff] }
 0x317   : > { %6578 = vmatprep.subr.mxu0 %v7468_v2  ;;  %v7344_v36 = vpop.eup %7343 }
 0x318   : > { %6579 = vmatpush3.msra.mxu0 %v9247_v51  ;;  %v1011_v39 = vadd.f32 1.0, %v7344_v36  ;;  %v10807_v36 = vmov 7  }
 0x319   : > { %6580 = vmatprep.subr.mxu0 %v7468_v2  ;;  %v7346_v42 = vpop.eup %7345  ;;  %7335 = vset.pattern.permute.xlu1 %v10807_v36 }
 0x31a   : > { %6581 = vmatpush3.msra.mxu0 %v9254_v55  ;;  %v1010_v43 = vadd.f32 1.0, %v7346_v42  ;;  %7349 = vrcp.f32 %v1011_v39  ;;  %3823 = vperm.xlu1 %7335, %v9184_v6   ;;  %v5004_v42 = vld [vmem:[%s10661_s26 + $0x100] sm:$0xff]  ;;  %v5050_v39 = vld [vmem:[%s10661_s26 + $0x270] sm:$0xff] }
 0x31b   : > { %6582 = vmatprep.subr.mxu0 %v7468_v2 }
 0x31c   : > { %6583 = vmatpush3.msra.mxu0 %v9261_v57  ;;  %7351 = vrcp.f32 %v1010_v43  ;;  %v5049_v43 = vld [vmem:[%s10661_s26 + $0x268] sm:$0xff] }
 0x31d   : > { %6584 = vmatprep.subr.mxu0 %v7468_v2 }
 0x31e   : > { %6585 = vmatpush3.msra.mxu0 %v9268_v59  ;;  %7337 = vset.pattern.permute.xlu1 %v10806_v50 }
 0x31f   : > { %6586 = vmatprep.subr.mxu0 %v7468_v2  ;;  %3915 = vperm.xlu1 %7337, %v9184_v6  }
 0x320   : > { %6587 = vmatpush3.msra.mxu0 %v9275_v61  ;;  %v2870_v61 = vld [vmem:[%s10555_s12] sm:$0xff] }
 0x321   : > { %6626 = vmatprep.subr.mxu0 %v7468_v2 }
 0x323   : > { %v7348_v46 = vpop.eup %7347  ;;  %7338 = vset.pattern.permute.xlu1 %v10807_v36  ;;  %v9776_v36 = vld [vmem:[%s10661_s26 + $0xc0] sm:$0xff] }
 0x324   : > { %v1012_v51 = vadd.f32 1.0, %v7348_v46  ;;  %4532 = vperm.xlu1 %7338, %v9419_v23   ;;  %v5044_v46 = vld [vmem:[%s10661_s26 + $0x240] sm:$0xff] }
 0x327   : > { %v7350_v20 = vpop.eup %7349 }
 0x328   : > { %v2702_v26 = vmul.f32 %v7350_v20, %v633_v49  ;;  %7340 = vset.pattern.permute.xlu1 %v10801_v32  ;;  %v5043_v20 = vld [vmem:[%s10661_s26 + $0x238] sm:$0xff]  ;;  %v5041_v49 = vld [vmem:[%s10661_s26 + $0x228] sm:$0xff] }
 0x329   : > { %v7352_v22 = vpop.eup %7351 }
 0x338   : > { %v2697_v1 = vpop.f32.mrf.mxu1 }
 0x33a   : > { %v6555_v13 = vpop.f32.mrf.mxu1 }
 0x33b   : > { %v5013_v13 = vld [vmem:[%s10661_s26 + $0x148] sm:$0xff] }
 0x358   : > { %v2863_v17 = vpop.f32.mrf.mxu1 }
 0x35a   : > { %v6625_v63 = vpop.f32.mrf.mxu1 }
 0x35b   : > { %v5011_v63 = vld [vmem:[%s10661_s26 + $0x138] sm:$0xff] }
 0x3c1   : > { %v2621_v45 = vpop.f32.mrf.mxu0 }
 0x3c2   : > { %v2698_v47 = vadd.f32 %v2697_v1, %v2621_v45  ;;  %v10804_v1 = vmov 5   ;;  %v5048_v45 = vld [vmem:[%s10661_s26 + $0x260] sm:$0xff] }
 0x3c3   : > { %v6550_v30 = vpop.f32.mrf.mxu0  ;;  %7332 = vset.pattern.permute.xlu0 %v10804_v1  ;;  %v5102_v1 = vld [vmem:[%s10661_s26 + $0x410] sm:$0xff] }
 0x3c4   : > { %7353 = vtanh.f32 %v2698_v47  ;;  %3639 = vperm.xlu0 %7332, %v9184_v6   ;;  %v5047_v47 = vld [vmem:[%s10661_s26 + $0x258] sm:$0xff]  ;;  %v5046_v6 = vld [vmem:[%s10661_s26 + $0x250] sm:$0xff]  ;;  %v5045_v30 = vld [vmem:[%s10661_s26 + $0x248] sm:$0xff] }
 0x3c5   : > { %7355 = vrcp.f32 %v1012_v51  ;;  %v5038_v51 = vld [vmem:[%s10661_s26 + $0x210] sm:$0xff] }
 0x3c8   : > { %4380 = vperm.xlu0 %7332, %v9419_v23  }
 0x3cc   : > { %7336 = vset.pattern.permute.xlu0 %v10805_v40  ;;  %v5002_v40 = vld [vmem:[%s10661_s26 + $0xf0] sm:$0xff] }
 0x3cd   : > { %4456 = vperm.xlu0 %7336, %v9419_v23  }
 0x3d1   : > { %v7354_v25 = vpop.eup %7353  ;;  %7339 = vset.pattern.permute.xlu0 %v10806_v50 }
 0x3d2   : > { %v2703_v12 = vmul.f32 %v7354_v25, %v7352_v22  ;;  %v7356_v55 = vpop.eup %7355  ;;  %4608 = vperm.xlu0 %7339, %v9419_v23   ;;  %v5040_v22 = vld [vmem:[%s10661_s26 + $0x220] sm:$0xff]  ;;  %v5039_v25 = vld [vmem:[%s10661_s26 + $0x218] sm:$0xff] }
 0x3d3   : > { %v3051_v23 = vld [vmem:[%s10556_s13] sm:$0xff] }
 0x3d4   : > { %v2704_v53 = vadd.f32 %v2703_v12, %v2702_v26  ;;  %v5037_v26 = vld [vmem:[%s10661_s26 + $0x208] sm:$0xff]  ;;  %v5036_v12 = vld [vmem:[%s10661_s26 + $0x200] sm:$0xff] }
 0x3d6   : > { %7357 = vtanh.f32 %v2704_v53  ;;  %2708 = vst [vmem:[#allocation3] sm:$0xff] %v2704_v53  ;;  %7341 = vset.pattern.permute.xlu0 %v10801_v32  ;;  %v5042_v32 = vld [vmem:[%s10661_s26 + $0x230] sm:$0xff]  ;;  %v5083_v53 = vld [vmem:[%s10661_s26 + $0x378] sm:$0xff] }
 0x3e3   : > { %v7358_v57 = vpop.eup %7357 }
 0x3e4   : > { %v9333_v59 = vmul.f32 %v7358_v57, %v7356_v55  ;;  %v5082_v55 = vld [vmem:[%s10661_s26 + $0x370] sm:$0xff]  ;;  %v5081_v57 = vld [vmem:[%s10661_s26 + $0x368] sm:$0xff] }
 0x3e6   : > { %2707 = vst [vmem:[#allocation2] sm:$0xff] %v9333_v59  ;;  %6589 = vmatmul.mubr.f32.vlgmr.msra.gmra.mxu0 %v9333_v59 }
 0x3e7   : > { %6627 = vmatpush3.msra.mxu0 %v2863_v17  ;;  %6628 = vmatprep.mubr.msk.f32.mxu0 %vm7469_vm0, %v7468_v2  ;;  %v5012_v17 = vld [vmem:[%s10661_s26 + $0x140] sm:$0xff] }
 0x3e8   : > { %6648 = vmatprep.subr.mxu0 %v7468_v2 }
 0x3ea   : > { %6629 = vmatmul.mubr.msk.f32.vlgmr.msra.gmra.mxu0 %vm796_vm2, %v2870_v61  ;;  %v5080_v61 = vld [vmem:[%s10661_s26 + $0x360] sm:$0xff] }
 0x3eb   : > { %6649 = vmatpush3.msra.mxu0 %v3106_v27  ;;  %6631 = vmatprep.mubr.msk.f32.mxu0 %vm7469_vm0, %v7468_v2  ;;  %v5079_v27 = vld [vmem:[%s10661_s26 + $0x358] sm:$0xff] }
 0x3ec   : > { %6650 = vmatprep.subr.mxu0 %v7468_v2 }
 0x3ed   : > { %6651 = vmatpush3.msra.mxu0 %v3105_v28  ;;  %v5078_v28 = vld [vmem:[%s10661_s26 + $0x350] sm:$0xff] }
 0x3ee   : > { %6652 = vmatprep.subr.mxu0 %v7468_v2  ;;  %6632 = vmatmul.mubr.msk.f32.gmra.mxu0 %vm796_vm2, %v2871_v31  ;;  %v5077_v31 = vld [vmem:[%s10661_s26 + $0x348] sm:$0xff] }
 0x3ef   : > { %6653 = vmatpush3.msra.mxu0 %v3104_v7  ;;  %6634 = vmatprep.mubr.msk.f32.mxu0 %vm7469_vm0, %v7468_v2  ;;  %v5076_v7 = vld [vmem:[%s10661_s26 + $0x340] sm:$0xff] }
 0x3f0   : > { %6654 = vmatprep.subr.mxu0 %v7468_v2 }
 0x3f1   : > { %6655 = vmatpush3.msra.mxu0 %v3103_v52  ;;  %v5075_v52 = vld [vmem:[%s10661_s26 + $0x338] sm:$0xff] }
 0x3f2   : > { %6656 = vmatprep.subr.mxu0 %v7468_v2  ;;  %6635 = vmatmul.mubr.msk.f32.gmra.mxu0 %vm796_vm2, %v2872_v54  ;;  %v5074_v54 = vld [vmem:[%s10661_s26 + $0x330] sm:$0xff] }
 0x3f3   : > { %6657 = vmatpush3.msra.mxu0 %v3102_v58  ;;  %6680 = vmatprep.mubr.msk.f32.mxu0 %vm7469_vm0, %v7468_v2  ;;  %v5073_v58 = vld [vmem:[%s10661_s26 + $0x328] sm:$0xff] }
 0x3f4   : > { %6658 = vmatprep.subr.mxu0 %v7468_v2 }
 0x3f5   : > { %6659 = vmatpush3.msra.mxu0 %v3101_v62  ;;  %v5072_v62 = vld [vmem:[%s10661_s26 + $0x320] sm:$0xff] }
 0x3f6   : > { %6660 = vmatprep.subr.mxu0 %v7468_v2 }
 0x3f7   : > { %6661 = vmatpush3.msra.mxu0 %v3100_v5  ;;  %v5071_v5 = vld [vmem:[%s10661_s26 + $0x318] sm:$0xff] }
 0x3f8   : > { %6662 = vmatprep.subr.mxu0 %v7468_v2 }
 0x3f9   : > { %6663 = vmatpush3.msra.mxu0 %v3099_v8  ;;  %v5070_v8 = vld [vmem:[%s10661_s26 + $0x310] sm:$0xff] }
 0x3fa   : > { %6664 = vmatprep.subr.mxu0 %v7468_v2 }
 0x3fb   : > { %6665 = vmatpush3.msra.mxu0 %v3098_v10  ;;  %v5069_v10 = vld [vmem:[%s10661_s26 + $0x308] sm:$0xff] }
 0x3fc   : > { %6666 = vmatprep.subr.mxu0 %v7468_v2 }
 0x3fd   : > { %6667 = vmatpush3.msra.mxu0 %v3097_v11  ;;  %v5068_v11 = vld [vmem:[%s10661_s26 + $0x300] sm:$0xff] }
 0x3fe   : > { %6668 = vmatprep.subr.mxu0 %v7468_v2 }
 0x3ff   : > { %6669 = vmatpush3.msra.mxu0 %v3096_v14  ;;  %v5115_v14 = vld [vmem:[%s10661_s26 + $0x478] sm:$0xff] }
 0x400   : > { %6670 = vmatprep.subr.mxu0 %v7468_v2 }
 0x401   : > { %6671 = vmatpush3.msra.mxu0 %v3095_v15  ;;  %v5114_v15 = vld [vmem:[%s10661_s26 + $0x470] sm:$0xff] }
 0x402   : > { %6672 = vmatprep.subr.mxu0 %v7468_v2 }
 0x403   : > { %6673 = vmatpush3.msra.mxu0 %v3094_v16  ;;  %v3920_v16 = vld [vmem:[%s10558_s15] sm:$0xff] }
 0x404   : > { %6674 = vmatprep.subr.mxu0 %v7468_v2  ;;  %3923 = vperm.xlu1 %7340, %v3920_v16   ;;  %v9966_v16 = vld [vmem:[#allocation4] sm:$0xff] }
 0x405   : > { %6675 = vmatpush3.msra.mxu0 %v3093_v19  ;;  %v5113_v19 = vld [vmem:[%s10661_s26 + $0x468] sm:$0xff] }
 0x406   : > { %6676 = vmatprep.subr.mxu0 %v7468_v2 }
 0x407   : > { %6677 = vmatpush3.msra.mxu0 %v3092_v21  ;;  %v5112_v21 = vld [vmem:[%s10661_s26 + $0x460] sm:$0xff] }
 0x408   : > { %6678 = vmatprep.subr.mxu0 %v7468_v2  ;;  %3056 = vperm.xlu1 %7340, %v3051_v23   ;;  %v5065_v23 = vld [vmem:[%s10661_s26 + $0x2e8] sm:$0xff] }
 0x409   : > { %6679 = vmatpush3.msra.mxu0 %v3091_v24  ;;  %v5111_v24 = vld [vmem:[%s10661_s26 + $0x458] sm:$0xff] }
 0x40a   : > { %6681 = vmatmul.mubr.f32.vlgmr.msra.gmra.mxu0 %v9333_v59  ;;  %6718 = vmatprep.subr.mxu0 %v7468_v2 }
 0x40b   : > { %6719 = vmatpush3.msra.mxu0 %v5019_v29  ;;  %6750 = vmatprep.mubr.msk.f32.mxu0 %vm7469_vm0, %v7468_v2  ;;  %v5110_v29 = vld [vmem:[%s10661_s26 + $0x450] sm:$0xff] }
 0x40c   : > { %6720 = vmatprep.subr.mxu0 %v7468_v2 }
 0x40d   : > { %6721 = vmatpush3.msra.mxu0 %v5018_v35  ;;  %v5108_v35 = vld [vmem:[%s10661_s26 + $0x440] sm:$0xff] }
 0x40e   : > { %6722 = vmatprep.subr.mxu0 %v7468_v2 }
 0x40f   : > { %6723 = vmatpush3.msra.mxu0 %v5017_v37  ;;  %v5107_v37 = vld [vmem:[%s10661_s26 + $0x438] sm:$0xff] }
 0x410   : > { %6724 = vmatprep.subr.mxu0 %v7468_v2 }
 0x411   : > { %6725 = vmatpush3.msra.mxu0 %v5016_v41  ;;  %v5106_v41 = vld [vmem:[%s10661_s26 + $0x430] sm:$0xff] }
 0x412   : > { %6726 = vmatprep.subr.mxu0 %v7468_v2 }
 0x413   : > { %6727 = vmatpush3.msra.mxu0 %v5015_v56  ;;  %v5105_v56 = vld [vmem:[%s10661_s26 + $0x428] sm:$0xff] }
 0x414   : > { %6728 = vmatprep.subr.mxu0 %v7468_v2 }
 0x415   : > { %6729 = vmatpush3.msra.mxu0 %v5014_v9  ;;  %v5103_v9 = vld [vmem:[%s10661_s26 + $0x418] sm:$0xff] }
 0x416   : > { %6730 = vmatprep.subr.mxu0 %v7468_v2 }
 0x417   : > { %6731 = vmatpush3.msra.mxu0 %v5013_v13  ;;  %v5101_v13 = vld [vmem:[%s10661_s26 + $0x408] sm:$0xff] }
 0x418   : > { %6732 = vmatprep.subr.mxu0 %v7468_v2 }
 0x419   : > { %6733 = vmatpush3.msra.mxu0 %v5012_v17  ;;  %v3052_v17 = vld [vmem:[%s10556_s13 + $0x8] sm:$0xff] }
 0x41a   : > { %6734 = vmatprep.subr.mxu0 %v7468_v2  ;;  %3061 = vperm.xlu0 %7341, %v3052_v17   ;;  %v5056_v17 = vld [vmem:[%s10661_s26 + $0x2a0] sm:$0xff] }
 0x41b   : > { %6735 = vmatpush3.msra.mxu0 %v5011_v63  ;;  %v5100_v63 = vld [vmem:[%s10661_s26 + $0x400] sm:$0xff] }
 0x41c   : > { %6736 = vmatprep.subr.mxu0 %v7468_v2 }
 0x41d   : > { %6737 = vmatpush3.msra.mxu0 %v5010_v3  ;;  %v5003_v3 = vld [vmem:[%s10661_s26 + $0xf8] sm:$0xff] }
 0x41e   : > { %6738 = vmatprep.subr.mxu0 %v7468_v2  ;;  %7342 = vset.pattern.permute.xlu0 %v10806_v50  ;;  %v9762_v50 = vld [vmem:[%s10661_s26 + $0xd0] sm:$0xff] }
 0x41f   : > { %6739 = vmatpush3.msra.mxu0 %v5009_v4  ;;  %v3053_v4 = vld [vmem:[%s10556_s13 + $0x10] sm:$0xff] }
 0x420   : > { %6740 = vmatprep.subr.mxu0 %v7468_v2  ;;  %3066 = vperm.xlu1 %7340, %v3053_v4   ;;  %v5053_v4 = vld [vmem:[%s10661_s26 + $0x288] sm:$0xff] }
 0x421   : > { %6741 = vmatpush3.msra.mxu0 %v5008_v44  ;;  %v5001_v44 = vld [vmem:[%s10661_s26 + $0xe8] sm:$0xff] }
 0x422   : > { %6742 = vmatprep.subr.mxu0 %v7468_v2 }
 0x423   : > { %6743 = vmatpush3.msra.mxu0 %v5007_v48  ;;  %v5000_v48 = vld [vmem:[%s10661_s26 + $0xe0] sm:$0xff] }
 0x424   : > { %6744 = vmatprep.subr.mxu0 %v7468_v2 }
 0x425   : > { %6745 = vmatpush3.msra.mxu0 %v5006_v34  ;;  %v4999_v34 = vld [vmem:[%s10661_s26 + $0xd8] sm:$0xff] }
 0x426   : > { %6746 = vmatprep.subr.mxu0 %v7468_v2 }
 0x427   : > { %6747 = vmatpush3.msra.mxu0 %v5005_v38  ;;  %v9769_v38 = vld [vmem:[%s10661_s26 + $0xc8] sm:$0xff] }
 0x428   : > { %6748 = vmatprep.subr.mxu0 %v7468_v2 }
 0x429   : > { %6749 = vmatpush3.msra.mxu0 %v5004_v42  ;;  %v9783_v42 = vld [vmem:[%s10661_s26 + $0xb8] sm:$0xff] }
 0x42a   : > { %6751 = vmatmul.mubr.f32.vlgmr.msra.gmra.mxu0 %v9333_v59  ;;  %6788 = vmatprep.subr.mxu0 %v7468_v2 }
 0x42b   : > { %6789 = vmatpush3.msra.mxu0 %v5051_v18  ;;  %6820 = vmatprep.mubr.msk.f32.mxu0 %vm7469_vm0, %v7468_v2  ;;  %v9790_v18 = vld [vmem:[%s10661_s26 + $0xb0] sm:$0xff] }
 0x42c   : > { %6790 = vmatprep.subr.mxu0 %v7468_v2 }
 0x42d   : > { %6791 = vmatpush3.msra.mxu0 %v5050_v39  ;;  %v9797_v39 = vld [vmem:[%s10661_s26 + $0xa8] sm:$0xff] }
 0x42e   : > { %6792 = vmatprep.subr.mxu0 %v7468_v2 }
 0x42f   : > { %6793 = vmatpush3.msra.mxu0 %v5049_v43  ;;  %v9804_v43 = vld [vmem:[%s10661_s26 + $0xa0] sm:$0xff] }
 0x430   : > { %6794 = vmatprep.subr.mxu0 %v7468_v2 }
 0x431   : > { %6795 = vmatpush3.msra.mxu0 %v5048_v45  ;;  %v9811_v45 = vld [vmem:[%s10661_s26 + $0x98] sm:$0xff] }
 0x432   : > { %6796 = vmatprep.subr.mxu0 %v7468_v2 }
 0x433   : > { %6797 = vmatpush3.msra.mxu0 %v5047_v47  ;;  %v9818_v47 = vld [vmem:[%s10661_s26 + $0x90] sm:$0xff] }
 0x434   : > { %6798 = vmatprep.subr.mxu0 %v7468_v2 }
 0x435   : > { %6799 = vmatpush3.msra.mxu0 %v5046_v6  ;;  %v2867_v6 = vld [vmem:[%s10554_s11] sm:$0xff] }
 0x436   : > { %6800 = vmatprep.subr.mxu0 %v7468_v2 }
 0x437   : > { %6801 = vmatpush3.msra.mxu0 %v5045_v30 }
 0x438   : > { %6802 = vmatprep.subr.mxu0 %v7468_v2 }
 0x439   : > { %6803 = vmatpush3.msra.mxu0 %v5044_v46  ;;  %v9828_v46 = vld [vmem:[%s10661_s26 + $0x88] sm:$0xff] }
 0x43a   : > { %6804 = vmatprep.subr.mxu0 %v7468_v2 }
 0x43b   : > { %6805 = vmatpush3.msra.mxu0 %v5043_v20 }
 0x43c   : > { %6806 = vmatprep.subr.mxu0 %v7468_v2 }
 0x43d   : > { %6807 = vmatpush3.msra.mxu0 %v5042_v32  ;;  %v2868_v32 = vld [vmem:[%s10554_s11 + $0x8] sm:$0xff] }
 0x43e   : > { %6808 = vmatprep.subr.mxu0 %v7468_v2 }
 0x43f   : > { %6809 = vmatpush3.msra.mxu0 %v5041_v49 }
 0x440   : > { %6810 = vmatprep.subr.mxu0 %v7468_v2 }
 0x441   : > { %6811 = vmatpush3.msra.mxu0 %v5040_v22  ;;  %v9845_v22 = vld [vmem:[%s10661_s26 + $0x80] sm:$0xff] }
 0x442   : > { %6812 = vmatprep.subr.mxu0 %v7468_v2 }
 0x443   : > { %6813 = vmatpush3.msra.mxu0 %v5039_v25 }
 0x444   : > { %6814 = vmatprep.subr.mxu0 %v7468_v2 }
 0x445   : > { %6815 = vmatpush3.msra.mxu0 %v5038_v51  ;;  %v2869_v51 = vld [vmem:[%s10554_s11 + $0x10] sm:$0xff] }
 0x446   : > { %6816 = vmatprep.subr.mxu0 %v7468_v2 }
 0x447   : > { %6817 = vmatpush3.msra.mxu0 %v5037_v26 }
 0x448   : > { %6818 = vmatprep.subr.mxu0 %v7468_v2 }
 0x449   : > { %6819 = vmatpush3.msra.mxu0 %v5036_v12 }
 0x44a   : > { %6821 = vmatmul.mubr.f32.vlgmr.msra.gmra.mxu0 %v9333_v59  ;;  %6858 = vmatprep.subr.mxu0 %v7468_v2 }
 0x44b   : > { %6859 = vmatpush3.msra.mxu0 %v5083_v53  ;;  %6890 = vmatprep.mubr.msk.f32.mxu0 %vm7469_vm0, %v7468_v2  ;;  %v5035_v53 = vld [vmem:[%s10661_s26 + $0x1f8] sm:$0xff] }
 0x44c   : > { %6860 = vmatprep.subr.mxu0 %v7468_v2 }
 0x44d   : > { %6861 = vmatpush3.msra.mxu0 %v5082_v55 }
 0x44e   : > { %6862 = vmatprep.subr.mxu0 %v7468_v2 }
 0x44f   : > { %6863 = vmatpush3.msra.mxu0 %v5081_v57 }
 0x450   : > { %6864 = vmatprep.subr.mxu0 %v7468_v2 }
 0x451   : > { %6865 = vmatpush3.msra.mxu0 %v5080_v61  ;;  %v5033_v61 = vld [vmem:[%s10661_s26 + $0x1e8] sm:$0xff] }
 0x452   : > { %6866 = vmatprep.subr.mxu0 %v7468_v2 }
 0x453   : > { %6867 = vmatpush3.msra.mxu0 %v5079_v27  ;;  %v5032_v27 = vld [vmem:[%s10661_s26 + $0x1e0] sm:$0xff] }
 0x454   : > { %6868 = vmatprep.subr.mxu0 %v7468_v2 }
 0x455   : > { %6869 = vmatpush3.msra.mxu0 %v5078_v28  ;;  %v5031_v28 = vld [vmem:[%s10661_s26 + $0x1d8] sm:$0xff] }
 0x456   : > { %6870 = vmatprep.subr.mxu0 %v7468_v2 }
 0x457   : > { %6871 = vmatpush3.msra.mxu0 %v5077_v31  ;;  %v5030_v31 = vld [vmem:[%s10661_s26 + $0x1d0] sm:$0xff] }
 0x458   : > { %6872 = vmatprep.subr.mxu0 %v7468_v2 }
 0x459   : > { %6873 = vmatpush3.msra.mxu0 %v5076_v7  ;;  %v5029_v7 = vld [vmem:[%s10661_s26 + $0x1c8] sm:$0xff] }
 0x45a   : > { %6874 = vmatprep.subr.mxu0 %v7468_v2 }
 0x45b   : > { %6875 = vmatpush3.msra.mxu0 %v5075_v52  ;;  %v5028_v52 = vld [vmem:[%s10661_s26 + $0x1c0] sm:$0xff] }
 0x45c   : > { %6876 = vmatprep.subr.mxu0 %v7468_v2 }
 0x45d   : > { %6877 = vmatpush3.msra.mxu0 %v5074_v54  ;;  %v5027_v54 = vld [vmem:[%s10661_s26 + $0x1b8] sm:$0xff] }
 0x45e   : > { %6878 = vmatprep.subr.mxu0 %v7468_v2 }
 0x45f   : > { %6879 = vmatpush3.msra.mxu0 %v5073_v58  ;;  %v5026_v58 = vld [vmem:[%s10661_s26 + $0x1b0] sm:$0xff] }
 0x460   : > { %6880 = vmatprep.subr.mxu0 %v7468_v2 }
 0x461   : > { %6881 = vmatpush3.msra.mxu0 %v5072_v62  ;;  %v5025_v62 = vld [vmem:[%s10661_s26 + $0x1a8] sm:$0xff] }
 0x462   : > { %6882 = vmatprep.subr.mxu0 %v7468_v2 }
 0x463   : > { %6883 = vmatpush3.msra.mxu0 %v5071_v5  ;;  %v5024_v5 = vld [vmem:[%s10661_s26 + $0x1a0] sm:$0xff] }
 0x464   : > { %6884 = vmatprep.subr.mxu0 %v7468_v2 }
 0x465   : > { %6885 = vmatpush3.msra.mxu0 %v5070_v8 }
 0x466   : > { %6886 = vmatprep.subr.mxu0 %v7468_v2 }
 0x467   : > { %6887 = vmatpush3.msra.mxu0 %v5069_v10 }
 0x468   : > { %6888 = vmatprep.subr.mxu0 %v7468_v2 }
 0x469   : > { %6889 = vmatpush3.msra.mxu0 %v5068_v11  ;;  %v5022_v11 = vld [vmem:[%s10661_s26 + $0x190] sm:$0xff] }
 0x46a   : > { %6891 = vmatmul.mubr.f32.vlgmr.msra.gmra.mxu0 %v9333_v59  ;;  %6928 = vmatprep.subr.mxu0 %v7468_v2 }
 0x46b   : > { %6929 = vmatpush3.msra.mxu0 %v5115_v14  ;;  %6960 = vmatprep.mubr.msk.f32.mxu0 %vm7469_vm0, %v7468_v2  ;;  %v5021_v14 = vld [vmem:[%s10661_s26 + $0x188] sm:$0xff] }
 0x46c   : > { %6930 = vmatprep.subr.mxu0 %v7468_v2 }
 0x46d   : > { %6931 = vmatpush3.msra.mxu0 %v5114_v15  ;;  %v5020_v15 = vld [vmem:[%s10661_s26 + $0x180] sm:$0xff] }
 0x46e   : > { %6932 = vmatprep.subr.mxu0 %v7468_v2 }
 0x46f   : > { %6933 = vmatpush3.msra.mxu0 %v5113_v19  ;;  %v5067_v19 = vld [vmem:[%s10661_s26 + $0x2f8] sm:$0xff] }
 0x470   : > { %6934 = vmatprep.subr.mxu0 %v7468_v2 }
 0x471   : > { %6935 = vmatpush3.msra.mxu0 %v5112_v21  ;;  %v5066_v21 = vld [vmem:[%s10661_s26 + $0x2f0] sm:$0xff] }
 0x472   : > { %6936 = vmatprep.subr.mxu0 %v7468_v2 }
 0x473   : > { %6937 = vmatpush3.msra.mxu0 %v5111_v24  ;;  %v5064_v24 = vld [vmem:[%s10661_s26 + $0x2e0] sm:$0xff] }
 0x474   : > { %6938 = vmatprep.subr.mxu0 %v7468_v2 }
 0x475   : > { %6939 = vmatpush3.msra.mxu0 %v5110_v29  ;;  %v5063_v29 = vld [vmem:[%s10661_s26 + $0x2d8] sm:$0xff] }
 0x476   : > { %6940 = vmatprep.subr.mxu0 %v7468_v2 }
 0x477   : > { %6941 = vmatpush3.msra.mxu0 %v5109_v33  ;;  %v5062_v33 = vld [vmem:[%s10661_s26 + $0x2d0] sm:$0xff] }
 0x478   : > { %6942 = vmatprep.subr.mxu0 %v7468_v2 }
 0x479   : > { %6943 = vmatpush3.msra.mxu0 %v5108_v35  ;;  %v5061_v35 = vld [vmem:[%s10661_s26 + $0x2c8] sm:$0xff] }
 0x47a   : > { %6944 = vmatprep.subr.mxu0 %v7468_v2 }
 0x47b   : > { %6945 = vmatpush3.msra.mxu0 %v5107_v37  ;;  %v5060_v37 = vld [vmem:[%s10661_s26 + $0x2c0] sm:$0xff] }
 0x47c   : > { %6946 = vmatprep.subr.mxu0 %v7468_v2 }
 0x47d   : > { %6947 = vmatpush3.msra.mxu0 %v5106_v41  ;;  %v5059_v41 = vld [vmem:[%s10661_s26 + $0x2b8] sm:$0xff] }
 0x47e   : > { %6948 = vmatprep.subr.mxu0 %v7468_v2 }
 0x47f   : > { %6949 = vmatpush3.msra.mxu0 %v5105_v56  ;;  %v10015_v56 = vld [vmem:[#allocation2] sm:$0xff] }
 0x480   : > { %6950 = vmatprep.subr.mxu0 %v7468_v2 }
 0x481   : > { %6951 = vmatpush3.msra.mxu0 %v5104_v60  ;;  %v5058_v60 = vld [vmem:[%s10661_s26 + $0x2b0] sm:$0xff] }
 0x482   : > { %6952 = vmatprep.subr.mxu0 %v7468_v2 }
 0x483   : > { %6953 = vmatpush3.msra.mxu0 %v5103_v9 }
 0x484   : > { %6954 = vmatprep.subr.mxu0 %v7468_v2 }
 0x485   : > { %6955 = vmatpush3.msra.mxu0 %v5102_v1  ;;  %v5057_v1 = vld [vmem:[%s10661_s26 + $0x2a8] sm:$0xff] }
 0x486   : > { %6956 = vmatprep.subr.mxu0 %v7468_v2 }
 0x487   : > { %6957 = vmatpush3.msra.mxu0 %v5101_v13 }
 0x488   : > { %6958 = vmatprep.subr.mxu0 %v7468_v2 }
 0x489   : > { %6959 = vmatpush3.msra.mxu0 %v5100_v63  ;;  %v5055_v63 = vld [vmem:[%s10661_s26 + $0x298] sm:$0xff] }
 0x48a   : > { %6961 = vmatmul.mubr.f32.vlgmr.msra.gmra.mxu0 %v9333_v59  ;;  %6998 = vmatprep.subr.mxu0 %v7468_v2 }
 0x48b   : > { %6999 = vmatpush3.msra.mxu0 %v5003_v3  ;;  %7030 = vmatprep.mubr.msk.f32.mxu0 %vm7469_vm0, %v7468_v2 }
 0x48c   : > { %7000 = vmatprep.subr.mxu0 %v7468_v2 }
 0x48d   : > { %7001 = vmatpush3.msra.mxu0 %v5002_v40 }
 0x48e   : > { %7002 = vmatprep.subr.mxu0 %v7468_v2 }
 0x48f   : > { %7003 = vmatpush3.msra.mxu0 %v5001_v44 }
 0x490   : > { %7004 = vmatprep.subr.mxu0 %v7468_v2 }
 0x491   : > { %7005 = vmatpush3.msra.mxu0 %v5000_v48 }
 0x492   : > { %7006 = vmatprep.subr.mxu0 %v7468_v2 }
 0x493   : > { %7007 = vmatpush3.msra.mxu0 %v4999_v34 }
 0x494   : > { %7008 = vmatprep.subr.mxu0 %v7468_v2 }
 0x495   : > { %7009 = vmatpush3.msra.mxu0 %v9762_v50 }
 0x496   : > { %7010 = vmatprep.subr.mxu0 %v7468_v2 }
 0x497   : > { %7011 = vmatpush3.msra.mxu0 %v9769_v38 }
 0x498   : > { %7012 = vmatprep.subr.mxu0 %v7468_v2 }
 0x499   : > { %7013 = vmatpush3.msra.mxu0 %v9776_v36 }
 0x49a   : > { %7014 = vmatprep.subr.mxu0 %v7468_v2 }
 0x49b   : > { %7015 = vmatpush3.msra.mxu0 %v9783_v42 }
 0x49c   : > { %7016 = vmatprep.subr.mxu0 %v7468_v2 }
 0x49d   : > { %7017 = vmatpush3.msra.mxu0 %v9790_v18 }
 0x49e   : > { %7018 = vmatprep.subr.mxu0 %v7468_v2 }
 0x49f   : > { %7019 = vmatpush3.msra.mxu0 %v9797_v39 }
 0x4a0   : > { %7020 = vmatprep.subr.mxu0 %v7468_v2 }
 0x4a1   : > { %7021 = vmatpush3.msra.mxu0 %v9804_v43 }
 0x4a2   : > { %7022 = vmatprep.subr.mxu0 %v7468_v2 }
 0x4a3   : > { %7023 = vmatpush3.msra.mxu0 %v9811_v45 }
 0x4a4   : > { %7024 = vmatprep.subr.mxu0 %v7468_v2 }
 0x4a5   : > { %7025 = vmatpush3.msra.mxu0 %v9818_v47 }
 0x4a6   : > { %v2793_v30 = vpop.f32.mrf.mxu0  ;;  %7026 = vmatprep.subr.mxu0 %v7468_v2 }
 0x4a7   : > { %6638 = vmatpush3.msra.mxu1 %v2793_v30  ;;  %7027 = vmatpush3.msra.mxu0 %v9828_v46  ;;  %v5088_v30 = vld [vmem:[%s10661_s26 + $0x3a0] sm:$0xff] }
 0x4a8   : > { %v6590_v20 = vpop.f32.mrf.mxu0  ;;  %6640 = vmatmul.mubr.msk.f32.vlgmr.msra.gmra.mxu1 %vm796_vm2, %v2867_v6  ;;  %6683 = vmatprep.subr.mxu1 %v7468_v2  ;;  %v5089_v6 = vld [vmem:[%s10661_s26 + $0x3a8] sm:$0xff] }
 0x4a9   : > { %6684 = vmatpush3.msra.mxu1 %v5003_v3  ;;  %6642 = vmatprep.mubr.msk.f32.mxu1 %vm7469_vm0, %v7468_v2  ;;  %v5054_v3 = vld [vmem:[%s10661_s26 + $0x290] sm:$0xff] }
 0x4aa   : > { %6685 = vmatprep.subr.mxu1 %v7468_v2  ;;  %v9840_v49 = vpop.f32.mrf.mxu0  ;;  %7028 = vmatprep.subr.mxu0 %v7468_v2  ;;  %v5086_v20 = vld [vmem:[%s10661_s26 + $0x390] sm:$0xff] }
 0x4ab   : > { %6686 = vmatpush3.msra.mxu1 %v5002_v40  ;;  %7029 = vmatpush3.msra.mxu0 %v9845_v22  ;;  %v5052_v40 = vld [vmem:[%s10661_s26 + $0x280] sm:$0xff] }
 0x4ac   : > { %6687 = vmatprep.subr.mxu1 %v7468_v2  ;;  %v6630_v25 = vpop.f32.mrf.mxu0  ;;  %6643 = vmatmul.mubr.msk.f32.gmra.mxu1 %vm796_vm2, %v2868_v32  ;;  %v5085_v32 = vld [vmem:[%s10661_s26 + $0x388] sm:$0xff] }
 0x4ad   : > { %6688 = vmatpush3.msra.mxu1 %v5001_v44  ;;  %6645 = vmatprep.mubr.msk.f32.mxu1 %vm7469_vm0, %v7468_v2  ;;  %v5099_v44 = vld [vmem:[%s10661_s26 + $0x3f8] sm:$0xff] }
 0x4ae   : > { %6689 = vmatprep.subr.mxu1 %v7468_v2  ;;  %v9857_v26 = vpop.f32.mrf.mxu0  ;;  %7031 = vmatmul.mubr.f32.vlgmr.msra.gmra.mxu0 %v9278_v0  ;;  %v5034_v0 = vld [vmem:[%s10661_s26 + $0x1f0] sm:$0xff]  ;;  %v7379_v25 = vld [vmem:[%s10661_s26 + $0x78] sm:$0xff] }
 0x4af   : > { %6690 = vmatpush3.msra.mxu1 %v5000_v48  ;;  %7068 = vmatprep.subr.mxu0 %v7468_v2  ;;  %v5098_v48 = vld [vmem:[%s10661_s26 + $0x3f0] sm:$0xff] }
 0x4b0   : > { %6691 = vmatprep.subr.mxu1 %v7468_v2  ;;  %v6633_v12 = vpop.f32.mrf.mxu0  ;;  %6646 = vmatmul.mubr.msk.f32.gmra.mxu1 %vm796_vm2, %v2869_v51 }
 0x4b1   : > { %6692 = vmatpush3.msra.mxu1 %v4999_v34  ;;  %6715 = vmatprep.mubr.msk.f32.mxu1 %vm7469_vm0, %v7468_v2  ;;  %v5097_v34 = vld [vmem:[%s10661_s26 + $0x3e8] sm:$0xff]  ;;  %v7380_v12 = vld [vmem:[%s10661_s26 + $0x70] sm:$0xff] }
 0x4b2   : > { %6693 = vmatprep.subr.mxu1 %v7468_v2  ;;  %v9869_v55 = vpop.f32.mrf.mxu0  ;;  %7069 = vmatpush3.msra.mxu0 %v5035_v53 }
 0x4b3   : > { %6694 = vmatpush3.msra.mxu1 %v9762_v50  ;;  %7070 = vmatprep.subr.mxu0 %v7468_v2  ;;  %v5096_v50 = vld [vmem:[%s10661_s26 + $0x3e0] sm:$0xff] }
 0x4b4   : > { %6695 = vmatprep.subr.mxu1 %v7468_v2  ;;  %v6636_v57 = vpop.f32.mrf.mxu0  ;;  %7071 = vmatpush3.msra.mxu0 %v5034_v0 }
 0x4b5   : > { %6696 = vmatpush3.msra.mxu1 %v9769_v38  ;;  %7072 = vmatprep.subr.mxu0 %v7468_v2  ;;  %v5095_v38 = vld [vmem:[%s10661_s26 + $0x3d8] sm:$0xff]  ;;  %v7382_v57 = vld [vmem:[%s10661_s26 + $0x60] sm:$0xff] }
 0x4b6   : > { %6697 = vmatprep.subr.mxu1 %v7468_v2  ;;  %7073 = vmatpush3.msra.mxu0 %v5033_v61 }
 0x4b7   : > { %6698 = vmatpush3.msra.mxu1 %v9776_v36  ;;  %7074 = vmatprep.subr.mxu0 %v7468_v2  ;;  %v5094_v36 = vld [vmem:[%s10661_s26 + $0x3d0] sm:$0xff] }
 0x4b8   : > { %6699 = vmatprep.subr.mxu1 %v7468_v2  ;;  %7075 = vmatpush3.msra.mxu0 %v5032_v27 }
 0x4b9   : > { %6700 = vmatpush3.msra.mxu1 %v9783_v42  ;;  %7076 = vmatprep.subr.mxu0 %v7468_v2  ;;  %v5093_v42 = vld [vmem:[%s10661_s26 + $0x3c8] sm:$0xff] }
 0x4ba   : > { %6701 = vmatprep.subr.mxu1 %v7468_v2  ;;  %7077 = vmatpush3.msra.mxu0 %v5031_v28 }
 0x4bb   : > { %6702 = vmatpush3.msra.mxu1 %v9790_v18  ;;  %7078 = vmatprep.subr.mxu0 %v7468_v2  ;;  %v5092_v18 = vld [vmem:[%s10661_s26 + $0x3c0] sm:$0xff] }
 0x4bc   : > { %6703 = vmatprep.subr.mxu1 %v7468_v2  ;;  %7079 = vmatpush3.msra.mxu0 %v5030_v31 }
 0x4bd   : > { %6704 = vmatpush3.msra.mxu1 %v9797_v39  ;;  %7080 = vmatprep.subr.mxu0 %v7468_v2 }
 0x4be   : > { %6705 = vmatprep.subr.mxu1 %v7468_v2  ;;  %7081 = vmatpush3.msra.mxu0 %v5029_v7 }
 0x4bf   : > { %6706 = vmatpush3.msra.mxu1 %v9804_v43  ;;  %7082 = vmatprep.subr.mxu0 %v7468_v2  ;;  %v5091_v43 = vld [vmem:[%s10661_s26 + $0x3b8] sm:$0xff] }
 0x4c0   : > { %6707 = vmatprep.subr.mxu1 %v7468_v2  ;;  %7083 = vmatpush3.msra.mxu0 %v5028_v52 }
 0x4c1   : > { %6708 = vmatpush3.msra.mxu1 %v9811_v45  ;;  %7084 = vmatprep.subr.mxu0 %v7468_v2 }
 0x4c2   : > { %6709 = vmatprep.subr.mxu1 %v7468_v2  ;;  %7085 = vmatpush3.msra.mxu0 %v5027_v54 }
 0x4c3   : > { %6710 = vmatpush3.msra.mxu1 %v9818_v47  ;;  %7086 = vmatprep.subr.mxu0 %v7468_v2  ;;  %v5090_v47 = vld [vmem:[%s10661_s26 + $0x3b0] sm:$0xff] }
 0x4c4   : > { %6711 = vmatprep.subr.mxu1 %v7468_v2  ;;  %7087 = vmatpush3.msra.mxu0 %v5026_v58 }
 0x4c5   : > { %6712 = vmatpush3.msra.mxu1 %v9828_v46  ;;  %7088 = vmatprep.subr.mxu0 %v7468_v2  ;;  %v5087_v46 = vld [vmem:[%s10661_s26 + $0x398] sm:$0xff] }
 0x4c6   : > { %6713 = vmatprep.subr.mxu1 %v7468_v2  ;;  %7089 = vmatpush3.msra.mxu0 %v5025_v62 }
 0x4c7   : > { %6714 = vmatpush3.msra.mxu1 %v9845_v22  ;;  %7090 = vmatprep.subr.mxu0 %v7468_v2  ;;  %v5084_v22 = vld [vmem:[%s10661_s26 + $0x380] sm:$0xff] }
 0x4c8   : > { %6716 = vmatmul.mubr.f32.vlgmr.msra.gmra.mxu1 %v9333_v59  ;;  %6753 = vmatprep.subr.mxu1 %v7468_v2  ;;  %v5023_v59 = vld [vmem:[%s10661_s26 + $0x198] sm:$0xff] }
 0x4c9   : > { %6754 = vmatpush3.msra.mxu1 %v5035_v53  ;;  %6785 = vmatprep.mubr.msk.f32.mxu1 %vm7469_vm0, %v7468_v2 }
 0x4ca   : > { %v9940_v8 = vpop.f32.mrf.mxu0  ;;  %6755 = vmatprep.subr.mxu1 %v7468_v2  ;;  %7091 = vmatpush3.msra.mxu0 %v5024_v5 }
 0x4cb   : > { %6756 = vmatpush3.msra.mxu1 %v5034_v0  ;;  %7092 = vmatprep.subr.mxu0 %v7468_v2  ;;  %v7381_v0 = vld [vmem:[%s10661_s26 + $0x68] sm:$0xff] }
 0x4cc   : > { %v6682_v10 = vpop.f32.mrf.mxu0  ;;  %6757 = vmatprep.subr.mxu1 %v7468_v2  ;;  %7093 = vmatpush3.msra.mxu0 %v5023_v59 }
 0x4cd   : > { %6758 = vmatpush3.msra.mxu1 %v5033_v61  ;;  %7094 = vmatprep.subr.mxu0 %v7468_v2  ;;  %v7383_v61 = vld [vmem:[%s10661_s26 + $0x58] sm:$0xff]  ;;  %v7394_v10 = vld [vmem:[%s10661_s26] sm:$0xff] }
 0x4ce   : > { %6759 = vmatprep.subr.mxu1 %v7468_v2  ;;  %7095 = vmatpush3.msra.mxu0 %v5022_v11 }
 0x4cf   : > { %6760 = vmatpush3.msra.mxu1 %v5032_v27  ;;  %7096 = vmatprep.subr.mxu0 %v7468_v2  ;;  %v7384_v27 = vld [vmem:[%s10661_s26 + $0x50] sm:$0xff] }
 0x4d0   : > { %6761 = vmatprep.subr.mxu1 %v7468_v2  ;;  %7097 = vmatpush3.msra.mxu0 %v5021_v14 }
 0x4d1   : > { %6762 = vmatpush3.msra.mxu1 %v5031_v28  ;;  %7098 = vmatprep.subr.mxu0 %v7468_v2  ;;  %v7385_v28 = vld [vmem:[%s10661_s26 + $0x48] sm:$0xff] }
 0x4d2   : > { %6763 = vmatprep.subr.mxu1 %v7468_v2  ;;  %7099 = vmatpush3.msra.mxu0 %v5020_v15 }
 0x4d3   : > { %6764 = vmatpush3.msra.mxu1 %v5030_v31  ;;  %7100 = vmatprep.mubr.msk.f32.mxu0 %vm7469_vm0, %v7468_v2  ;;  %v7386_v31 = vld [vmem:[%s10661_s26 + $0x40] sm:$0xff] }
 0x4d4   : > { %6765 = vmatprep.subr.mxu1 %v7468_v2  ;;  %7101 = vmatmul.mubr.f32.vlgmr.msra.gmra.mxu0 %v9966_v16 }
 0x4d5   : > { %6766 = vmatpush3.msra.mxu1 %v5029_v7  ;;  %7138 = vmatprep.subr.mxu0 %v7468_v2  ;;  %v7387_v7 = vld [vmem:[%s10661_s26 + $0x38] sm:$0xff] }
 0x4d6   : > { %6767 = vmatprep.subr.mxu1 %v7468_v2  ;;  %7139 = vmatpush3.msra.mxu0 %v5067_v19 }
 0x4d7   : > { %6768 = vmatpush3.msra.mxu1 %v5028_v52  ;;  %7140 = vmatprep.subr.mxu0 %v7468_v2  ;;  %v7388_v52 = vld [vmem:[%s10661_s26 + $0x30] sm:$0xff] }
 0x4d8   : > { %6769 = vmatprep.subr.mxu1 %v7468_v2  ;;  %7141 = vmatpush3.msra.mxu0 %v5066_v21 }
 0x4d9   : > { %6770 = vmatpush3.msra.mxu1 %v5027_v54  ;;  %7142 = vmatprep.subr.mxu0 %v7468_v2  ;;  %v7389_v54 = vld [vmem:[%s10661_s26 + $0x28] sm:$0xff] }
 0x4da   : > { %6771 = vmatprep.subr.mxu1 %v7468_v2  ;;  %7143 = vmatpush3.msra.mxu0 %v5065_v23 }
 0x4db   : > { %6772 = vmatpush3.msra.mxu1 %v5026_v58  ;;  %7144 = vmatprep.subr.mxu0 %v7468_v2  ;;  %v7390_v58 = vld [vmem:[%s10661_s26 + $0x20] sm:$0xff] }
 0x4dc   : > { %6773 = vmatprep.subr.mxu1 %v7468_v2  ;;  %7145 = vmatpush3.msra.mxu0 %v5064_v24 }
 0x4dd   : > { %6774 = vmatpush3.msra.mxu1 %v5025_v62  ;;  %7146 = vmatprep.subr.mxu0 %v7468_v2  ;;  %v7391_v62 = vld [vmem:[%s10661_s26 + $0x18] sm:$0xff] }
 0x4de   : > { %6775 = vmatprep.subr.mxu1 %v7468_v2  ;;  %7147 = vmatpush3.msra.mxu0 %v5063_v29 }
 0x4df   : > { %6776 = vmatpush3.msra.mxu1 %v5024_v5  ;;  %7148 = vmatprep.subr.mxu0 %v7468_v2  ;;  %v7392_v5 = vld [vmem:[%s10661_s26 + $0x10] sm:$0xff] }
 0x4e0   : > { %6777 = vmatprep.subr.mxu1 %v7468_v2  ;;  %7149 = vmatpush3.msra.mxu0 %v5062_v33 }
 0x4e1   : > { %6778 = vmatpush3.msra.mxu1 %v5023_v59  ;;  %7150 = vmatprep.subr.mxu0 %v7468_v2  ;;  %v7393_v59 = vld [vmem:[%s10661_s26 + $0x8] sm:$0xff] }
 0x4e2   : > { %6779 = vmatprep.subr.mxu1 %v7468_v2  ;;  %7151 = vmatpush3.msra.mxu0 %v5061_v35 }
 0x4e3   : > { %6780 = vmatpush3.msra.mxu1 %v5022_v11  ;;  %7152 = vmatprep.subr.mxu0 %v7468_v2  ;;  %v7395_v11 = vld [vmem:[%s10661_s26 + $0x178] sm:$0xff] }
 0x4e4   : > { %6781 = vmatprep.subr.mxu1 %v7468_v2  ;;  %7153 = vmatpush3.msra.mxu0 %v5060_v37 }
 0x4e5   : > { %6782 = vmatpush3.msra.mxu1 %v5021_v14  ;;  %7154 = vmatprep.subr.mxu0 %v7468_v2 }
 0x4e6   : > { %6783 = vmatprep.subr.mxu1 %v7468_v2  ;;  %7155 = vmatpush3.msra.mxu0 %v5059_v41 }
 0x4e7   : > { %6784 = vmatpush3.msra.mxu1 %v5020_v15  ;;  %7156 = vmatprep.subr.mxu0 %v7468_v2  ;;  %v7396_v15 = vld [vmem:[%s10661_s26 + $0x170] sm:$0xff] }
 0x4e8   : > { %6786 = vmatmul.mubr.f32.vlgmr.msra.gmra.mxu1 %v10015_v56  ;;  %6823 = vmatprep.subr.mxu1 %v7468_v2 }
 0x4e9   : > { %6824 = vmatpush3.msra.mxu1 %v5067_v19  ;;  %6855 = vmatprep.mubr.msk.f32.mxu1 %vm7469_vm0, %v7468_v2 }
 0x4ea   : > { %v10024_v9 = vpop.f32.mrf.mxu0  ;;  %6825 = vmatprep.subr.mxu1 %v7468_v2  ;;  %7157 = vmatpush3.msra.mxu0 %v5058_v60 }
 0x4eb   : > { %6826 = vmatpush3.msra.mxu1 %v5066_v21  ;;  %7158 = vmatprep.subr.mxu0 %v7468_v2  ;;  %v7397_v21 = vld [vmem:[%s10661_s26 + $0x168] sm:$0xff] }
 0x4ec   : > { %v6752_v13 = vpop.f32.mrf.mxu0  ;;  %6827 = vmatprep.subr.mxu1 %v7468_v2  ;;  %7159 = vmatpush3.msra.mxu0 %v5057_v1 }
 0x4ed   : > { %6828 = vmatpush3.msra.mxu1 %v5065_v23  ;;  %7160 = vmatprep.subr.mxu0 %v7468_v2  ;;  %v7398_v23 = vld [vmem:[%s10661_s26 + $0x160] sm:$0xff]  ;;  %v7408_v13 = vld [vmem:[%s10661_s26 + $0x110] sm:$0xff] }
 0x4ee   : > { %6829 = vmatprep.subr.mxu1 %v7468_v2  ;;  %7161 = vmatpush3.msra.mxu0 %v5056_v17 }
 0x4ef   : > { %6830 = vmatpush3.msra.mxu1 %v5064_v24  ;;  %7162 = vmatprep.subr.mxu0 %v7468_v2  ;;  %v7399_v24 = vld [vmem:[%s10661_s26 + $0x158] sm:$0xff] }
 0x4f0   : > { %6831 = vmatprep.subr.mxu1 %v7468_v2  ;;  %7163 = vmatpush3.msra.mxu0 %v5055_v63 }
 0x4f1   : > { %6832 = vmatpush3.msra.mxu1 %v5063_v29  ;;  %7164 = vmatprep.subr.mxu0 %v7468_v2  ;;  %v7400_v29 = vld [vmem:[%s10661_s26 + $0x150] sm:$0xff] }
 0x4f2   : > { %6833 = vmatprep.subr.mxu1 %v7468_v2  ;;  %7165 = vmatpush3.msra.mxu0 %v5054_v3 }
 0x4f3   : > { %6834 = vmatpush3.msra.mxu1 %v5062_v33  ;;  %7166 = vmatprep.subr.mxu0 %v7468_v2  ;;  %v7401_v33 = vld [vmem:[%s10661_s26 + $0x148] sm:$0xff] }
 0x4f4   : > { %6835 = vmatprep.subr.mxu1 %v7468_v2  ;;  %7167 = vmatpush3.msra.mxu0 %v5053_v4 }
 0x4f5   : > { %6836 = vmatpush3.msra.mxu1 %v5061_v35  ;;  %7168 = vmatprep.subr.mxu0 %v7468_v2  ;;  %v7402_v35 = vld [vmem:[%s10661_s26 + $0x140] sm:$0xff] }
 0x4f6   : > { %6837 = vmatprep.subr.mxu1 %v7468_v2  ;;  %7169 = vmatpush3.msra.mxu0 %v5052_v40 }
 0x4f7   : > { %6838 = vmatpush3.msra.mxu1 %v5060_v37  ;;  %7170 = vmatprep.mubr.msk.f32.mxu0 %vm7469_vm0, %v7468_v2  ;;  %v7403_v37 = vld [vmem:[%s10661_s26 + $0x138] sm:$0xff] }
 0x4f8   : > { %6839 = vmatprep.subr.mxu1 %v7468_v2  ;;  %7171 = vmatmul.mubr.f32.vlgmr.msra.gmra.mxu0 %v9966_v16 }
 0x4f9   : > { %6840 = vmatpush3.msra.mxu1 %v5059_v41  ;;  %7208 = vmatprep.subr.mxu0 %v7468_v2  ;;  %v7404_v41 = vld [vmem:[%s10661_s26 + $0x130] sm:$0xff] }
 0x4fa   : > { %6841 = vmatprep.subr.mxu1 %v7468_v2  ;;  %7209 = vmatpush3.msra.mxu0 %v5099_v44 }
 0x4fb   : > { %6842 = vmatpush3.msra.mxu1 %v5058_v60  ;;  %7210 = vmatprep.subr.mxu0 %v7468_v2  ;;  %v7406_v60 = vld [vmem:[%s10661_s26 + $0x120] sm:$0xff] }
 0x4fc   : > { %6843 = vmatprep.subr.mxu1 %v7468_v2  ;;  %7211 = vmatpush3.msra.mxu0 %v5098_v48 }
 0x4fd   : > { %6844 = vmatpush3.msra.mxu1 %v5057_v1  ;;  %7212 = vmatprep.subr.mxu0 %v7468_v2  ;;  %v7407_v1 = vld [vmem:[%s10661_s26 + $0x118] sm:$0xff] }
 0x4fe   : > { %6845 = vmatprep.subr.mxu1 %v7468_v2  ;;  %7213 = vmatpush3.msra.mxu0 %v5097_v34 }
 0x4ff   : > { %6846 = vmatpush3.msra.mxu1 %v5056_v17  ;;  %7214 = vmatprep.subr.mxu0 %v7468_v2  ;;  %v7409_v17 = vld [vmem:[%s10661_s26 + $0x108] sm:$0xff] }
 0x500   : > { %6847 = vmatprep.subr.mxu1 %v7468_v2  ;;  %7215 = vmatpush3.msra.mxu0 %v5096_v50 }
 0x501   : > { %6848 = vmatpush3.msra.mxu1 %v5055_v63  ;;  %7216 = vmatprep.subr.mxu0 %v7468_v2  ;;  %v7410_v63 = vld [vmem:[%s10661_s26 + $0x100] sm:$0xff] }
 0x502   : > { %6849 = vmatprep.subr.mxu1 %v7468_v2  ;;  %7217 = vmatpush3.msra.mxu0 %v5095_v38 }
 0x503   : > { %6850 = vmatpush3.msra.mxu1 %v5054_v3  ;;  %7218 = vmatprep.subr.mxu0 %v7468_v2 }
 0x504   : > { %6851 = vmatprep.subr.mxu1 %v7468_v2  ;;  %7219 = vmatpush3.msra.mxu0 %v5094_v36 }
 0x505   : > { %6852 = vmatpush3.msra.mxu1 %v5053_v4  ;;  %7220 = vmatprep.subr.mxu0 %v7468_v2  ;;  %v7411_v4 = vld [vmem:[%s10661_s26 + $0x278] sm:$0xff] }
 0x506   : > { %6853 = vmatprep.subr.mxu1 %v7468_v2  ;;  %7221 = vmatpush3.msra.mxu0 %v5093_v42 }
 0x507   : > { %6854 = vmatpush3.msra.mxu1 %v5052_v40  ;;  %7222 = vmatprep.subr.mxu0 %v7468_v2 }
 0x508   : > { %6856 = vmatmul.mubr.f32.vlgmr.msra.gmra.mxu1 %v10015_v56  ;;  %6893 = vmatprep.subr.mxu1 %v7468_v2 }
 0x509   : > { %6894 = vmatpush3.msra.mxu1 %v5099_v44  ;;  %6925 = vmatprep.mubr.msk.f32.mxu1 %vm7469_vm0, %v7468_v2  ;;  %v7412_v44 = vld [vmem:[%s10661_s26 + $0x270] sm:$0xff] }
 0x50a   : > { %v10104_v39 = vpop.f32.mrf.mxu0  ;;  %6895 = vmatprep.subr.mxu1 %v7468_v2  ;;  %7223 = vmatpush3.msra.mxu0 %v5092_v18 }
 0x50b   : > { %6896 = vmatpush3.msra.mxu1 %v5098_v48  ;;  %7224 = vmatprep.subr.mxu0 %v7468_v2 }
 0x50c   : > { %v6822_v45 = vpop.f32.mrf.mxu0  ;;  %6897 = vmatprep.subr.mxu1 %v7468_v2  ;;  %7225 = vmatpush3.msra.mxu0 %v5091_v43 }
 0x50d   : > { %6898 = vmatpush3.msra.mxu1 %v5097_v34  ;;  %7226 = vmatprep.subr.mxu0 %v7468_v2  ;;  %v7413_v34 = vld [vmem:[%s10661_s26 + $0x268] sm:$0xff] }
 0x50e   : > { %6899 = vmatprep.subr.mxu1 %v7468_v2  ;;  %7227 = vmatpush3.msra.mxu0 %v5090_v47  ;;  %v7417_v45 = vld [vmem:[%s10661_s26 + $0x248] sm:$0xff] }
 0x50f   : > { %6900 = vmatpush3.msra.mxu1 %v5096_v50  ;;  %7228 = vmatprep.subr.mxu0 %v7468_v2 }
 0x510   : > { %6901 = vmatprep.subr.mxu1 %v7468_v2  ;;  %7229 = vmatpush3.msra.mxu0 %v5089_v6 }
 0x511   : > { %6902 = vmatpush3.msra.mxu1 %v5095_v38  ;;  %7230 = vmatprep.subr.mxu0 %v7468_v2  ;;  %v7414_v38 = vld [vmem:[%s10661_s26 + $0x260] sm:$0xff] }
 0x512   : > { %6903 = vmatprep.subr.mxu1 %v7468_v2  ;;  %7231 = vmatpush3.msra.mxu0 %v5088_v30 }
 0x513   : > { %6904 = vmatpush3.msra.mxu1 %v5094_v36  ;;  %7232 = vmatprep.subr.mxu0 %v7468_v2 }
 0x514   : > { %6905 = vmatprep.subr.mxu1 %v7468_v2  ;;  %7233 = vmatpush3.msra.mxu0 %v5087_v46 }
 0x515   : > { %6906 = vmatpush3.msra.mxu1 %v5093_v42  ;;  %7234 = vmatprep.subr.mxu0 %v7468_v2  ;;  %v7415_v42 = vld [vmem:[%s10661_s26 + $0x258] sm:$0xff] }
 0x516   : > { %6907 = vmatprep.subr.mxu1 %v7468_v2  ;;  %7235 = vmatpush3.msra.mxu0 %v5086_v20 }
 0x517   : > { %6908 = vmatpush3.msra.mxu1 %v5092_v18  ;;  %7236 = vmatprep.subr.mxu0 %v7468_v2 }
 0x518   : > { %6909 = vmatprep.subr.mxu1 %v7468_v2  ;;  %7237 = vmatpush3.msra.mxu0 %v5085_v32 }
 0x519   : > { %6910 = vmatpush3.msra.mxu1 %v5091_v43  ;;  %7238 = vmatprep.subr.mxu0 %v7468_v2  ;;  %v7416_v43 = vld [vmem:[%s10661_s26 + $0x250] sm:$0xff] }
 0x51a   : > { %6911 = vmatprep.subr.mxu1 %v7468_v2  ;;  %7239 = vmatpush3.msra.mxu0 %v5084_v22 }
 0x51b   : > { %6912 = vmatpush3.msra.mxu1 %v5090_v47  ;;  %7240 = vmatprep.mubr.msk.f32.mxu0 %vm7469_vm0, %v7468_v2  ;;  %v7418_v47 = vld [vmem:[%s10661_s26 + $0x240] sm:$0xff] }
 0x51c   : > { %6913 = vmatprep.subr.mxu1 %v7468_v2  ;;  %7241 = vmatmul.mubr.f32.vlgmr.msra.gmra.mxu0 %v9966_v16 }
 0x51d   : > { %6914 = vmatpush3.msra.mxu1 %v5089_v6  ;;  %7278 = vmatprep.subr.mxu0 %v7468_v2  ;;  %v7419_v6 = vld [vmem:[%s10661_s26 + $0x238] sm:$0xff] }
 0x51e   : > { %6915 = vmatprep.subr.mxu1 %v7468_v2  ;;  %7280 = vmatprep.mubr.msk.f32.mxu0 %vm7469_vm0, %v7468_v2 }
 0x51f   : > { %6916 = vmatpush3.msra.mxu1 %v5088_v30  ;;  %v7420_v30 = vld [vmem:[%s10661_s26 + $0x230] sm:$0xff] }
 0x520   : > { %6917 = vmatprep.subr.mxu1 %v7468_v2 }
 0x521   : > { %6918 = vmatpush3.msra.mxu1 %v5087_v46  ;;  %v7421_v46 = vld [vmem:[%s10661_s26 + $0x228] sm:$0xff] }
 0x522   : > { %6919 = vmatprep.subr.mxu1 %v7468_v2 }
 0x523   : > { %6920 = vmatpush3.msra.mxu1 %v5086_v20  ;;  %v7422_v20 = vld [vmem:[%s10661_s26 + $0x220] sm:$0xff] }
 0x524   : > { %6921 = vmatprep.subr.mxu1 %v7468_v2 }
 0x525   : > { %6922 = vmatpush3.msra.mxu1 %v5085_v32  ;;  %v7423_v32 = vld [vmem:[%s10661_s26 + $0x218] sm:$0xff] }
 0x526   : > { %6923 = vmatprep.subr.mxu1 %v7468_v2 }
 0x527   : > { %6924 = vmatpush3.msra.mxu1 %v5084_v22  ;;  %v3180_v22 = vpop.permute.xlu1 %3179 }
 0x528   : > { %6926 = vmatmul.mubr.f32.vlgmr.msra.gmra.mxu1 %v10015_v56  ;;  %6963 = vmatprep.subr.mxu1 %v7468_v2  ;;  %v7405_v56 = vld [vmem:[%s10661_s26 + $0x128] sm:$0xff] }
 0x529   : > { %6964 = vmatpush3.msra.mxu1 %v7379_v25  ;;  %6995 = vmatprep.mubr.msk.f32.mxu1 %vm7469_vm0, %v7468_v2  ;;  %v7424_v25 = vld [vmem:[%s10661_s26 + $0x210] sm:$0xff] }
 0x52a   : > { %v10166_v51 = vpop.f32.mrf.mxu0  ;;  %6965 = vmatprep.subr.mxu1 %v7468_v2 }
 0x52b   : > { %6966 = vmatpush3.msra.mxu1 %v7380_v12  ;;  %v7425_v12 = vld [vmem:[%s10661_s26 + $0x208] sm:$0xff] }
 0x52c   : > { %v6892_v53 = vpop.f32.mrf.mxu0  ;;  %6967 = vmatprep.subr.mxu1 %v7468_v2 }
 0x52d   : > { %6968 = vmatpush3.msra.mxu1 %v7381_v0  ;;  %v3364_v53 = vpop.permute.xlu1 %3363  ;;  %v7426_v0 = vld [vmem:[%s10661_s26 + $0x200] sm:$0xff] }
 0x52e   : > { %6969 = vmatprep.subr.mxu1 %v7468_v2 }
 0x52f   : > { %6970 = vmatpush3.msra.mxu1 %v7382_v57  ;;  %v3272_v57 = vpop.permute.xlu0 %3271 }
 0x530   : > { %6971 = vmatprep.subr.mxu1 %v7468_v2 }
 0x531   : > { %6972 = vmatpush3.msra.mxu1 %v7383_v61 }
 0x532   : > { %6973 = vmatprep.subr.mxu1 %v7468_v2 }
 0x533   : > { %6974 = vmatpush3.msra.mxu1 %v7384_v27  ;;  %v3182_v27 = vmul.f32 %v3180_v22, %v9940_v8  ;;  %v7428_v8 = vld [vmem:[%s10661_s26 + $0x370] sm:$0xff]  ;;  %v7453_v22 = vld [vmem:[%s10661_s26 + $0x428] sm:$0xff] }
 0x534   : > { %6975 = vmatprep.subr.mxu1 %v7468_v2 }
 0x535   : > { %6976 = vmatpush3.msra.mxu1 %v7385_v28 }
 0x536   : > { %6977 = vmatprep.subr.mxu1 %v7468_v2 }
 0x537   : > { %6978 = vmatpush3.msra.mxu1 %v7386_v31  ;;  %v7427_v31 = vld [vmem:[%s10661_s26 + $0x378] sm:$0xff] }
 0x538   : > { %6979 = vmatprep.subr.mxu1 %v7468_v2 }
 0x539   : > { %6980 = vmatpush3.msra.mxu1 %v7387_v7 }
 0x53a   : > { %6981 = vmatprep.subr.mxu1 %v7468_v2 }
 0x53b   : > { %6982 = vmatpush3.msra.mxu1 %v7388_v52 }
 0x53c   : > { %6983 = vmatprep.subr.mxu1 %v7468_v2 }
 0x53d   : > { %6984 = vmatpush3.msra.mxu1 %v7389_v54  ;;  %v3366_v54 = vmul.f32 %v3364_v53, %v10024_v9  ;;  %v7430_v9 = vld [vmem:[%s10661_s26 + $0x360] sm:$0xff]  ;;  %v7455_v53 = vld [vmem:[%s10661_s26 + $0x418] sm:$0xff] }
 0x53e   : > { %6985 = vmatprep.subr.mxu1 %v7468_v2 }
 0x53f   : > { %6986 = vmatpush3.msra.mxu1 %v7390_v58 }
 0x540   : > { %6987 = vmatprep.subr.mxu1 %v7468_v2 }
 0x541   : > { %6988 = vmatpush3.msra.mxu1 %v7391_v62 }
 0x542   : > { %6989 = vmatprep.subr.mxu1 %v7468_v2 }
 0x543   : > { %6990 = vmatpush3.msra.mxu1 %v7392_v5  ;;  %v7429_v5 = vld [vmem:[%s10661_s26 + $0x368] sm:$0xff] }
 0x544   : > { %6991 = vmatprep.subr.mxu1 %v7468_v2 }
 0x545   : > { %6992 = vmatpush3.msra.mxu1 %v7393_v59 }
 0x546   : > { %6993 = vmatprep.subr.mxu1 %v7468_v2 }
 0x547   : > { %6994 = vmatpush3.msra.mxu1 %v7394_v10  ;;  %v7431_v10 = vld [vmem:[%s10661_s26 + $0x358] sm:$0xff] }
 0x548   : > { %6996 = vmatmul.mubr.f32.vlgmr.msra.gmra.mxu1 %v9966_v16  ;;  %7033 = vmatprep.subr.mxu1 %v7468_v2 }
 0x549   : > { %7034 = vmatpush3.msra.mxu1 %v7395_v11  ;;  %7065 = vmatprep.mubr.msk.f32.mxu1 %vm7469_vm0, %v7468_v2  ;;  %v7432_v11 = vld [vmem:[%s10661_s26 + $0x350] sm:$0xff] }
 0x54a   : > { %v10235_v14 = vpop.f32.mrf.mxu0  ;;  %7035 = vmatprep.subr.mxu1 %v7468_v2 }
 0x54b   : > { %7036 = vmatpush3.msra.mxu1 %v7396_v15  ;;  %v7433_v15 = vld [vmem:[%s10661_s26 + $0x348] sm:$0xff] }
 0x54c   : > { %v6962_v19 = vpop.f32.mrf.mxu0  ;;  %7037 = vmatprep.subr.mxu1 %v7468_v2 }
 0x54d   : > { %7038 = vmatpush3.msra.mxu1 %v7397_v21  ;;  %v7434_v19 = vld [vmem:[%s10661_s26 + $0x340] sm:$0xff]  ;;  %v7435_v21 = vld [vmem:[%s10661_s26 + $0x338] sm:$0xff] }
 0x54e   : > { %7039 = vmatprep.subr.mxu1 %v7468_v2 }
 0x54f   : > { %7040 = vmatpush3.msra.mxu1 %v7398_v23  ;;  %v7436_v23 = vld [vmem:[%s10661_s26 + $0x330] sm:$0xff] }
 0x550   : > { %7041 = vmatprep.subr.mxu1 %v7468_v2 }
 0x551   : > { %7042 = vmatpush3.msra.mxu1 %v7399_v24  ;;  %v10417_v24 = vpop.permute.xlu1 %4000 }
 0x552   : > { %7043 = vmatprep.subr.mxu1 %v7468_v2 }
 0x553   : > { %7044 = vmatpush3.msra.mxu1 %v7400_v29  ;;  %v7437_v29 = vld [vmem:[%s10661_s26 + $0x328] sm:$0xff] }
 0x554   : > { %7045 = vmatprep.subr.mxu1 %v7468_v2 }
 0x555   : > { %7046 = vmatpush3.msra.mxu1 %v7401_v33  ;;  %v7438_v33 = vld [vmem:[%s10661_s26 + $0x320] sm:$0xff] }
 0x556   : > { %7047 = vmatprep.subr.mxu1 %v7468_v2 }
 0x557   : > { %7048 = vmatpush3.msra.mxu1 %v7402_v35  ;;  %v7439_v35 = vld [vmem:[%s10661_s26 + $0x318] sm:$0xff] }
 0x558   : > { %7049 = vmatprep.subr.mxu1 %v7468_v2 }
 0x559   : > { %7050 = vmatpush3.msra.mxu1 %v7403_v37  ;;  %v3456_v37 = vpop.permute.xlu1 %3455 }
 0x55a   : > { %7051 = vmatprep.subr.mxu1 %v7468_v2 }
 0x55b   : > { %7052 = vmatpush3.msra.mxu1 %v7404_v41  ;;  %v7440_v41 = vld [vmem:[%s10661_s26 + $0x310] sm:$0xff] }
 0x55c   : > { %7053 = vmatprep.subr.mxu1 %v7468_v2 }
 0x55d   : > { %7054 = vmatpush3.msra.mxu1 %v7405_v56  ;;  %v7441_v56 = vld [vmem:[%s10661_s26 + $0x308] sm:$0xff] }
 0x55e   : > { %7055 = vmatprep.subr.mxu1 %v7468_v2 }
 0x55f   : > { %7056 = vmatpush3.msra.mxu1 %v7406_v60  ;;  %v7442_v60 = vld [vmem:[%s10661_s26 + $0x300] sm:$0xff] }
 0x560   : > { %7057 = vmatprep.subr.mxu1 %v7468_v2 }
 0x561   : > { %7058 = vmatpush3.msra.mxu1 %v7407_v1  ;;  %v3548_v1 = vpop.permute.xlu1 %3547 }
 0x562   : > { %7059 = vmatprep.subr.mxu1 %v7468_v2 }
 0x563   : > { %7060 = vmatpush3.msra.mxu1 %v7408_v13 }
 0x564   : > { %7061 = vmatprep.subr.mxu1 %v7468_v2 }
 0x565   : > { %7062 = vmatpush3.msra.mxu1 %v7409_v17 }
 0x566   : > { %7063 = vmatprep.subr.mxu1 %v7468_v2 }
 0x567   : > { %7064 = vmatpush3.msra.mxu1 %v7410_v63  ;;  %v7443_v63 = vld [vmem:[%s10661_s26 + $0x478] sm:$0xff] }
 0x568   : > { %v10297_v3 = vpop.f32.mrf.mxu1  ;;  %7066 = vmatmul.mubr.f32.vlgmr.msra.gmra.mxu1 %v9966_v16  ;;  %7103 = vmatprep.subr.mxu1 %v7468_v2 }
 0x569   : > { %7104 = vmatpush3.msra.mxu1 %v7411_v4  ;;  %7135 = vmatprep.mubr.msk.f32.mxu1 %vm7469_vm0, %v7468_v2 }
 0x56a   : > { %v6641_v40 = vpop.f32.mrf.mxu1  ;;  %7105 = vmatprep.subr.mxu1 %v7468_v2 }
 0x56b   : > { %7106 = vmatpush3.msra.mxu1 %v7412_v44  ;;  %v3550_v40 = vmul.f32 %v3548_v1, %v10104_v39  ;;  %v7446_v39 = vld [vmem:[%s10661_s26 + $0x460] sm:$0xff] }
 0x56c   : > { %7107 = vmatprep.subr.mxu1 %v7468_v2  ;;  %v10311_v48 = vpop.f32.mrf.mxu1 }
 0x56d   : > { %7108 = vmatpush3.msra.mxu1 %v7413_v34  ;;  %v7444_v34 = vld [vmem:[%s10661_s26 + $0x470] sm:$0xff] }
 0x56e   : > { %7109 = vmatprep.subr.mxu1 %v7468_v2  ;;  %v6644_v50 = vpop.f32.mrf.mxu1  ;;  %v10378_v7 = vpop.f32.mrf.mxu0 }
 0x56f   : > { %7110 = vmatpush3.msra.mxu1 %v7414_v38  ;;  %v7445_v38 = vld [vmem:[%s10661_s26 + $0x468] sm:$0xff] }
 0x570   : > { %7111 = vmatprep.subr.mxu1 %v7468_v2  ;;  %v10321_v36 = vpop.f32.mrf.mxu1  ;;  %v7032_v62 = vpop.f32.mrf.mxu0 }
 0x571   : > { %7112 = vmatpush3.msra.mxu1 %v7415_v42 }
 0x572   : > { %7113 = vmatprep.subr.mxu1 %v7468_v2  ;;  %v6647_v18 = vpop.f32.mrf.mxu1 }
 0x573   : > { %7114 = vmatpush3.msra.mxu1 %v7416_v43  ;;  %v7447_v43 = vld [vmem:[%s10661_s26 + $0x458] sm:$0xff] }
 0x574   : > { %7115 = vmatprep.subr.mxu1 %v7468_v2 }
 0x575   : > { %7116 = vmatpush3.msra.mxu1 %v7417_v45  ;;  %v7448_v45 = vld [vmem:[%s10661_s26 + $0x450] sm:$0xff] }
 0x576   : > { %7117 = vmatprep.subr.mxu1 %v7468_v2 }
 0x577   : > { %7118 = vmatpush3.msra.mxu1 %v7418_v47  ;;  %v7449_v47 = vld [vmem:[%s10661_s26 + $0x448] sm:$0xff] }
 0x578   : > { %7119 = vmatprep.subr.mxu1 %v7468_v2 }
 0x579   : > { %7120 = vmatpush3.msra.mxu1 %v7419_v6  ;;  %v7450_v6 = vld [vmem:[%s10661_s26 + $0x440] sm:$0xff] }
 0x57a   : > { %7121 = vmatprep.subr.mxu1 %v7468_v2 }
 0x57b   : > { %7122 = vmatpush3.msra.mxu1 %v7420_v30  ;;  %v7451_v30 = vld [vmem:[%s10661_s26 + $0x438] sm:$0xff] }
 0x57c   : > { %7123 = vmatprep.subr.mxu1 %v7468_v2 }
 0x57d   : > { %7124 = vmatpush3.msra.mxu1 %v7421_v46  ;;  %v4229_v46 = vpop.permute.xlu1 %4228 }
 0x57e   : > { %7125 = vmatprep.subr.mxu1 %v7468_v2 }
 0x57f   : > { %7126 = vmatpush3.msra.mxu1 %v7422_v20  ;;  %v7452_v20 = vld [vmem:[%s10661_s26 + $0x430] sm:$0xff] }
 0x580   : > { %7127 = vmatprep.subr.mxu1 %v7468_v2 }
 0x581   : > { %7128 = vmatpush3.msra.mxu1 %v7423_v32  ;;  %v4077_v32 = vpop.permute.xlu0 %4076 }
 0x582   : > { %7129 = vmatprep.subr.mxu1 %v7468_v2 }
 0x583   : > { %7130 = vmatpush3.msra.mxu1 %v7424_v25  ;;  %v7454_v25 = vld [vmem:[%s10661_s26 + $0x420] sm:$0xff] }
 0x584   : > { %7131 = vmatprep.subr.mxu1 %v7468_v2 }
 0x585   : > { %7132 = vmatpush3.msra.mxu1 %v7425_v12  ;;  %v4305_v12 = vpop.permute.xlu1 %4304 }
 0x586   : > { %7133 = vmatprep.subr.mxu1 %v7468_v2 }
 0x587   : > { %7134 = vmatpush3.msra.mxu1 %v7426_v0  ;;  %v4153_v0 = vpop.permute.xlu0 %4152 }
 0x588   : > { %v3266_v61 = vpop.f32.mrf.mxu1  ;;  %7136 = vmatmul.mubr.f32.vlgmr.msra.gmra.mxu1 %v9966_v16  ;;  %7173 = vmatprep.subr.mxu1 %v7468_v2 }
 0x589   : > { %v3274_v28 = vmul.f32 %v3272_v57, %v3266_v61  ;;  %7174 = vmatpush3.msra.mxu1 %v7427_v31  ;;  %7205 = vmatprep.mubr.msk.f32.mxu1 %vm7469_vm0, %v7468_v2  ;;  %v7456_v57 = vld [vmem:[%s10661_s26 + $0x410] sm:$0xff]  ;;  %v7457_v61 = vld [vmem:[%s10661_s26 + $0x408] sm:$0xff] }
 0x58a   : > { %v6717_v52 = vpop.f32.mrf.mxu1  ;;  %7175 = vmatprep.subr.mxu1 %v7468_v2 }
 0x58b   : > { %v3275_v58 = vadd.f32 %v3274_v28, %v3182_v27  ;;  %7176 = vmatpush3.msra.mxu1 %v7428_v8  ;;  %v3732_v27 = vpop.permute.xlu1 %3731  ;;  %v7458_v28 = vld [vmem:[%s10661_s26 + $0x400] sm:$0xff]  ;;  %v3640_v31 = vpop.permute.xlu0 %3639 }
 0x58c   : > { %7177 = vmatprep.subr.mxu1 %v7468_v2  ;;  %v3734_v8 = vmul.f32 %v3732_v27, %v10166_v51  ;;  %v4079_v51 = vmul.f32 %v4077_v32, %v10378_v7  ;;  %v3043_v27 = vadd.f32 %v10311_v48, %v9857_v26 }
 0x58d   : > { %7178 = vmatpush3.msra.mxu1 %v7429_v5  ;;  %v3367_v59 = vadd.f32 %v3366_v54, %v3275_v58 }
 0x58e   : > { %7179 = vmatprep.subr.mxu1 %v7468_v2 }
 0x58f   : > { %7180 = vmatpush3.msra.mxu1 %v7430_v9 }
 0x590   : > { %7181 = vmatprep.subr.mxu1 %v7468_v2 }
 0x591   : > { %7182 = vmatpush3.msra.mxu1 %v7431_v10  ;;  %v3824_v10 = vpop.permute.xlu1 %3823 }
 0x592   : > { %7183 = vmatprep.subr.mxu1 %v7468_v2 }
 0x593   : > { %7184 = vmatpush3.msra.mxu1 %v7432_v11 }
 0x594   : > { %7185 = vmatprep.subr.mxu1 %v7468_v2  ;;  %v10455_v50 = vpop.f32.mrf.mxu0 }
 0x595   : > { %7186 = vmatpush3.msra.mxu1 %v7433_v15  ;;  %v3916_v11 = vpop.permute.xlu1 %3915 }
 0x596   : > { %7187 = vmatprep.subr.mxu1 %v7468_v2  ;;  %v7102_v18 = vpop.f32.mrf.mxu0 }
 0x597   : > { %7188 = vmatpush3.msra.mxu1 %v7434_v19 }
 0x598   : > { %7189 = vmatprep.subr.mxu1 %v7468_v2 }
 0x599   : > { %7190 = vmatpush3.msra.mxu1 %v7435_v21  ;;  %v4533_v15 = vpop.permute.xlu1 %4532 }
 0x59a   : > { %7191 = vmatprep.subr.mxu1 %v7468_v2 }
 0x59b   : > { %7192 = vmatpush3.msra.mxu1 %v7436_v23 }
 0x59c   : > { %7193 = vmatprep.subr.mxu1 %v7468_v2 }
 0x59d   : > { %7194 = vmatpush3.msra.mxu1 %v7437_v29 }
 0x59e   : > { %7195 = vmatprep.subr.mxu1 %v7468_v2 }
 0x59f   : > { %7196 = vmatpush3.msra.mxu1 %v7438_v33 }
 0x5a0   : > { %7197 = vmatprep.subr.mxu1 %v7468_v2 }
 0x5a1   : > { %7198 = vmatpush3.msra.mxu1 %v7439_v35 }
 0x5a2   : > { %7199 = vmatprep.subr.mxu1 %v7468_v2 }
 0x5a3   : > { %7200 = vmatpush3.msra.mxu1 %v7440_v41 }
 0x5a4   : > { %7201 = vmatprep.subr.mxu1 %v7468_v2 }
 0x5a5   : > { %7202 = vmatpush3.msra.mxu1 %v7441_v56 }
 0x5a6   : > { %7203 = vmatprep.subr.mxu1 %v7468_v2 }
 0x5a7   : > { %7204 = vmatpush3.msra.mxu1 %v7442_v60 }
 0x5a8   : > { %v3450_v13 = vpop.f32.mrf.mxu1  ;;  %7206 = vmatmul.mubr.f32.vlgmr.msra.gmra.mxu1 %v9966_v16  ;;  %7243 = vmatprep.subr.mxu1 %v7468_v2 }
 0x5a9   : > { %v3458_v17 = vmul.f32 %v3456_v37, %v3450_v13  ;;  %7244 = vmatpush3.msra.mxu1 %v7443_v63  ;;  %7275 = vmatprep.mubr.msk.f32.mxu1 %vm7469_vm0, %v7468_v2 }
 0x5aa   : > { %v6787_v4 = vpop.f32.mrf.mxu1  ;;  %7245 = vmatprep.subr.mxu1 %v7468_v2 }
 0x5ab   : > { %v3459_v44 = vadd.f32 %v3458_v17, %v3367_v59  ;;  %7246 = vmatpush3.msra.mxu1 %v7444_v34  ;;  %v4613_v17 = vld [vmem:[%s10560_s17] sm:$0xff]  ;;  %v4231_v4 = vmul.f32 %v4229_v46, %v10455_v50 }
 0x5ac   : > { %7247 = vmatprep.subr.mxu1 %v7468_v2 }
 0x5ad   : > { %7248 = vmatpush3.msra.mxu1 %v7445_v38  ;;  %v3551_v42 = vadd.f32 %v3550_v40, %v3459_v44  ;;  %v4381_v38 = vpop.permute.xlu0 %4380 }
 0x5ae   : > { %7249 = vmatprep.subr.mxu1 %v7468_v2 }
 0x5af   : > { %7250 = vmatpush3.msra.mxu1 %v7446_v39 }
 0x5b0   : > { %7251 = vmatprep.subr.mxu1 %v7468_v2 }
 0x5b1   : > { %7252 = vmatpush3.msra.mxu1 %v7447_v43 }
 0x5b2   : > { %7253 = vmatprep.subr.mxu1 %v7468_v2 }
 0x5b3   : > { %7254 = vmatpush3.msra.mxu1 %v7448_v45  ;;  %v4457_v45 = vpop.permute.xlu0 %4456 }
 0x5b4   : > { %7255 = vmatprep.subr.mxu1 %v7468_v2 }
 0x5b5   : > { %7256 = vmatpush3.msra.mxu1 %v7449_v47 }
 0x5b6   : > { %7257 = vmatprep.subr.mxu1 %v7468_v2 }
 0x5b7   : > { %7258 = vmatpush3.msra.mxu1 %v7450_v6 }
 0x5b8   : > { %7259 = vmatprep.subr.mxu1 %v7468_v2  ;;  %v4375_v5 = vpop.f32.mrf.mxu0 }
 0x5b9   : > { %7260 = vmatpush3.msra.mxu1 %v7451_v30  ;;  %v4383_v18 = vmul.f32 %v4381_v38, %v4375_v5  ;;  %v3048_v5 = vadd.f32 %v10321_v36, %v9869_v55 }
 0x5ba   : > { %7261 = vmatprep.subr.mxu1 %v7468_v2  ;;  %v7172_v9 = vpop.f32.mrf.mxu0 }
 0x5bb   : > { %7262 = vmatpush3.msra.mxu1 %v7452_v20 }
 0x5bc   : > { %7263 = vmatprep.subr.mxu1 %v7468_v2 }
 0x5bd   : > { %7264 = vmatpush3.msra.mxu1 %v7453_v22 }
 0x5be   : > { %7265 = vmatprep.subr.mxu1 %v7468_v2 }
 0x5bf   : > { %7266 = vmatpush3.msra.mxu1 %v7454_v25  ;;  %v4609_v25 = vpop.permute.xlu0 %4608 }
 0x5c0   : > { %7267 = vmatprep.subr.mxu1 %v7468_v2 }
 0x5c1   : > { %7268 = vmatpush3.msra.mxu1 %v7455_v53 }
 0x5c2   : > { %7269 = vmatprep.subr.mxu1 %v7468_v2 }
 0x5c3   : > { %7270 = vmatpush3.msra.mxu1 %v7456_v57 }
 0x5c4   : > { %7271 = vmatprep.subr.mxu1 %v7468_v2 }
 0x5c5   : > { %7272 = vmatpush3.msra.mxu1 %v7457_v61 }
 0x5c6   : > { %7273 = vmatprep.subr.mxu1 %v7468_v2 }
 0x5c7   : > { %7274 = vmatpush3.msra.mxu1 %v7458_v28  ;;  %v3038_v28 = vadd.f32 %v10297_v3, %v9840_v49 }
 0x5c8   : > { %v3634_v52 = vpop.f32.mrf.mxu1  ;;  %7276 = vmatmul.mubr.f32.vlgmr.msra.gmra.mxu1 %v9966_v16  ;;  %7283 = vmatprep.subr.mxu1 %v7468_v2  ;;  %v3918_v16 = vmul.f32 %v3916_v11, %v10235_v14 }
 0x5c9   : > { %v3642_v54 = vmul.f32 %v3640_v31, %v3634_v52  ;;  %7285 = vmatprep.mubr.msk.f32.mxu1 %vm7469_vm0, %v7468_v2  ;;  %v3924_v2 = vpop.permute.xlu1 %3923  ;;  %v3062_v31 = vpop.permute.xlu0 %3061 }
 0x5ca   : > { %v6857_v58 = vpop.f32.mrf.mxu1 }
 0x5cb   : > { %v3643_v62 = vadd.f32 %v3642_v54, %v3551_v42  ;;  %v3070_v54 = vadd.f32 %v3062_v31, %v3043_v27 }
 0x5cd   : > { %v3735_v59 = vadd.f32 %v3734_v8, %v3643_v62  ;;  %v3057_v52 = vpop.permute.xlu1 %3056  ;;  %v4986_v8 = vmul.f32 -1.442695, %v3070_v54 }
 0x5ce   : > { %v3069_v58 = vadd.f32 %v3057_v52, %v3038_v28 }
 0x5cf   : > { %7359 = vpow2.f32 %v4986_v8 }
 0x5d0   : > { %v4985_v62 = vmul.f32 -1.442695, %v3069_v58 }
 0x5d2   : > { %7361 = vpow2.f32 %v4985_v62 }
 0x5dc   : > { %v4527_v33 = vpop.f32.mrf.mxu0 }
 0x5dd   : > { %v4535_v30 = vmul.f32 %v4533_v15, %v4527_v33 }
 0x5de   : > { %v7242_v37 = vpop.f32.mrf.mxu0 }
 0x5e8   : > { %v3818_v19 = vpop.f32.mrf.mxu1 }
 0x5e9   : > { %v3826_v21 = vmul.f32 %v3824_v10, %v3818_v19  ;;  %v7360_v10 = vpop.eup %7359 }
 0x5ea   : > { %v6927_v23 = vpop.f32.mrf.mxu1  ;;  %v7362_v11 = vpop.eup %7361  ;;  %v3082_v26 = vadd.f32 1.0, %v7360_v10 }
 0x5eb   : > { %v3827_v29 = vadd.f32 %v3826_v21, %v3735_v59  ;;  %v3067_v59 = vpop.permute.xlu1 %3066  ;;  %v3081_v48 = vadd.f32 1.0, %v7362_v11 }
 0x5ec   : > { %v3071_v9 = vadd.f32 %v3067_v59, %v3048_v5 }
 0x5ed   : > { %v3919_v35 = vadd.f32 %v3918_v16, %v3827_v29  ;;  %v2710_v16 = vld [vmem:[#allocation5] sm:$0xff] }
 0x5ee   : > { %v4987_v15 = vmul.f32 -1.442695, %v3071_v9 }
 0x5ef   : > { %v3926_v41 = vadd.f32 %v3924_v2, %v3919_v35 }
 0x5f0   : > { %7363 = vpow2.f32 %v4987_v15 }
 0x5f1   : > { %7284 = vmatpush3.msra.mxu1 %v3926_v41  ;;  %7365 = vrcp.f32 %v3082_v26 }
 0x5f2   : > { %7286 = vmatmul.mubr.msk.f32.vlgmr.msra.gmra.mxu1 %vm796_vm2, %v4613_v17  ;;  %7367 = vrcp.f32 %v3081_v48 }
 0x5fd   : > { %v7364_v21 = vpop.eup %7363 }
 0x5fe   : > { %v7366_v23 = vpop.eup %7365  ;;  %v3083_v36 = vadd.f32 1.0, %v7364_v21 }
 0x5ff   : > { %v7368_v29 = vpop.eup %7367  ;;  %v4762_v33 = vmul.f32 %v7366_v23, %v2710_v16 }
 0x608   : > { %v3994_v56 = vpop.f32.mrf.mxu1 }
 0x609   : > { %v4003_v60 = vmul.f32 %v10417_v24, %v3994_v56 }
 0x60a   : > { %v6997_v1 = vpop.f32.mrf.mxu1 }
 0x60b   : > { %v4080_v13 = vadd.f32 %v4079_v51, %v4003_v60 }
 0x628   : > { %v4147_v14 = vpop.f32.mrf.mxu1 }
 0x629   : > { %v4155_v63 = vmul.f32 %v4153_v0, %v4147_v14 }
 0x62a   : > { %v7067_v40 = vpop.f32.mrf.mxu1 }
 0x62b   : > { %v4156_v44 = vadd.f32 %v4155_v63, %v4080_v13 }
 0x62d   : > { %v4232_v34 = vadd.f32 %v4231_v4, %v4156_v44 }
 0x648   : > { %v4299_v7 = vpop.f32.mrf.mxu1 }
 0x649   : > { %v4307_v42 = vmul.f32 %v4305_v12, %v4299_v7  ;;  %v4614_v12 = vld [vmem:[%s10561_s18] sm:$0xff] }
 0x64a   : > { %v7137_v24 = vpop.f32.mrf.mxu1 }
 0x64b   : > { %v4308_v39 = vadd.f32 %v4307_v42, %v4232_v34 }
 0x64d   : > { %v4384_v43 = vadd.f32 %v4383_v18, %v4308_v39 }
 0x668   : > { %v4451_v47 = vpop.f32.mrf.mxu1 }
 0x669   : > { %v4459_v6 = vmul.f32 %v4457_v45, %v4451_v47 }
 0x66a   : > { %v7207_v20 = vpop.f32.mrf.mxu1 }
 0x66b   : > { %v4460_v32 = vadd.f32 %v4459_v6, %v4384_v43 }
 0x66d   : > { %v4536_v22 = vadd.f32 %v4535_v30, %v4460_v32 }
 0x688   : > { %v4603_v53 = vpop.f32.mrf.mxu1 }
 0x689   : > { %v4611_v50 = vmul.f32 %v4609_v25, %v4603_v53 }
 0x68a   : > { %v7277_v46 = vpop.f32.mrf.mxu1 }
 0x68b   : > { %v4612_v0 = vadd.f32 %v4611_v50, %v4536_v22 }
 0x68d   : > { %7279 = vmatpush3.msra.mxu0 %v4612_v0 }
 0x68e   : > { %7281 = vmatmul.mubr.msk.f32.vlgmr.msra.gmra.mxu0 %vm796_vm2, %v4614_v12 }
 0x6b2   : > { %v4757_v57 = vpop.f32.mrf.mxu1 }
 0x6b4   : > { %v7287_v61 = vpop.f32.mrf.mxu1 }
 0x74e   : > { %v4684_v49 = vpop.f32.mrf.mxu0 }
 0x74f   : > { %v4758_v3 = vadd.f32 %v4757_v57, %v4684_v49 }
 0x750   : > { %v7282_v19 = vpop.f32.mrf.mxu0 }
 0x751   : > { %7369 = vtanh.f32 %v4758_v3 }
 0x752   : > { %7371 = vrcp.f32 %v3083_v36 }
 0x75e   : > { %v7370_v55 = vpop.eup %7369 }
 0x75f   : > { %v4763_v35 = vmul.f32 %v7370_v55, %v7368_v29  ;;  %v7372_v2 = vpop.eup %7371 }
 0x761   : > { %v4764_v37 = vadd.f32 %v4763_v35, %v4762_v33 }
 0x763   : > { %7373 = vtanh.f32 %v4764_v37  ;;  %4768 = vst [vmem:[#allocation5] sm:$0xff] %v4764_v37  ;;  %4770 = vst [vmem:[%s10563_s20] sm:$0xff] %v4764_v37 }
 0x770   : > { %v7374_v41 = vpop.eup %7373 }
 0x771   : > { %v4766_v51 = vmul.f32 %v7374_v41, %v7372_v2 }
 0x773   : > { %4767 = vst [vmem:[#allocation4] sm:$0xff] %v4766_v51  ;;  %4769 = vst [vmem:[%s7600_s29] sm:$0xff] %v4766_v51 }
 0x774 PF: > { %s31_s1 = sadd.s32 1, %s7465_s1  }
 0x775   : > { %p28_p5 = scmp.ge.s32.totalorder %s31_s1, 5  }
 0x777   :  { %30 = sbr.rel (!%p28_p5) target bundleno = 6 (0x6), region = 146 }

</bundles_post_ra>
